<compile_context>
chip_gen: v7x
topology: tpu7x:2x2x1
jax: 0.10.0
libtpu: 0.0.40
codegen_flags: <defaults>
</compile_context>

<pallas_src>
import jax
import jax.numpy as jnp
from jax import lax
from jax.experimental import pallas as pl
from jax.experimental.pallas import tpu as pltpu

# --- model hyper-parameters (PyTorch defaults of the module) ----------------
D_MODEL = 128
N_HEADS = 4
N_LAYERS = 4
N_CLASSES = 11
D_FF = 2048            # nn.TransformerEncoderLayer default dim_feedforward
LN_EPS = 1e-5
HEAD_DIM = D_MODEL // N_HEADS
NEG_INF = -1e9         # additive key-padding mask value


# ------------------------------ kernel helpers -------------------------------

def _layernorm(x, gamma, beta, eps=LN_EPS):
    mu = jnp.mean(x, axis=-1, keepdims=True)
    xc = x - mu
    var = jnp.mean(xc * xc, axis=-1, keepdims=True)
    return xc * lax.rsqrt(var + eps) * gamma + beta


# ------------------------- fully fused forward kernel ------------------------

def _fused_kernel(x_ref, mask_ref, pos_ref, inw_ref, inb_ref,
                  wqkv_ref, bqkv_ref, wo_ref, bo_ref,
                  w1_ref, b1_ref, w2_ref, b2_ref,
                  g1_ref, be1_ref, g2_ref, be2_ref,
                  clsw_ref, clsb_ref,
                  o_ref,
                  h_scr, attn_scr):
    l = pl.program_id(1)
    BB, T, _ = x_ref.shape
    D = inw_ref.shape[1]
    R = BB * T

    mask = mask_ref[...]                       # (BB, 1, T) f32: 1=valid 0=pad
    bias = (1.0 - mask) * NEG_INF              # 0 where valid, -1e9 where pad

    # ---------- l == 0: input projection (3 VPU FMAs) + positional embed ----
    @pl.when(l == 0)
    def _():
        x = x_ref[...]                         # (BB, T, 3) f32
        w = inw_ref[...]                       # (3, D)     f32
        y = x[:, :, 0:1] * w[0:1, :]
        y = y + x[:, :, 1:2] * w[1:2, :]
        y = y + x[:, :, 2:3] * w[2:3, :]
        y = y + inb_ref[...] + pos_ref[...]    # + (1,D) + (1,T,D)
        h_scr[...] = y.reshape(R, D)

    # ---------- encoder layer l (post-norm) on the flattened row slab -------
    x2 = h_scr[...]                                        # (R, D) f32
    xb = x2.astype(jnp.bfloat16)

    # fused Q/K/V projection (1/sqrt(head_dim) already folded into Wq/bq)
    qkv = jnp.dot(xb, wqkv_ref[0],
                  preferred_element_type=jnp.float32) + bqkv_ref[0]   # (R, 3D)
    qkv3 = qkv.reshape(BB, T, 3 * D)
    q = qkv3[:, :, :D]
    k = qkv3[:, :, D:2 * D]
    v = qkv3[:, :, 2 * D:]

    # per-head attention, batched over the BB examples; PV results land in a
    # VMEM slab (no lane concat at the end).
    for h in range(N_HEADS):
        lo = h * HEAD_DIM
        hi = lo + HEAD_DIM
        qh = q[:, :, lo:hi].astype(jnp.bfloat16)            # (BB, T, Hd)
        kh = k[:, :, lo:hi].astype(jnp.bfloat16)
        vh = v[:, :, lo:hi].astype(jnp.bfloat16)
        s = lax.dot_general(qh, kh, (((2,), (2,)), ((0,), (0,))),
                            preferred_element_type=jnp.float32)  # (BB, T, T)
        s = s + bias
        m = jnp.max(s, axis=-1, keepdims=True)
        p = jnp.exp(s - m)
        p = p / jnp.sum(p, axis=-1, keepdims=True)          # exact softmax
        pv = lax.dot_general(p.astype(jnp.bfloat16), vh,
                             (((2,), (1,)), ((0,), (0,))),
                             preferred_element_type=jnp.float32)  # (BB, T, Hd)
        attn_scr[:, :, lo:hi] = pv

    # out-proj + residual + LayerNorm1 (post-norm)
    attn = attn_scr[...].reshape(R, D).astype(jnp.bfloat16)
    ao = jnp.dot(attn, wo_ref[0],
                 preferred_element_type=jnp.float32) + bo_ref[0]
    x1 = _layernorm(x2 + ao, g1_ref[0], be1_ref[0])

    # feed-forward (relu); hidden cast to bf16 right after the ReLU
    h1 = jnp.dot(x1.astype(jnp.bfloat16), w1_ref[0],
                 preferred_element_type=jnp.float32) + b1_ref[0]      # (R, FF)
    h1 = jnp.maximum(h1, 0.0).astype(jnp.bfloat16)
    ff = jnp.dot(h1, w2_ref[0],
                 preferred_element_type=jnp.float32) + b2_ref[0]
    x_out = _layernorm(x1 + ff, g2_ref[0], be2_ref[0])
    h_scr[...] = x_out

    # ---------- l == L-1: masked mean pooling + classifier ------------------
    @pl.when(l == pl.num_programs(1) - 1)
    def _():
        xf = x_out.reshape(BB, T, D)
        msum = lax.dot_general(mask, xf, (((2,), (1,)), ((0,), (0,))),
                               preferred_element_type=jnp.float32)    # (BB,1,D)
        length = jnp.sum(mask, axis=-1, keepdims=True)                # (BB,1,1)
        # NOTE: PyTorch divides by lengths without clamping (NaN for a fully
        # padded row); we clamp to 1 so such rows stay finite.
        pooled = (msum / jnp.maximum(length, 1.0)).reshape(BB, D)
        logits = jnp.dot(pooled, clsw_ref[...],
                         preferred_element_type=jnp.float32) + clsb_ref[...]
        o_ref[...] = logits.reshape(BB, 1, logits.shape[-1])


# ------------------------------ forward wrapper -------------------------------

def _pick_batch_block(B, T):
    # Aim for BB*T >= ~256 flattened rows per matmul (fills the 256-wide MXU
    # on v6e/v7x) while keeping BB a divisor of B.  For large B this still
    # leaves several grid steps per TensorCore on v7x.
    bb = max(1, min(B, 256 // max(T, 1)))
    while B % bb != 0:
        bb -= 1
    return bb


def sketch_transformer_forward(prep, x, mask):
    """x: (B, T, 3) f32, mask: (B, T) {0,1}. Returns (B, N_CLASSES) logits."""
    B, T, C_in = x.shape
    D = D_MODEL
    BB = _pick_batch_block(B, T)
    grid = (B // BB, N_LAYERS)

    mask3 = mask.reshape(B, 1, T).astype(jnp.float32)
    pos = prep["pos_embed"][:, :T, :]                      # (1, T, D)

    def rep(shape):                                        # grid-invariant block
        return pl.BlockSpec(shape, lambda b, l, _s=shape: tuple(0 for _ in _s))

    def per_layer(shape):                                  # indexed by layer axis
        return pl.BlockSpec((1,) + shape,
                            lambda b, l, _s=shape: (l,) + tuple(0 for _ in _s))

    out = pl.pallas_call(
        _fused_kernel,
        out_shape=jax.ShapeDtypeStruct((B, 1, N_CLASSES), jnp.float32),
        grid=grid,
        in_specs=[
            pl.BlockSpec((BB, T, C_in), lambda b, l: (b, 0, 0)),   # x
            pl.BlockSpec((BB, 1, T), lambda b, l: (b, 0, 0)),      # mask
            rep((1, T, D)),                                        # pos embed
            rep((C_in, D)), rep((1, D)),                           # in_w, in_b
            per_layer((D, 3 * D)), per_layer((1, 3 * D)),          # wqkv, bqkv
            per_layer((D, D)), per_layer((1, D)),                  # wo, bo
            per_layer((D, D_FF)), per_layer((1, D_FF)),            # w1, b1
            per_layer((D_FF, D)), per_layer((1, D)),               # w2, b2
            per_layer((1, D)), per_layer((1, D)),                  # ln1 g/b
            per_layer((1, D)), per_layer((1, D)),                  # ln2 g/b
            rep((D, N_CLASSES)), rep((1, N_CLASSES)),              # cls w/b
        ],
        out_specs=pl.BlockSpec((BB, 1, N_CLASSES), lambda b, l: (b, 0, 0)),
        scratch_shapes=[
            pltpu.VMEM((BB * T, D), jnp.float32),    # residual stream (carried)
            pltpu.VMEM((BB, T, D), jnp.float32),     # per-head attention slab
        ],
        compiler_params=pltpu.CompilerParams(
            dimension_semantics=("parallel", "arbitrary"),
            vmem_limit_bytes=48 * 1024 * 1024),
    )(x, mask3, pos,
      prep["in_w"], prep["in_b"],
      prep["wqkv"], prep["bqkv"], prep["wo"], prep["bo"],
      prep["w1"], prep["b1"], prep["w2"], prep["b2"],
      prep["ln1_g"], prep["ln1_b"], prep["ln2_g"], prep["ln2_b"],
      prep["cls_w"], prep["cls_b"])
    return out.reshape(B, N_CLASSES)


# ------------------------- parameter prep (done once) -------------------------

def prepare_params(params):
    """Fold the QK scale into Wq, fuse Q/K/V, stack per-layer weights and cast
    matmul weights to bf16 ONCE (not per forward call)."""
    scale = 1.0 / (HEAD_DIM ** 0.5)
    layers = params["layers"]
    L = len(layers)

    def stack(name):
        return jnp.stack([lp[name] for lp in layers])

    wqkv = jnp.stack([jnp.concatenate(
        [lp["wq"] * scale, lp["wk"], lp["wv"]], axis=1) for lp in layers]
    ).astype(jnp.bfloat16)                                           # (L, D, 3D)
    bqkv = jnp.stack([jnp.concatenate(
        [lp["bq"] * scale, lp["bk"], lp["bv"]])[None, :] for lp in layers]
    ).astype(jnp.float32)                                            # (L, 1, 3D)

    return {
        "pos_embed": params["pos_embed"].astype(jnp.float32),
        "in_w": params["in_w"].astype(jnp.float32),
        "in_b": params["in_b"].reshape(1, D_MODEL).astype(jnp.float32),
        "wqkv": wqkv, "bqkv": bqkv,
        "wo": stack("wo").astype(jnp.bfloat16),
        "bo": stack("bo").reshape(L, 1, D_MODEL).astype(jnp.float32),
        "w1": stack("w1").astype(jnp.bfloat16),
        "b1": stack("b1").reshape(L, 1, D_FF).astype(jnp.float32),
        "w2": stack("w2").astype(jnp.bfloat16),
        "b2": stack("b2").reshape(L, 1, D_MODEL).astype(jnp.float32),
        "ln1_g": stack("ln1_g").reshape(L, 1, D_MODEL).astype(jnp.float32),
        "ln1_b": stack("ln1_b").reshape(L, 1, D_MODEL).astype(jnp.float32),
        "ln2_g": stack("ln2_g").reshape(L, 1, D_MODEL).astype(jnp.float32),
        "ln2_b": stack("ln2_b").reshape(L, 1, D_MODEL).astype(jnp.float32),
        "cls_w": params["cls_w"].astype(jnp.float32),
        "cls_b": params["cls_b"].reshape(1, N_CLASSES).astype(jnp.float32),
    }


# ------------------------------ parameter init --------------------------------

def _dense(key, fan_in, fan_out, scale=0.02):
    w = jax.random.normal(key, (fan_in, fan_out), jnp.float32) * scale
    b = jnp.zeros((fan_out,), jnp.float32)
    return w, b


def init_params(key):
    params = {}
    key, k_in, k_pos, k_cls = jax.random.split(key, 4)
    params["in_w"], params["in_b"] = _dense(k_in, 3, D_MODEL)
    params["pos_embed"] = (jax.random.normal(k_pos, (1, 2000, D_MODEL),
                                             jnp.float32) * 0.02)
    params["cls_w"], params["cls_b"] = _dense(k_cls, D_MODEL, N_CLASSES)

    layers = []
    for _ in range(N_LAYERS):
        key, kq, kk, kv, ko, k1, k2 = jax.random.split(key, 7)
        lp = {}
        lp["wq"], lp["bq"] = _dense(kq, D_MODEL, D_MODEL)
        lp["wk"], lp["bk"] = _dense(kk, D_MODEL, D_MODEL)
        lp["wv"], lp["bv"] = _dense(kv, D_MODEL, D_MODEL)
        lp["wo"], lp["bo"] = _dense(ko, D_MODEL, D_MODEL)
        lp["w1"], lp["b1"] = _dense(k1, D_MODEL, D_FF)
        lp["w2"], lp["b2"] = _dense(k2, D_FF, D_MODEL)
        lp["ln1_g"] = jnp.ones((D_MODEL,), jnp.float32)
        lp["ln1_b"] = jnp.zeros((D_MODEL,), jnp.float32)
        lp["ln2_g"] = jnp.ones((D_MODEL,), jnp.float32)
        lp["ln2_b"] = jnp.zeros((D_MODEL,), jnp.float32)
        layers.append(lp)
    params["layers"] = layers
    return params


# ---------------------------------- main --------------------------------------

if __name__ == "__main__":
    root = jax.random.PRNGKey(0)
    kp, kx = jax.random.split(root)
    params = init_params(kp)
    prep = prepare_params(params)          # weight fusion / bf16 casts: once

    B, T = 2, 8                            # small test shape (T multiple of 8)
    x = jax.random.normal(kx, (B, T, 3), dtype=jnp.float32)
    lengths = jnp.array([T, 5], dtype=jnp.int32)
    mask = (jnp.arange(T)[None, :] < lengths[:, None]).astype(jnp.float32)

    fwd = jax.jit(sketch_transformer_forward)
    logits = jax.block_until_ready(fwd(prep, x, mask))

    assert logits.shape == (B, N_CLASSES)
    assert bool(jnp.all(jnp.isfinite(logits)))
    print("KERNEL_OK")
</pallas_src>

<mosaic_0001>
module attributes {stable_mosaic.version = 11 : i64} {
  func.func @_fused_kernel(%arg0: i32, %arg1: i32, %arg2: memref<2x8x3xf32, #tpu.memory_space<vmem>>, %arg3: memref<2x1x8xf32, #tpu.memory_space<vmem>>, %arg4: memref<1x8x128xf32, #tpu.memory_space<vmem>>, %arg5: memref<3x128xf32, #tpu.memory_space<vmem>>, %arg6: memref<1x128xf32, #tpu.memory_space<vmem>>, %arg7: memref<1x128x384xbf16, #tpu.memory_space<vmem>>, %arg8: memref<1x1x384xf32, #tpu.memory_space<vmem>>, %arg9: memref<1x128x128xbf16, #tpu.memory_space<vmem>>, %arg10: memref<1x1x128xf32, #tpu.memory_space<vmem>>, %arg11: memref<1x128x2048xbf16, #tpu.memory_space<vmem>>, %arg12: memref<1x1x2048xf32, #tpu.memory_space<vmem>>, %arg13: memref<1x2048x128xbf16, #tpu.memory_space<vmem>>, %arg14: memref<1x1x128xf32, #tpu.memory_space<vmem>>, %arg15: memref<1x1x128xf32, #tpu.memory_space<vmem>>, %arg16: memref<1x1x128xf32, #tpu.memory_space<vmem>>, %arg17: memref<1x1x128xf32, #tpu.memory_space<vmem>>, %arg18: memref<1x1x128xf32, #tpu.memory_space<vmem>>, %arg19: memref<128x11xf32, #tpu.memory_space<vmem>>, %arg20: memref<1x11xf32, #tpu.memory_space<vmem>>, %arg21: memref<2x1x11xf32, #tpu.memory_space<vmem>>, %arg22: memref<16x128xf32, #tpu.memory_space<vmem>>, %arg23: memref<2x8x128xf32, #tpu.memory_space<vmem>>) attributes {dimension_semantics = [#tpu.dimension_semantics<parallel>, #tpu.dimension_semantics<arbitrary>], iteration_bounds = array<i64: 1, 4>, scalar_prefetch = 0 : i64, scratch_operands = 2 : i64, tpu.core_type = #tpu.core_type<tc>, window_params = [{transform_indices = @transform_0, window_bounds = array<i64: 2, 8, 3>}, {transform_indices = @transform_1, window_bounds = array<i64: 2, 1, 8>}, {pipeline_mode = #tpu.pipeline_mode<synchronous>, transform_indices = @transform_2, window_bounds = array<i64: 1, 8, 128>}, {pipeline_mode = #tpu.pipeline_mode<synchronous>, transform_indices = @transform_3, window_bounds = array<i64: 3, 128>}, {pipeline_mode = #tpu.pipeline_mode<synchronous>, transform_indices = @transform_4, window_bounds = array<i64: 1, 128>}, {transform_indices = @transform_5, window_bounds = array<i64: 1, 128, 384>}, {transform_indices = @transform_6, window_bounds = array<i64: 1, 1, 384>}, {transform_indices = @transform_7, window_bounds = array<i64: 1, 128, 128>}, {transform_indices = @transform_8, window_bounds = array<i64: 1, 1, 128>}, {transform_indices = @transform_9, window_bounds = array<i64: 1, 128, 2048>}, {transform_indices = @transform_10, window_bounds = array<i64: 1, 1, 2048>}, {transform_indices = @transform_11, window_bounds = array<i64: 1, 2048, 128>}, {transform_indices = @transform_12, window_bounds = array<i64: 1, 1, 128>}, {transform_indices = @transform_13, window_bounds = array<i64: 1, 1, 128>}, {transform_indices = @transform_14, window_bounds = array<i64: 1, 1, 128>}, {transform_indices = @transform_15, window_bounds = array<i64: 1, 1, 128>}, {transform_indices = @transform_16, window_bounds = array<i64: 1, 1, 128>}, {pipeline_mode = #tpu.pipeline_mode<synchronous>, transform_indices = @transform_17, window_bounds = array<i64: 128, 11>}, {pipeline_mode = #tpu.pipeline_mode<synchronous>, transform_indices = @transform_18, window_bounds = array<i64: 1, 11>}, {transform_indices = @transform_19, window_bounds = array<i64: 2, 1, 11>}]} {
    %c0 = arith.constant 0 : index
    %c0_0 = arith.constant 0 : index
    %c0_1 = arith.constant 0 : index
    %0 = vector.load %arg3[%c0, %c0_0, %c0_1] : memref<2x1x8xf32, #tpu.memory_space<vmem>>, vector<2x1x8xf32>
    %cst = arith.constant 1.000000e+00 : f32
    %1 = vector.broadcast %cst : f32 to vector<2x1x8xf32>
    %2 = arith.subf %1, %0 : vector<2x1x8xf32>
    %cst_2 = arith.constant -1.000000e+09 : f32
    %3 = vector.broadcast %cst_2 : f32 to vector<2x1x8xf32>
    %4 = arith.mulf %2, %3 : vector<2x1x8xf32>
    %c0_i32 = arith.constant 0 : i32
    %5 = arith.cmpi eq, %arg1, %c0_i32 : i32
    %6 = arith.extui %5 : i1 to i32
    %c0_i32_3 = arith.constant 0 : i32
    %7 = arith.cmpi ne, %6, %c0_i32_3 : i32
    scf.if %7 {
      %c0_88 = arith.constant 0 : index
      %c0_89 = arith.constant 0 : index
      %c0_90 = arith.constant 0 : index
      %187 = vector.load %arg2[%c0_88, %c0_89, %c0_90] : memref<2x8x3xf32, #tpu.memory_space<vmem>>, vector<2x8x3xf32>
      %c0_91 = arith.constant 0 : index
      %c0_92 = arith.constant 0 : index
      %188 = vector.load %arg5[%c0_91, %c0_92] : memref<3x128xf32, #tpu.memory_space<vmem>>, vector<3x128xf32>
      %189 = vector.extract_strided_slice %187 {offsets = [0, 0, 0], sizes = [2, 8, 1], strides = [1, 1, 1]} : vector<2x8x3xf32> to vector<2x8x1xf32>
      %190 = vector.extract_strided_slice %188 {offsets = [0, 0], sizes = [1, 128], strides = [1, 1]} : vector<3x128xf32> to vector<1x128xf32>
      %191 = vector.shape_cast %190 : vector<1x128xf32> to vector<1x1x128xf32>
      %192 = vector.broadcast %189 : vector<2x8x1xf32> to vector<2x8x128xf32>
      %193 = vector.broadcast %191 : vector<1x1x128xf32> to vector<2x8x128xf32>
      %194 = arith.mulf %192, %193 : vector<2x8x128xf32>
      %195 = vector.extract_strided_slice %187 {offsets = [0, 0, 1], sizes = [2, 8, 1], strides = [1, 1, 1]} : vector<2x8x3xf32> to vector<2x8x1xf32>
      %196 = vector.extract_strided_slice %188 {offsets = [1, 0], sizes = [1, 128], strides = [1, 1]} : vector<3x128xf32> to vector<1x128xf32>
      %197 = vector.shape_cast %196 : vector<1x128xf32> to vector<1x1x128xf32>
      %198 = vector.broadcast %195 : vector<2x8x1xf32> to vector<2x8x128xf32>
      %199 = vector.broadcast %197 : vector<1x1x128xf32> to vector<2x8x128xf32>
      %200 = arith.mulf %198, %199 : vector<2x8x128xf32>
      %201 = arith.addf %194, %200 : vector<2x8x128xf32>
      %202 = vector.extract_strided_slice %187 {offsets = [0, 0, 2], sizes = [2, 8, 1], strides = [1, 1, 1]} : vector<2x8x3xf32> to vector<2x8x1xf32>
      %203 = vector.extract_strided_slice %188 {offsets = [2, 0], sizes = [1, 128], strides = [1, 1]} : vector<3x128xf32> to vector<1x128xf32>
      %204 = vector.shape_cast %203 : vector<1x128xf32> to vector<1x1x128xf32>
      %205 = vector.broadcast %202 : vector<2x8x1xf32> to vector<2x8x128xf32>
      %206 = vector.broadcast %204 : vector<1x1x128xf32> to vector<2x8x128xf32>
      %207 = arith.mulf %205, %206 : vector<2x8x128xf32>
      %208 = arith.addf %201, %207 : vector<2x8x128xf32>
      %c0_93 = arith.constant 0 : index
      %c0_94 = arith.constant 0 : index
      %209 = vector.load %arg6[%c0_93, %c0_94] : memref<1x128xf32, #tpu.memory_space<vmem>>, vector<1x128xf32>
      %210 = vector.shape_cast %209 : vector<1x128xf32> to vector<1x1x128xf32>
      %211 = vector.broadcast %210 : vector<1x1x128xf32> to vector<2x8x128xf32>
      %212 = arith.addf %208, %211 : vector<2x8x128xf32>
      %c0_95 = arith.constant 0 : index
      %c0_96 = arith.constant 0 : index
      %c0_97 = arith.constant 0 : index
      %213 = vector.load %arg4[%c0_95, %c0_96, %c0_97] : memref<1x8x128xf32, #tpu.memory_space<vmem>>, vector<1x8x128xf32>
      %214 = vector.broadcast %213 : vector<1x8x128xf32> to vector<2x8x128xf32>
      %215 = arith.addf %212, %214 : vector<2x8x128xf32>
      %216 = vector.shape_cast %215 : vector<2x8x128xf32> to vector<16x128xf32>
      %c0_98 = arith.constant 0 : index
      %c0_99 = arith.constant 0 : index
      %217 = vector.load %arg22[%c0_98, %c0_99] : memref<16x128xf32, #tpu.memory_space<vmem>>, vector<16x128xf32>
      tpu.vector_store %arg22[%c0_98, %c0_99], %216 {strides = array<i32>} : memref<16x128xf32, #tpu.memory_space<vmem>>, vector<16x128xf32>,
    } else {
    }
    %c0_4 = arith.constant 0 : index
    %c0_5 = arith.constant 0 : index
    %8 = vector.load %arg22[%c0_4, %c0_5] : memref<16x128xf32, #tpu.memory_space<vmem>>, vector<16x128xf32>
    %9 = arith.truncf %8 : vector<16x128xf32> to vector<16x128xbf16>
    %c0_6 = arith.constant 0 : index
    %c0_7 = arith.constant 0 : index
    %c0_8 = arith.constant 0 : index
    %10 = vector.load %arg7[%c0_6, %c0_7, %c0_8] : memref<1x128x384xbf16, #tpu.memory_space<vmem>>, vector<1x128x384xbf16>
    %11 = vector.shape_cast %10 : vector<1x128x384xbf16> to vector<128x384xbf16>
    %cst_9 = arith.constant dense<0.000000e+00> : vector<16x384xf32>
    %12 = tpu.matmul %9, %11, %cst_9 {dimension_numbers = #tpu.dot_dimension_numbers<[1], [0], [0], [1], [0, 0, 1, 1], [], []>} : vector<16x128xbf16>, vector<128x384xbf16>, vector<16x384xf32> -> vector<16x384xf32>
    %c0_10 = arith.constant 0 : index
    %c0_11 = arith.constant 0 : index
    %c0_12 = arith.constant 0 : index
    %13 = vector.load %arg8[%c0_10, %c0_11, %c0_12] : memref<1x1x384xf32, #tpu.memory_space<vmem>>, vector<1x1x384xf32>
    %14 = vector.shape_cast %13 : vector<1x1x384xf32> to vector<1x384xf32>
    %15 = vector.broadcast %14 : vector<1x384xf32> to vector<16x384xf32>
    %16 = arith.addf %12, %15 : vector<16x384xf32>
    %17 = vector.shape_cast %16 : vector<16x384xf32> to vector<2x8x384xf32>
    %18 = vector.extract_strided_slice %17 {offsets = [0, 0, 0], sizes = [2, 8, 128], strides = [1, 1, 1]} : vector<2x8x384xf32> to vector<2x8x128xf32>
    %19 = vector.extract_strided_slice %17 {offsets = [0, 0, 128], sizes = [2, 8, 128], strides = [1, 1, 1]} : vector<2x8x384xf32> to vector<2x8x128xf32>
    %20 = vector.extract_strided_slice %17 {offsets = [0, 0, 256], sizes = [2, 8, 128], strides = [1, 1, 1]} : vector<2x8x384xf32> to vector<2x8x128xf32>
    %21 = vector.extract_strided_slice %18 {offsets = [0, 0, 0], sizes = [2, 8, 32], strides = [1, 1, 1]} : vector<2x8x128xf32> to vector<2x8x32xf32>
    %22 = arith.truncf %21 : vector<2x8x32xf32> to vector<2x8x32xbf16>
    %23 = vector.extract_strided_slice %19 {offsets = [0, 0, 0], sizes = [2, 8, 32], strides = [1, 1, 1]} : vector<2x8x128xf32> to vector<2x8x32xf32>
    %24 = arith.truncf %23 : vector<2x8x32xf32> to vector<2x8x32xbf16>
    %25 = vector.extract_strided_slice %20 {offsets = [0, 0, 0], sizes = [2, 8, 32], strides = [1, 1, 1]} : vector<2x8x128xf32> to vector<2x8x32xf32>
    %26 = arith.truncf %25 : vector<2x8x32xf32> to vector<2x8x32xbf16>
    %cst_13 = arith.constant dense<0.000000e+00> : vector<2x8x8xf32>
    %27 = tpu.matmul %22, %24, %cst_13 {dimension_numbers = #tpu.dot_dimension_numbers<[2], [2], [1], [1], [0, 0, 0, 1, 1, 1], [0], [0]>} : vector<2x8x32xbf16>, vector<2x8x32xbf16>, vector<2x8x8xf32> -> vector<2x8x8xf32>
    %28 = vector.broadcast %4 : vector<2x1x8xf32> to vector<2x8x8xf32>
    %29 = arith.addf %27, %28 : vector<2x8x8xf32>
    %cst_14 = arith.constant dense<0xFF800000> : vector<2x8xf32>
    %30 = vector.multi_reduction <maximumf>, %29, %cst_14 [2] : vector<2x8x8xf32> to vector<2x8xf32>
    %31 = vector.shape_cast %30 : vector<2x8xf32> to vector<2x8x1xf32>
    %32 = vector.broadcast %31 : vector<2x8x1xf32> to vector<2x8x8xf32>
    %33 = arith.subf %29, %32 : vector<2x8x8xf32>
    %34 = math.exp %33 : vector<2x8x8xf32>
    %cst_15 = arith.constant dense<0.000000e+00> : vector<2x8xf32>
    %35 = vector.multi_reduction <add>, %34, %cst_15 [2] : vector<2x8x8xf32> to vector<2x8xf32>
    %36 = vector.shape_cast %35 : vector<2x8xf32> to vector<2x8x1xf32>
    %37 = vector.broadcast %36 : vector<2x8x1xf32> to vector<2x8x8xf32>
    %38 = arith.divf %34, %37 : vector<2x8x8xf32>
    %39 = arith.truncf %38 : vector<2x8x8xf32> to vector<2x8x8xbf16>
    %cst_16 = arith.constant dense<0.000000e+00> : vector<2x8x32xf32>
    %40 = tpu.matmul %39, %26, %cst_16 {dimension_numbers = #tpu.dot_dimension_numbers<[2], [1], [1], [2], [0, 0, 0, 1, 1, 2], [0], [0]>} : vector<2x8x8xbf16>, vector<2x8x32xbf16>, vector<2x8x32xf32> -> vector<2x8x32xf32>
    %c0_17 = arith.constant 0 : index
    %c0_18 = arith.constant 0 : index
    %c0_19 = arith.constant 0 : index
    %41 = vector.load %arg23[%c0_17, %c0_18, %c0_19] : memref<2x8x128xf32, #tpu.memory_space<vmem>>, vector<2x8x32xf32>
    tpu.vector_store %arg23[%c0_17, %c0_18, %c0_19], %40 {strides = array<i32>} : memref<2x8x128xf32, #tpu.memory_space<vmem>>, vector<2x8x32xf32>,
    %42 = vector.extract_strided_slice %18 {offsets = [0, 0, 32], sizes = [2, 8, 32], strides = [1, 1, 1]} : vector<2x8x128xf32> to vector<2x8x32xf32>
    %43 = arith.truncf %42 : vector<2x8x32xf32> to vector<2x8x32xbf16>
    %44 = vector.extract_strided_slice %19 {offsets = [0, 0, 32], sizes = [2, 8, 32], strides = [1, 1, 1]} : vector<2x8x128xf32> to vector<2x8x32xf32>
    %45 = arith.truncf %44 : vector<2x8x32xf32> to vector<2x8x32xbf16>
    %46 = vector.extract_strided_slice %20 {offsets = [0, 0, 32], sizes = [2, 8, 32], strides = [1, 1, 1]} : vector<2x8x128xf32> to vector<2x8x32xf32>
    %47 = arith.truncf %46 : vector<2x8x32xf32> to vector<2x8x32xbf16>
    %cst_20 = arith.constant dense<0.000000e+00> : vector<2x8x8xf32>
    %48 = tpu.matmul %43, %45, %cst_20 {dimension_numbers = #tpu.dot_dimension_numbers<[2], [2], [1], [1], [0, 0, 0, 1, 1, 1], [0], [0]>} : vector<2x8x32xbf16>, vector<2x8x32xbf16>, vector<2x8x8xf32> -> vector<2x8x8xf32>
    %49 = vector.broadcast %4 : vector<2x1x8xf32> to vector<2x8x8xf32>
    %50 = arith.addf %48, %49 : vector<2x8x8xf32>
    %cst_21 = arith.constant dense<0xFF800000> : vector<2x8xf32>
    %51 = vector.multi_reduction <maximumf>, %50, %cst_21 [2] : vector<2x8x8xf32> to vector<2x8xf32>
    %52 = vector.shape_cast %51 : vector<2x8xf32> to vector<2x8x1xf32>
    %53 = vector.broadcast %52 : vector<2x8x1xf32> to vector<2x8x8xf32>
    %54 = arith.subf %50, %53 : vector<2x8x8xf32>
    %55 = math.exp %54 : vector<2x8x8xf32>
    %cst_22 = arith.constant dense<0.000000e+00> : vector<2x8xf32>
    %56 = vector.multi_reduction <add>, %55, %cst_22 [2] : vector<2x8x8xf32> to vector<2x8xf32>
    %57 = vector.shape_cast %56 : vector<2x8xf32> to vector<2x8x1xf32>
    %58 = vector.broadcast %57 : vector<2x8x1xf32> to vector<2x8x8xf32>
    %59 = arith.divf %55, %58 : vector<2x8x8xf32>
    %60 = arith.truncf %59 : vector<2x8x8xf32> to vector<2x8x8xbf16>
    %cst_23 = arith.constant dense<0.000000e+00> : vector<2x8x32xf32>
    %61 = tpu.matmul %60, %47, %cst_23 {dimension_numbers = #tpu.dot_dimension_numbers<[2], [1], [1], [2], [0, 0, 0, 1, 1, 2], [0], [0]>} : vector<2x8x8xbf16>, vector<2x8x32xbf16>, vector<2x8x32xf32> -> vector<2x8x32xf32>
    %c0_24 = arith.constant 0 : index
    %c0_25 = arith.constant 0 : index
    %c32 = arith.constant 32 : index
    %62 = vector.load %arg23[%c0_24, %c0_25, %c32] : memref<2x8x128xf32, #tpu.memory_space<vmem>>, vector<2x8x32xf32>
    tpu.vector_store %arg23[%c0_24, %c0_25, %c32], %61 {strides = array<i32>} : memref<2x8x128xf32, #tpu.memory_space<vmem>>, vector<2x8x32xf32>,
    %63 = vector.extract_strided_slice %18 {offsets = [0, 0, 64], sizes = [2, 8, 32], strides = [1, 1, 1]} : vector<2x8x128xf32> to vector<2x8x32xf32>
    %64 = arith.truncf %63 : vector<2x8x32xf32> to vector<2x8x32xbf16>
    %65 = vector.extract_strided_slice %19 {offsets = [0, 0, 64], sizes = [2, 8, 32], strides = [1, 1, 1]} : vector<2x8x128xf32> to vector<2x8x32xf32>
    %66 = arith.truncf %65 : vector<2x8x32xf32> to vector<2x8x32xbf16>
    %67 = vector.extract_strided_slice %20 {offsets = [0, 0, 64], sizes = [2, 8, 32], strides = [1, 1, 1]} : vector<2x8x128xf32> to vector<2x8x32xf32>
    %68 = arith.truncf %67 : vector<2x8x32xf32> to vector<2x8x32xbf16>
    %cst_26 = arith.constant dense<0.000000e+00> : vector<2x8x8xf32>
    %69 = tpu.matmul %64, %66, %cst_26 {dimension_numbers = #tpu.dot_dimension_numbers<[2], [2], [1], [1], [0, 0, 0, 1, 1, 1], [0], [0]>} : vector<2x8x32xbf16>, vector<2x8x32xbf16>, vector<2x8x8xf32> -> vector<2x8x8xf32>
    %70 = vector.broadcast %4 : vector<2x1x8xf32> to vector<2x8x8xf32>
    %71 = arith.addf %69, %70 : vector<2x8x8xf32>
    %cst_27 = arith.constant dense<0xFF800000> : vector<2x8xf32>
    %72 = vector.multi_reduction <maximumf>, %71, %cst_27 [2] : vector<2x8x8xf32> to vector<2x8xf32>
    %73 = vector.shape_cast %72 : vector<2x8xf32> to vector<2x8x1xf32>
    %74 = vector.broadcast %73 : vector<2x8x1xf32> to vector<2x8x8xf32>
    %75 = arith.subf %71, %74 : vector<2x8x8xf32>
    %76 = math.exp %75 : vector<2x8x8xf32>
    %cst_28 = arith.constant dense<0.000000e+00> : vector<2x8xf32>
    %77 = vector.multi_reduction <add>, %76, %cst_28 [2] : vector<2x8x8xf32> to vector<2x8xf32>
    %78 = vector.shape_cast %77 : vector<2x8xf32> to vector<2x8x1xf32>
    %79 = vector.broadcast %78 : vector<2x8x1xf32> to vector<2x8x8xf32>
    %80 = arith.divf %76, %79 : vector<2x8x8xf32>
    %81 = arith.truncf %80 : vector<2x8x8xf32> to vector<2x8x8xbf16>
    %cst_29 = arith.constant dense<0.000000e+00> : vector<2x8x32xf32>
    %82 = tpu.matmul %81, %68, %cst_29 {dimension_numbers = #tpu.dot_dimension_numbers<[2], [1], [1], [2], [0, 0, 0, 1, 1, 2], [0], [0]>} : vector<2x8x8xbf16>, vector<2x8x32xbf16>, vector<2x8x32xf32> -> vector<2x8x32xf32>
    %c0_30 = arith.constant 0 : index
    %c0_31 = arith.constant 0 : index
    %c64 = arith.constant 64 : index
    %83 = vector.load %arg23[%c0_30, %c0_31, %c64] : memref<2x8x128xf32, #tpu.memory_space<vmem>>, vector<2x8x32xf32>
    tpu.vector_store %arg23[%c0_30, %c0_31, %c64], %82 {strides = array<i32>} : memref<2x8x128xf32, #tpu.memory_space<vmem>>, vector<2x8x32xf32>,
    %84 = vector.extract_strided_slice %18 {offsets = [0, 0, 96], sizes = [2, 8, 32], strides = [1, 1, 1]} : vector<2x8x128xf32> to vector<2x8x32xf32>
    %85 = arith.truncf %84 : vector<2x8x32xf32> to vector<2x8x32xbf16>
    %86 = vector.extract_strided_slice %19 {offsets = [0, 0, 96], sizes = [2, 8, 32], strides = [1, 1, 1]} : vector<2x8x128xf32> to vector<2x8x32xf32>
    %87 = arith.truncf %86 : vector<2x8x32xf32> to vector<2x8x32xbf16>
    %88 = vector.extract_strided_slice %20 {offsets = [0, 0, 96], sizes = [2, 8, 32], strides = [1, 1, 1]} : vector<2x8x128xf32> to vector<2x8x32xf32>
    %89 = arith.truncf %88 : vector<2x8x32xf32> to vector<2x8x32xbf16>
    %cst_32 = arith.constant dense<0.000000e+00> : vector<2x8x8xf32>
    %90 = tpu.matmul %85, %87, %cst_32 {dimension_numbers = #tpu.dot_dimension_numbers<[2], [2], [1], [1], [0, 0, 0, 1, 1, 1], [0], [0]>} : vector<2x8x32xbf16>, vector<2x8x32xbf16>, vector<2x8x8xf32> -> vector<2x8x8xf32>
    %91 = vector.broadcast %4 : vector<2x1x8xf32> to vector<2x8x8xf32>
    %92 = arith.addf %90, %91 : vector<2x8x8xf32>
    %cst_33 = arith.constant dense<0xFF800000> : vector<2x8xf32>
    %93 = vector.multi_reduction <maximumf>, %92, %cst_33 [2] : vector<2x8x8xf32> to vector<2x8xf32>
    %94 = vector.shape_cast %93 : vector<2x8xf32> to vector<2x8x1xf32>
    %95 = vector.broadcast %94 : vector<2x8x1xf32> to vector<2x8x8xf32>
    %96 = arith.subf %92, %95 : vector<2x8x8xf32>
    %97 = math.exp %96 : vector<2x8x8xf32>
    %cst_34 = arith.constant dense<0.000000e+00> : vector<2x8xf32>
    %98 = vector.multi_reduction <add>, %97, %cst_34 [2] : vector<2x8x8xf32> to vector<2x8xf32>
    %99 = vector.shape_cast %98 : vector<2x8xf32> to vector<2x8x1xf32>
    %100 = vector.broadcast %99 : vector<2x8x1xf32> to vector<2x8x8xf32>
    %101 = arith.divf %97, %100 : vector<2x8x8xf32>
    %102 = arith.truncf %101 : vector<2x8x8xf32> to vector<2x8x8xbf16>
    %cst_35 = arith.constant dense<0.000000e+00> : vector<2x8x32xf32>
    %103 = tpu.matmul %102, %89, %cst_35 {dimension_numbers = #tpu.dot_dimension_numbers<[2], [1], [1], [2], [0, 0, 0, 1, 1, 2], [0], [0]>} : vector<2x8x8xbf16>, vector<2x8x32xbf16>, vector<2x8x32xf32> -> vector<2x8x32xf32>
    %c0_36 = arith.constant 0 : index
    %c0_37 = arith.constant 0 : index
    %c96 = arith.constant 96 : index
    %104 = vector.load %arg23[%c0_36, %c0_37, %c96] : memref<2x8x128xf32, #tpu.memory_space<vmem>>, vector<2x8x32xf32>
    tpu.vector_store %arg23[%c0_36, %c0_37, %c96], %103 {strides = array<i32>} : memref<2x8x128xf32, #tpu.memory_space<vmem>>, vector<2x8x32xf32>,
    %c0_38 = arith.constant 0 : index
    %c0_39 = arith.constant 0 : index
    %c0_40 = arith.constant 0 : index
    %105 = vector.load %arg23[%c0_38, %c0_39, %c0_40] : memref<2x8x128xf32, #tpu.memory_space<vmem>>, vector<2x8x128xf32>
    %106 = vector.shape_cast %105 : vector<2x8x128xf32> to vector<16x128xf32>
    %107 = arith.truncf %106 : vector<16x128xf32> to vector<16x128xbf16>
    %c0_41 = arith.constant 0 : index
    %c0_42 = arith.constant 0 : index
    %c0_43 = arith.constant 0 : index
    %108 = vector.load %arg9[%c0_41, %c0_42, %c0_43] : memref<1x128x128xbf16, #tpu.memory_space<vmem>>, vector<1x128x128xbf16>
    %109 = vector.shape_cast %108 : vector<1x128x128xbf16> to vector<128x128xbf16>
    %cst_44 = arith.constant dense<0.000000e+00> : vector<16x128xf32>
    %110 = tpu.matmul %107, %109, %cst_44 {dimension_numbers = #tpu.dot_dimension_numbers<[1], [0], [0], [1], [0, 0, 1, 1], [], []>} : vector<16x128xbf16>, vector<128x128xbf16>, vector<16x128xf32> -> vector<16x128xf32>
    %c0_45 = arith.constant 0 : index
    %c0_46 = arith.constant 0 : index
    %c0_47 = arith.constant 0 : index
    %111 = vector.load %arg10[%c0_45, %c0_46, %c0_47] : memref<1x1x128xf32, #tpu.memory_space<vmem>>, vector<1x1x128xf32>
    %112 = vector.shape_cast %111 : vector<1x1x128xf32> to vector<1x128xf32>
    %113 = vector.broadcast %112 : vector<1x128xf32> to vector<16x128xf32>
    %114 = arith.addf %110, %113 : vector<16x128xf32>
    %115 = arith.addf %8, %114 : vector<16x128xf32>
    %c0_48 = arith.constant 0 : index
    %c0_49 = arith.constant 0 : index
    %c0_50 = arith.constant 0 : index
    %116 = vector.load %arg15[%c0_48, %c0_49, %c0_50] : memref<1x1x128xf32, #tpu.memory_space<vmem>>, vector<1x1x128xf32>
    %117 = vector.shape_cast %116 : vector<1x1x128xf32> to vector<1x128xf32>
    %c0_51 = arith.constant 0 : index
    %c0_52 = arith.constant 0 : index
    %c0_53 = arith.constant 0 : index
    %118 = vector.load %arg16[%c0_51, %c0_52, %c0_53] : memref<1x1x128xf32, #tpu.memory_space<vmem>>, vector<1x1x128xf32>
    %119 = vector.shape_cast %118 : vector<1x1x128xf32> to vector<1x128xf32>
    %cst_54 = arith.constant dense<0.000000e+00> : vector<16xf32>
    %120 = vector.multi_reduction <add>, %115, %cst_54 [1] : vector<16x128xf32> to vector<16xf32>
    %121 = vector.shape_cast %120 : vector<16xf32> to vector<16x1xf32>
    %cst_55 = arith.constant 1.280000e+02 : f32
    %122 = vector.broadcast %cst_55 : f32 to vector<16x1xf32>
    %123 = arith.divf %121, %122 : vector<16x1xf32>
    %124 = vector.broadcast %123 : vector<16x1xf32> to vector<16x128xf32>
    %125 = arith.subf %115, %124 : vector<16x128xf32>
    %126 = arith.mulf %125, %125 : vector<16x128xf32>
    %cst_56 = arith.constant dense<0.000000e+00> : vector<16xf32>
    %127 = vector.multi_reduction <add>, %126, %cst_56 [1] : vector<16x128xf32> to vector<16xf32>
    %128 = vector.shape_cast %127 : vector<16xf32> to vector<16x1xf32>
    %cst_57 = arith.constant 1.280000e+02 : f32
    %129 = vector.broadcast %cst_57 : f32 to vector<16x1xf32>
    %130 = arith.divf %128, %129 : vector<16x1xf32>
    %cst_58 = arith.constant 9.99999974E-6 : f32
    %131 = vector.broadcast %cst_58 : f32 to vector<16x1xf32>
    %132 = arith.addf %130, %131 : vector<16x1xf32>
    %133 = math.rsqrt %132 : vector<16x1xf32>
    %134 = vector.broadcast %133 : vector<16x1xf32> to vector<16x128xf32>
    %135 = arith.mulf %125, %134 : vector<16x128xf32>
    %136 = vector.broadcast %117 : vector<1x128xf32> to vector<16x128xf32>
    %137 = arith.mulf %135, %136 : vector<16x128xf32>
    %138 = vector.broadcast %119 : vector<1x128xf32> to vector<16x128xf32>
    %139 = arith.addf %137, %138 : vector<16x128xf32>
    %140 = arith.truncf %139 : vector<16x128xf32> to vector<16x128xbf16>
    %c0_59 = arith.constant 0 : index
    %c0_60 = arith.constant 0 : index
    %c0_61 = arith.constant 0 : index
    %141 = vector.load %arg11[%c0_59, %c0_60, %c0_61] : memref<1x128x2048xbf16, #tpu.memory_space<vmem>>, vector<1x128x2048xbf16>
    %142 = vector.shape_cast %141 : vector<1x128x2048xbf16> to vector<128x2048xbf16>
    %cst_62 = arith.constant dense<0.000000e+00> : vector<16x2048xf32>
    %143 = tpu.matmul %140, %142, %cst_62 {dimension_numbers = #tpu.dot_dimension_numbers<[1], [0], [0], [1], [0, 0, 1, 1], [], []>} : vector<16x128xbf16>, vector<128x2048xbf16>, vector<16x2048xf32> -> vector<16x2048xf32>
    %c0_63 = arith.constant 0 : index
    %c0_64 = arith.constant 0 : index
    %c0_65 = arith.constant 0 : index
    %144 = vector.load %arg12[%c0_63, %c0_64, %c0_65] : memref<1x1x2048xf32, #tpu.memory_space<vmem>>, vector<1x1x2048xf32>
    %145 = vector.shape_cast %144 : vector<1x1x2048xf32> to vector<1x2048xf32>
    %146 = vector.broadcast %145 : vector<1x2048xf32> to vector<16x2048xf32>
    %147 = arith.addf %143, %146 : vector<16x2048xf32>
    %cst_66 = arith.constant 0.000000e+00 : f32
    %148 = vector.broadcast %cst_66 : f32 to vector<16x2048xf32>
    %149 = arith.maximumf %147, %148 : vector<16x2048xf32>
    %150 = arith.truncf %149 : vector<16x2048xf32> to vector<16x2048xbf16>
    %c0_67 = arith.constant 0 : index
    %c0_68 = arith.constant 0 : index
    %c0_69 = arith.constant 0 : index
    %151 = vector.load %arg13[%c0_67, %c0_68, %c0_69] : memref<1x2048x128xbf16, #tpu.memory_space<vmem>>, vector<1x2048x128xbf16>
    %152 = vector.shape_cast %151 : vector<1x2048x128xbf16> to vector<2048x128xbf16>
    %cst_70 = arith.constant dense<0.000000e+00> : vector<16x128xf32>
    %153 = tpu.matmul %150, %152, %cst_70 {dimension_numbers = #tpu.dot_dimension_numbers<[1], [0], [0], [1], [0, 0, 1, 1], [], []>} : vector<16x2048xbf16>, vector<2048x128xbf16>, vector<16x128xf32> -> vector<16x128xf32>
    %c0_71 = arith.constant 0 : index
    %c0_72 = arith.constant 0 : index
    %c0_73 = arith.constant 0 : index
    %154 = vector.load %arg14[%c0_71, %c0_72, %c0_73] : memref<1x1x128xf32, #tpu.memory_space<vmem>>, vector<1x1x128xf32>
    %155 = vector.shape_cast %154 : vector<1x1x128xf32> to vector<1x128xf32>
    %156 = vector.broadcast %155 : vector<1x128xf32> to vector<16x128xf32>
    %157 = arith.addf %153, %156 : vector<16x128xf32>
    %158 = arith.addf %139, %157 : vector<16x128xf32>
    %c0_74 = arith.constant 0 : index
    %c0_75 = arith.constant 0 : index
    %c0_76 = arith.constant 0 : index
    %159 = vector.load %arg17[%c0_74, %c0_75, %c0_76] : memref<1x1x128xf32, #tpu.memory_space<vmem>>, vector<1x1x128xf32>
    %160 = vector.shape_cast %159 : vector<1x1x128xf32> to vector<1x128xf32>
    %c0_77 = arith.constant 0 : index
    %c0_78 = arith.constant 0 : index
    %c0_79 = arith.constant 0 : index
    %161 = vector.load %arg18[%c0_77, %c0_78, %c0_79] : memref<1x1x128xf32, #tpu.memory_space<vmem>>, vector<1x1x128xf32>
    %162 = vector.shape_cast %161 : vector<1x1x128xf32> to vector<1x128xf32>
    %cst_80 = arith.constant dense<0.000000e+00> : vector<16xf32>
    %163 = vector.multi_reduction <add>, %158, %cst_80 [1] : vector<16x128xf32> to vector<16xf32>
    %164 = vector.shape_cast %163 : vector<16xf32> to vector<16x1xf32>
    %cst_81 = arith.constant 1.280000e+02 : f32
    %165 = vector.broadcast %cst_81 : f32 to vector<16x1xf32>
    %166 = arith.divf %164, %165 : vector<16x1xf32>
    %167 = vector.broadcast %166 : vector<16x1xf32> to vector<16x128xf32>
    %168 = arith.subf %158, %167 : vector<16x128xf32>
    %169 = arith.mulf %168, %168 : vector<16x128xf32>
    %cst_82 = arith.constant dense<0.000000e+00> : vector<16xf32>
    %170 = vector.multi_reduction <add>, %169, %cst_82 [1] : vector<16x128xf32> to vector<16xf32>
    %171 = vector.shape_cast %170 : vector<16xf32> to vector<16x1xf32>
    %cst_83 = arith.constant 1.280000e+02 : f32
    %172 = vector.broadcast %cst_83 : f32 to vector<16x1xf32>
    %173 = arith.divf %171, %172 : vector<16x1xf32>
    %cst_84 = arith.constant 9.99999974E-6 : f32
    %174 = vector.broadcast %cst_84 : f32 to vector<16x1xf32>
    %175 = arith.addf %173, %174 : vector<16x1xf32>
    %176 = math.rsqrt %175 : vector<16x1xf32>
    %177 = vector.broadcast %176 : vector<16x1xf32> to vector<16x128xf32>
    %178 = arith.mulf %168, %177 : vector<16x128xf32>
    %179 = vector.broadcast %160 : vector<1x128xf32> to vector<16x128xf32>
    %180 = arith.mulf %178, %179 : vector<16x128xf32>
    %181 = vector.broadcast %162 : vector<1x128xf32> to vector<16x128xf32>
    %182 = arith.addf %180, %181 : vector<16x128xf32>
    %c0_85 = arith.constant 0 : index
    %c0_86 = arith.constant 0 : index
    %183 = vector.load %arg22[%c0_85, %c0_86] : memref<16x128xf32, #tpu.memory_space<vmem>>, vector<16x128xf32>
    tpu.vector_store %arg22[%c0_85, %c0_86], %182 {strides = array<i32>} : memref<16x128xf32, #tpu.memory_space<vmem>>, vector<16x128xf32>,
    %c3_i32 = arith.constant 3 : i32
    %184 = arith.cmpi eq, %arg1, %c3_i32 : i32
    %185 = arith.extui %184 : i1 to i32
    %c0_i32_87 = arith.constant 0 : i32
    %186 = arith.cmpi ne, %185, %c0_i32_87 : i32
    scf.if %186 {
      %187 = vector.shape_cast %182 : vector<16x128xf32> to vector<2x8x128xf32>
      %cst_88 = arith.constant dense<0.000000e+00> : vector<2x1x128xf32>
      %188 = tpu.matmul %0, %187, %cst_88 {dimension_numbers = #tpu.dot_dimension_numbers<[2], [1], [1], [2], [0, 0, 0, 1, 1, 2], [0], [0]>} : vector<2x1x8xf32>, vector<2x8x128xf32>, vector<2x1x128xf32> -> vector<2x1x128xf32>
      %cst_89 = arith.constant dense<0.000000e+00> : vector<2x1xf32>
      %189 = vector.multi_reduction <add>, %0, %cst_89 [2] : vector<2x1x8xf32> to vector<2x1xf32>
      %190 = vector.shape_cast %189 : vector<2x1xf32> to vector<2x1x1xf32>
      %cst_90 = arith.constant 1.000000e+00 : f32
      %191 = vector.broadcast %cst_90 : f32 to vector<2x1x1xf32>
      %192 = arith.maximumf %190, %191 : vector<2x1x1xf32>
      %193 = vector.broadcast %192 : vector<2x1x1xf32> to vector<2x1x128xf32>
      %194 = arith.divf %188, %193 : vector<2x1x128xf32>
      %195 = vector.shape_cast %194 : vector<2x1x128xf32> to vector<2x128xf32>
      %c0_91 = arith.constant 0 : index
      %c0_92 = arith.constant 0 : index
      %196 = vector.load %arg19[%c0_91, %c0_92] : memref<128x11xf32, #tpu.memory_space<vmem>>, vector<128x11xf32>
      %cst_93 = arith.constant dense<0.000000e+00> : vector<2x11xf32>
      %197 = tpu.matmul %195, %196, %cst_93 {dimension_numbers = #tpu.dot_dimension_numbers<[1], [0], [0], [1], [0, 0, 1, 1], [], []>} : vector<2x128xf32>, vector<128x11xf32>, vector<2x11xf32> -> vector<2x11xf32>
      %c0_94 = arith.constant 0 : index
      %c0_95 = arith.constant 0 : index
      %198 = vector.load %arg20[%c0_94, %c0_95] : memref<1x11xf32, #tpu.memory_space<vmem>>, vector<1x11xf32>
      %199 = vector.broadcast %198 : vector<1x11xf32> to vector<2x11xf32>
      %200 = arith.addf %197, %199 : vector<2x11xf32>
      %201 = vector.shape_cast %200 : vector<2x11xf32> to vector<2x1x11xf32>
      %c0_96 = arith.constant 0 : index
      %c0_97 = arith.constant 0 : index
      %c0_98 = arith.constant 0 : index
      %202 = vector.load %arg21[%c0_96, %c0_97, %c0_98] : memref<2x1x11xf32, #tpu.memory_space<vmem>>, vector<2x1x11xf32>
      tpu.vector_store %arg21[%c0_96, %c0_97, %c0_98], %201 {strides = array<i32>} : memref<2x1x11xf32, #tpu.memory_space<vmem>>, vector<2x1x11xf32>,
    } else {
    }
    return
  }
  func.func @transform_0(%arg0: i32, %arg1: i32) -> (i32, i32, i32) {
    %c0_i32 = arith.constant 0 : i32
    %c0_i32_0 = arith.constant 0 : i32
    %c0_i32_1 = arith.constant 0 : i32
    return %arg0, %c0_i32, %c0_i32_0 : i32, i32, i32
  }
  func.func @transform_1(%arg0: i32, %arg1: i32) -> (i32, i32, i32) {
    %c0_i32 = arith.constant 0 : i32
    %c0_i32_0 = arith.constant 0 : i32
    %c0_i32_1 = arith.constant 0 : i32
    return %arg0, %c0_i32, %c0_i32_0 : i32, i32, i32
  }
  func.func @transform_2(%arg0: i32, %arg1: i32) -> (i32, i32, i32) {
    %c0_i32 = arith.constant 0 : i32
    %c0_i32_0 = arith.constant 0 : i32
    %c0_i32_1 = arith.constant 0 : i32
    %c0_i32_2 = arith.constant 0 : i32
    return %c0_i32, %c0_i32_0, %c0_i32_1 : i32, i32, i32
  }
  func.func @transform_3(%arg0: i32, %arg1: i32) -> (i32, i32) {
    %c0_i32 = arith.constant 0 : i32
    %c0_i32_0 = arith.constant 0 : i32
    %c0_i32_1 = arith.constant 0 : i32
    return %c0_i32, %c0_i32_0 : i32, i32
  }
  func.func @transform_4(%arg0: i32, %arg1: i32) -> (i32, i32) {
    %c0_i32 = arith.constant 0 : i32
    %c0_i32_0 = arith.constant 0 : i32
    %c0_i32_1 = arith.constant 0 : i32
    return %c0_i32, %c0_i32_0 : i32, i32
  }
  func.func @transform_5(%arg0: i32, %arg1: i32) -> (i32, i32, i32) {
    %c0_i32 = arith.constant 0 : i32
    %c0_i32_0 = arith.constant 0 : i32
    %c0_i32_1 = arith.constant 0 : i32
    return %arg1, %c0_i32, %c0_i32_0 : i32, i32, i32
  }
  func.func @transform_6(%arg0: i32, %arg1: i32) -> (i32, i32, i32) {
    %c0_i32 = arith.constant 0 : i32
    %c0_i32_0 = arith.constant 0 : i32
    %c0_i32_1 = arith.constant 0 : i32
    return %arg1, %c0_i32, %c0_i32_0 : i32, i32, i32
  }
  func.func @transform_7(%arg0: i32, %arg1: i32) -> (i32, i32, i32) {
    %c0_i32 = arith.constant 0 : i32
    %c0_i32_0 = arith.constant 0 : i32
    %c0_i32_1 = arith.constant 0 : i32
    return %arg1, %c0_i32, %c0_i32_0 : i32, i32, i32
  }
  func.func @transform_8(%arg0: i32, %arg1: i32) -> (i32, i32, i32) {
    %c0_i32 = arith.constant 0 : i32
    %c0_i32_0 = arith.constant 0 : i32
    %c0_i32_1 = arith.constant 0 : i32
    return %arg1, %c0_i32, %c0_i32_0 : i32, i32, i32
  }
  func.func @transform_9(%arg0: i32, %arg1: i32) -> (i32, i32, i32) {
    %c0_i32 = arith.constant 0 : i32
    %c0_i32_0 = arith.constant 0 : i32
    %c0_i32_1 = arith.constant 0 : i32
    return %arg1, %c0_i32, %c0_i32_0 : i32, i32, i32
  }
  func.func @transform_10(%arg0: i32, %arg1: i32) -> (i32, i32, i32) {
    %c0_i32 = arith.constant 0 : i32
    %c0_i32_0 = arith.constant 0 : i32
    %c0_i32_1 = arith.constant 0 : i32
    return %arg1, %c0_i32, %c0_i32_0 : i32, i32, i32
  }
  func.func @transform_11(%arg0: i32, %arg1: i32) -> (i32, i32, i32) {
    %c0_i32 = arith.constant 0 : i32
    %c0_i32_0 = arith.constant 0 : i32
    %c0_i32_1 = arith.constant 0 : i32
    return %arg1, %c0_i32, %c0_i32_0 : i32, i32, i32
  }
  func.func @transform_12(%arg0: i32, %arg1: i32) -> (i32, i32, i32) {
    %c0_i32 = arith.constant 0 : i32
    %c0_i32_0 = arith.constant 0 : i32
    %c0_i32_1 = arith.constant 0 : i32
    return %arg1, %c0_i32, %c0_i32_0 : i32, i32, i32
  }
  func.func @transform_13(%arg0: i32, %arg1: i32) -> (i32, i32, i32) {
    %c0_i32 = arith.constant 0 : i32
    %c0_i32_0 = arith.constant 0 : i32
    %c0_i32_1 = arith.constant 0 : i32
    return %arg1, %c0_i32, %c0_i32_0 : i32, i32, i32
  }
  func.func @transform_14(%arg0: i32, %arg1: i32) -> (i32, i32, i32) {
    %c0_i32 = arith.constant 0 : i32
    %c0_i32_0 = arith.constant 0 : i32
    %c0_i32_1 = arith.constant 0 : i32
    return %arg1, %c0_i32, %c0_i32_0 : i32, i32, i32
  }
  func.func @transform_15(%arg0: i32, %arg1: i32) -> (i32, i32, i32) {
    %c0_i32 = arith.constant 0 : i32
    %c0_i32_0 = arith.constant 0 : i32
    %c0_i32_1 = arith.constant 0 : i32
    return %arg1, %c0_i32, %c0_i32_0 : i32, i32, i32
  }
  func.func @transform_16(%arg0: i32, %arg1: i32) -> (i32, i32, i32) {
    %c0_i32 = arith.constant 0 : i32
    %c0_i32_0 = arith.constant 0 : i32
    %c0_i32_1 = arith.constant 0 : i32
    return %arg1, %c0_i32, %c0_i32_0 : i32, i32, i32
  }
  func.func @transform_17(%arg0: i32, %arg1: i32) -> (i32, i32) {
    %c0_i32 = arith.constant 0 : i32
    %c0_i32_0 = arith.constant 0 : i32
    %c0_i32_1 = arith.constant 0 : i32
    return %c0_i32, %c0_i32_0 : i32, i32
  }
  func.func @transform_18(%arg0: i32, %arg1: i32) -> (i32, i32) {
    %c0_i32 = arith.constant 0 : i32
    %c0_i32_0 = arith.constant 0 : i32
    %c0_i32_1 = arith.constant 0 : i32
    return %c0_i32, %c0_i32_0 : i32, i32
  }
  func.func @transform_19(%arg0: i32, %arg1: i32) -> (i32, i32, i32) {
    %c0_i32 = arith.constant 0 : i32
    %c0_i32_0 = arith.constant 0 : i32
    %c0_i32_1 = arith.constant 0 : i32
    return %arg0, %c0_i32, %c0_i32_0 : i32, i32, i32
  }
}

</mosaic_0001>

<bundles_post_ra>
// kernel: sketch_transformer_forward.1
= control target key start
LH: loop header
LB: loop body
LE: loop exit
PB: predicated region body
PF: predicated region fallthrough
CT: control target
= control target key end

     0   :  { %s9061_s0 = inlined_call_operand.vmem [shape: f32[2,8,3], index: 0, kind: input, shape index: {}]   ;;  %s9062_s1 = inlined_call_operand.hbm [shape: f32[2,1,8], index: 1, kind: input, shape index: {}]   ;;  %s9063_s2 = inlined_call_operand.vmem [shape: f32[1,8,128], index: 2, kind: input, shape index: {}]   ;;  %s9064_s3 = inlined_call_operand.hbm [shape: f32[3,128], index: 3, kind: input, shape index: {}]   ;;  %s9065_s4 = inlined_call_operand.hbm [shape: f32[1,128], index: 4, kind: input, shape index: {}]   ;;  %s9066_s5 = inlined_call_operand.hbm [shape: bf16[4,128,384], index: 5, kind: input, shape index: {}]   ;;  %s9067_s6 = inlined_call_operand.hbm [shape: f32[4,1,384], index: 6, kind: input, shape index: {}]   ;;  %s9068_s7 = inlined_call_operand.hbm [shape: bf16[4,128,128], index: 7, kind: input, shape index: {}]   ;;  %s9069_s8 = inlined_call_operand.hbm [shape: f32[4,1,128], index: 8, kind: input, shape index: {}]   ;;  %s9070_s9 = inlined_call_operand.hbm [shape: bf16[4,128,2048], index: 9, kind: input, shape index: {}]   ;;  %s9071_s10 = inlined_call_operand.hbm [shape: f32[4,1,2048], index: 10, kind: input, shape index: {}]   ;;  %s9072_s11 = inlined_call_operand.hbm [shape: bf16[4,2048,128], index: 11, kind: input, shape index: {}]   ;;  %s9073_s12 = inlined_call_operand.hbm [shape: f32[4,1,128], index: 12, kind: input, shape index: {}]   ;;  %s9074_s13 = inlined_call_operand.hbm [shape: f32[4,1,128], index: 13, kind: input, shape index: {}]   ;;  %s9075_s14 = inlined_call_operand.hbm [shape: f32[4,1,128], index: 14, kind: input, shape index: {}]   ;;  %s9076_s15 = inlined_call_operand.hbm [shape: f32[4,1,128], index: 15, kind: input, shape index: {}]   ;;  %s9077_s16 = inlined_call_operand.hbm [shape: f32[4,1,128], index: 16, kind: input, shape index: {}]   ;;  %s9078_s17 = inlined_call_operand.vmem [shape: f32[128,11], index: 17, kind: input, shape index: {}]   ;;  %s9079_s18 = inlined_call_operand.hbm [shape: f32[1,11], index: 18, kind: input, shape index: {}]   ;;  %s9080_s19 = inlined_call_operand.hbm [shape: f32[2,1,11], index: 19, kind: output, shape index: {}]  }
   0x1   :  { %9118 = sst [smem:[#allocation50_spill]] %s9061_s0 }
   0x2   :  { %9119 = sst [smem:[#allocation51_spill]] %s9062_s1 }
   0x3   :  { %9120 = sst [smem:[#allocation52_spill]] %s9063_s2 }
   0x4   :  { %9121 = sst [smem:[#allocation53_spill]] %s9064_s3 }
   0x5   :  { %9122 = sst [smem:[#allocation54_spill]] %s9066_s5 }
   0x6   :  { %9123 = sst [smem:[#allocation55_spill]] %s9068_s7 }
   0x7   :  { %9124 = sst [smem:[#allocation56_spill]] %s9070_s9 }
   0x8   :  { %9125 = sst [smem:[#allocation57_spill]] %s9072_s11 }
   0x9   :  { %9126 = sst [smem:[#allocation58_spill]] %s9073_s12 }
   0xa   :  { %9127 = sst [smem:[#allocation59_spill]] %s9074_s13 }
   0xb   :  { %9128 = sst [smem:[#allocation60_spill]] %s9075_s14 }
   0xc   :  { %9129 = sst [smem:[#allocation61_spill]] %s9077_s16 }
   0xd   :  { %9130 = sst [smem:[#allocation62_spill]] %s9078_s17 }
   0xe   :  { %9131 = sst [smem:[#allocation63_spill]] %s9080_s19 }
   0xf   :  { %24 = vsyncpa [#allocation5], 0 }
  0x10   :  { %25 = vsyncpa [#allocation8], 0 }
  0x11   :  { %26 = vsyncpa [#allocation11], 0 }
  0x12   :  { %28 = vsyncpa [#allocation11 + $0x1], 0 }
  0x13   :  { %29 = vsyncpa [#allocation14], 0 }
  0x14   :  { %31 = vsyncpa [#allocation14 + $0x1], 0 }
  0x15   :  { %32 = vsyncpa [#allocation17], 0 }
  0x16   :  { %34 = vsyncpa [#allocation17 + $0x1], 0 }
  0x17   :  { %35 = vsyncpa [#allocation20], 0 }
  0x18   :  { %37 = vsyncpa [#allocation20 + $0x1], 0 }
  0x19   :  { %38 = vsyncpa [#allocation23], 0 }
  0x1a   :  { %40 = vsyncpa [#allocation23 + $0x1], 0 }
  0x1b   :  { %41 = vsyncpa [#allocation26], 0 }
  0x1c   :  { %43 = vsyncpa [#allocation26 + $0x1], 0 }
  0x1d   :  { %44 = vsyncpa [#allocation29], 0 }
  0x1e   :  { %45 = vsyncpa [#allocation6], 0  ;;  %s7749_s0 = smov 0   ;;  %s7751_s30 = smov 0  }
  0x1f   :  { %s7753_s20 = smov 0   ;;  %s7755_s21 = smov 0  }
  0x20   :  { %s7757_s1 = smov 0   ;;  %s7759_s22 = smov 0  }
  0x21 LB: > { %9132 = sst [smem:[#allocation41_spill]] %s7592_s30  ;;  %s7778_s2 = sadd.s32 4294967295, %s7608_s22   ;;  %s7608_s22 = sphi %s7759_s22, %s51_s22   ;;  %s7604_s1 = sphi %s7757_s1, %s9204_s1   ;;  %s7600_s21 = sphi %s7755_s21, %s9203_s21   ;;  %s7596_s20 = sphi %s7753_s20, %s9201_s20   ;;  %s7592_s30 = sphi %s7751_s30, %s9200_s30   ;;  %s7588_s0 = sphi %s7749_s0, %s9199_s0  }
  0x22   : > { %9133 = sst [smem:[#allocation42_spill]] %s7596_s20  ;;  %p192_p0 = scmp.ne.s32.totalorder %s7596_s20, %s7592_s30 }
  0x23   : > { %9134 = sst [smem:[#allocation43_spill]] %s7600_s21  ;;  %p193_p1 = scmp.eq.s32.totalorder %s7608_s22, 0 }
  0x24   : > { %9135 = sst [smem:[#allocation44_spill]] %s7608_s22  ;;  %p198_p2 = scmp.ne.s32.totalorder %s7592_s30, %s7588_s0 }
  0x25   : > { %9136 = sst [smem:[#allocation45_spill]] %s7778_s2  ;;  %p9093_p3 = scmp.eq.s32.totalorder %s7778_s2, 0 }
  0x26   : > { %p194_p4 = por %p193_p1, %p192_p0  ;;  %p5808_p5 = scmp.ge.s32.totalorder %s7608_s22, 1 }
  0x27   : > { %p7789_p6 = por %p9093_p3, %p198_p2  ;;  %p563_p7 = scmp.lt.s32.totalorder %s7608_s22, 5 }
  0x28   : > { %s7610_s3 = smov [#allocation7]   ;;  %p6724_p10 = scmp.lt.s32.totalorder %s7608_s22, 4 }
  0x29   : > { %s9137_s24 = scalar_select %p7789_p6, 1, 0 }
  0x2a   : > { %p7794_p8 = pnand %p5808_p5, %p563_p7  ;;  %s604_s26 = sshll.u32 %s7610_s3, 4  ;;  %s605_s26 = int_to_ptr.vmem [resolvable:$true] %s604_s26 }
  0x2b   : > { %9138 = sst [smem:[#allocation46_spill]] %s9137_s24  ;;  %s7802_s27 = sand.u32 1, %s7596_s20  }
  0x2c   : > { %s9139_s25 = scalar_select %p7794_p8, 1, 0 }
  0x2d   : > { %p6670_p9 = pneg %p7794_p8  ;;  %p7810_p12 = pnand %p6724_p10, %p194_p4 }
  0x2e   : > { %9140 = sst [smem:[#allocation47_spill]] %s9139_s25  ;;  %s7815_s0 = sand.u32 1, %s7608_s22  }
  0x2f   : > { %p7806_p11 = pnand %p6670_p9, %p9093_p3  ;;  %s9143_s19 = sld [smem:[#allocation53_spill]] }
  0x30   : > { %s9142_s29 = scalar_select %p7810_p12, 1, 0 }
  0x31   : > { %s9141_s28 = scalar_select %p7806_p11, 1, 0 }
  0x32   : > { %p7825_p0 = pneg %p7806_p11 }
  0x34   : > { %s9144_s30 = scalar_select %p7825_p0, 1, 0 }
  0x35   : > { %s7024_s17 = scalar_lea.hbm %s9143_s19, 64 }
  0x36   : > { %p7025_p13 = scmp.ne.s32.totalorder %s9143_s19, %s7024_s17  ;;  %p7031_p4 = scmp.lt.u32.totalorder %s7024_s17, %s9143_s19 }
  0x38   : > { %p7027_p1 = pnand %p7825_p0, %p7025_p13 }
  0x3a   : > { %p7028_p2 = pneg %p7027_p1 }
  0x3c   : > { %p7033_p5 = pnand %p7031_p4, %p7028_p2 }
  0x3e   : > { %7036 = shalt.err (!%p7033_p5)
}
  0x3f   : > { %s7037_s23 = scalar_lea.vmem %s605_s26, 64  ;;  %p7045_p3 = scmp.lt.s32.totalorder %s605_s26, %s605_s26 }
  0x40   : > { %p7038_p7 = scmp.ne.s32.totalorder %s605_s26, %s7037_s23  ;;  %p7046_p6 = scmp.lt.s32.totalorder %s7037_s23, %s7037_s23 }
  0x42   : > { %p7040_p9 = pnand %p7038_p7, %p7825_p0  ;;  %p7047_p8 = por %p7046_p6, %p7045_p3 }
  0x44   : > { %p7041_p10 = pneg %p7040_p9 }
  0x46   : > { %p7048_p12 = pnand %p7047_p8, %p7041_p10 }
  0x48   : > { %7051 = shalt.err (!%p7048_p12)
}
  0x49   : > { %6676 = dma.hbm_to_vmem [thread:$0]  (!%p7806_p11), %s9143_s19, 64, %s605_s26, [#allocation8]  }
  0x4a   : > { %s60_s17 = sadd.s32 1, %s7604_s1  ;;  %s6620_s22 = smul.u32 192, %s7802_s27 }
  0x4b   : > { %p61_p13 = scmp.ge.s32.totalorder %s60_s17, 4  ;;  %s6621_s2 = smul.u32 3072, %s7604_s1 }
  0x4c   : > { %s9146_s5 = sld [smem:[#allocation54_spill]]  ;;  %s644_s25 = scalar_lea.vmem [#allocation10], %s6620_s22 }
  0x4d   : > { %s9206_s17 = smov (%p61_p13, %s60_s17), 0  ;;  %s651_s26 = sshll.u32 %s644_s25, 4  ;;  %s7853_s26 = int_to_ptr.vmem [resolvable:$true] %s651_s26 }
  0x4e   : > { %9145 = sst [smem:[#allocation48_spill]] %s9206_s17  ;;  %s182_s24 = ssub.s32 %s7604_s1, %s9206_s17 }
  0x4f   : > { %p183_p3 = scmp.eq.s32.totalorder %s182_s24, 0  ;;  %s9147_s19 = sadd.s32 1, %s7596_s20 }
  0x50   : > { %s9108_s14 = scalar_lea.sflag [#allocation11], %s7815_s0  ;;  %p9149_p8 = scmp.ne.s32.totalorder %s9142_s29, 0 }
  0x51   : > { %s7858_s16 = scalar_select %p183_p3, %s7596_s20, %s9147_s19  }
  0x52   : > { %s7849_s21 = scalar_lea.hbm %s9146_s5, %s6621_s2  ;;  %p7865_p12 = pneg %p9149_p8 }
  0x53   : > { %9148 = sst [smem:[#allocation49_spill]] %s7858_s16  ;;  %s7052_s12 = scalar_lea.hbm %s7849_s21, 3072 }
  0x54   : > { %p7053_p6 = scmp.ne.s32.totalorder %s7849_s21, %s7052_s12  ;;  %s7057_s3 = scalar_lea.hbm %s9146_s5, 12288 }
  0x55   : > { %s9150_s2 = scalar_select %p7865_p12, 1, 0 }
  0x56   : > { %p7055_p1 = pnand %p7865_p12, %p7053_p6  ;;  %p7058_p4 = scmp.lt.u32.totalorder %s7849_s21, %s9146_s5 }
  0x57   : > { %p7059_p5 = scmp.lt.u32.totalorder %s7057_s3, %s7052_s12  ;;  %p7061_p9 = scmp.lt.u32.totalorder %s7052_s12, %s7849_s21 }
  0x58   : > { %p7056_p2 = pneg %p7055_p1 }
  0x59   : > { %p7060_p7 = por %p7059_p5, %p7058_p4 }
  0x5b   : > { %p7062_p10 = por %p7061_p9, %p7060_p7 }
  0x5d   : > { %p7063_p13 = pnand %p7062_p10, %p7056_p2 }
  0x5f   : > { %7066 = shalt.err (!%p7063_p13)
}
  0x60   : > { %s7067_s19 = scalar_lea.vmem %s7853_s26, 3072  ;;  %s7611_s22 = smov [#allocation10]  }
  0x61   : > { %p7068_p3 = scmp.ne.s32.totalorder %s7853_s26, %s7067_s19  ;;  %s7072_s25 = sshll.u32 %s7611_s22, 4  ;;  %s7073_s25 = int_to_ptr.vmem [resolvable:$false] %s7072_s25 }
  0x62   : > { %s7074_s23 = scalar_lea.vmem %s7073_s25, 6144  ;;  %p7075_p11 = scmp.lt.s32.totalorder %s7853_s26, %s7073_s25 }
  0x63   : > { %p7070_p6 = pnand %p7068_p3, %p7865_p12  ;;  %p7076_p0 = scmp.lt.s32.totalorder %s7074_s23, %s7067_s19 }
  0x65   : > { %p7071_p1 = pneg %p7070_p6  ;;  %p7077_p4 = por %p7076_p0, %p7075_p11 }
  0x67   : > { %p7078_p5 = pnand %p7077_p4, %p7071_p1 }
  0x69   : > { %7081 = shalt.err (!%p7078_p5)
}
  0x6a   : > { %s7612_s12 = smov 192   ;;  %s7613_s3 = smov 12  }
  0x6b   : > { %6686 = dma.hbm_to_vmem [thread:$0]  (!%p9149_p8), %s7849_s21, 3072, %s7853_s26, %s9108_s14, %s7612_s12, %s7612_s12, %s7613_s3  }
  0x6c   : > { %s5817_s24 = sshll.u32 %s7802_s27, 6  ;;  %s6164_s22 = sshll.u32 %s7604_s1, 10 }
  0x6d   : > { %s9151_s7 = sld [smem:[#allocation55_spill]]  ;;  %s684_s5 = scalar_lea.vmem [#allocation13], %s5817_s24 }
  0x6e   : > { %s691_s17 = sshll.u32 %s684_s5, 4  ;;  %s9109_s16 = scalar_lea.sflag [#allocation14], %s7815_s0  ;;  %s7897_s17 = int_to_ptr.vmem [resolvable:$true] %s691_s17 }
  0x73   : > { %s7895_s23 = scalar_lea.hbm %s9151_s7, %s6164_s22  ;;  %s7087_s12 = scalar_lea.hbm %s9151_s7, 4096 }
  0x74   : > { %s7082_s20 = scalar_lea.hbm %s7895_s23, 1024  ;;  %p7088_p7 = scmp.lt.u32.totalorder %s7895_s23, %s9151_s7 }
  0x75   : > { %p7083_p11 = scmp.ne.s32.totalorder %s7895_s23, %s7082_s20  ;;  %p7089_p9 = scmp.lt.u32.totalorder %s7087_s12, %s7082_s20 }
  0x76   : > { %p7091_p13 = scmp.lt.u32.totalorder %s7082_s20, %s7895_s23 }
  0x77   : > { %p7085_p0 = pnand %p7083_p11, %p7865_p12  ;;  %p7090_p10 = por %p7089_p9, %p7088_p7 }
  0x79   : > { %p7086_p2 = pneg %p7085_p0  ;;  %p7092_p3 = por %p7091_p13, %p7090_p10 }
  0x7b   : > { %p7093_p6 = pnand %p7092_p3, %p7086_p2 }
  0x7d   : > { %7096 = shalt.err (!%p7093_p6)
}
  0x7e   : > { %s7097_s5 = scalar_lea.vmem %s7897_s17, 1024  ;;  %s7614_s24 = smov [#allocation13]  }
  0x7f   : > { %p7098_p1 = scmp.ne.s32.totalorder %s7897_s17, %s7097_s5  ;;  %s7102_s25 = sshll.u32 %s7614_s24, 4  ;;  %s7103_s25 = int_to_ptr.vmem [resolvable:$false] %s7102_s25 }
  0x80   : > { %s7104_s19 = scalar_lea.vmem %s7103_s25, 2048  ;;  %p7105_p11 = scmp.lt.s32.totalorder %s7897_s17, %s7103_s25 }
  0x81   : > { %p7100_p4 = pnand %p7098_p1, %p7865_p12  ;;  %p7106_p0 = scmp.lt.s32.totalorder %s7104_s19, %s7097_s5 }
  0x83   : > { %p7101_p5 = pneg %p7100_p4  ;;  %p7107_p7 = por %p7106_p0, %p7105_p11 }
  0x85   : > { %p7108_p9 = pnand %p7107_p7, %p7101_p5 }
  0x87   : > { %7111 = shalt.err (!%p7108_p9)
}
  0x88   : > { %s7615_s20 = smov 64   ;;  %s9110_s21 = smov 4  }
  0x89   : > { %6692 = dma.hbm_to_vmem [thread:$0]  (!%p9149_p8), %s7895_s23, 1024, %s7897_s17, %s9109_s16, %s7615_s20, %s7615_s20, %s9110_s21  }
  0x8a   : > { %s5821_s26 = sshll.u32 %s7802_s27, 10  ;;  %s6165_s12 = sshll.u32 %s7604_s1, 14 }
  0x8b   : > { %s9152_s9 = sld [smem:[#allocation56_spill]]  ;;  %s722_s24 = scalar_lea.vmem [#allocation16], %s5821_s26 }
  0x8c   : > { %s729_s25 = sshll.u32 %s722_s24, 4  ;;  %s9115_s19 = scalar_lea.sflag [#allocation17], %s7815_s0  ;;  %s7937_s25 = int_to_ptr.vmem [resolvable:$true] %s729_s25 }
  0x91   : > { %s7933_s5 = scalar_lea.hbm %s9152_s9, %s6165_s12  ;;  %s7117_s3 = scalar_lea.hbm %s9152_s9, 65536 }
  0x92   : > { %s7112_s14 = scalar_lea.hbm %s7933_s5, 16384  ;;  %p7118_p3 = scmp.lt.u32.totalorder %s7933_s5, %s9152_s9 }
  0x93   : > { %p7113_p2 = scmp.ne.s32.totalorder %s7933_s5, %s7112_s14  ;;  %p7119_p6 = scmp.lt.u32.totalorder %s7117_s3, %s7112_s14 }
  0x94   : > { %p7121_p4 = scmp.lt.u32.totalorder %s7112_s14, %s7933_s5 }
  0x95   : > { %p7115_p10 = pnand %p7113_p2, %p7865_p12  ;;  %p7120_p1 = por %p7119_p6, %p7118_p3 }
  0x97   : > { %p7116_p13 = pneg %p7115_p10  ;;  %p7122_p5 = por %p7121_p4, %p7120_p1 }
  0x99   : > { %p7123_p11 = pnand %p7122_p5, %p7116_p13 }
  0x9b   : > { %7126 = shalt.err (!%p7123_p11)
}
  0x9c   : > { %s7127_s24 = scalar_lea.vmem %s7937_s25, 16384  ;;  %s7617_s17 = smov [#allocation16]  }
  0x9d   : > { %p7128_p0 = scmp.ne.s32.totalorder %s7937_s25, %s7127_s24  ;;  %s7132_s23 = sshll.u32 %s7617_s17, 4  ;;  %s7133_s23 = int_to_ptr.vmem [resolvable:$false] %s7132_s23 }
  0x9e   : > { %s7134_s16 = scalar_lea.vmem %s7133_s23, 32768  ;;  %p7135_p2 = scmp.lt.s32.totalorder %s7937_s25, %s7133_s23 }
  0x9f   : > { %p7130_p7 = pnand %p7128_p0, %p7865_p12  ;;  %p7136_p10 = scmp.lt.s32.totalorder %s7134_s16, %s7127_s24 }
  0xa1   : > { %p7131_p9 = pneg %p7130_p7  ;;  %p7137_p3 = por %p7136_p10, %p7135_p2 }
  0xa3   : > { %p7138_p6 = pnand %p7137_p3, %p7131_p9 }
  0xa5   : > { %7141 = shalt.err (!%p7138_p6)
}
  0xa6   : > { %s7618_s14 = smov 1024   ;;  %s9153_s11 = sld [smem:[#allocation57_spill]] }
  0xa7   : > { %6698 = dma.hbm_to_vmem [thread:$0]  (!%p9149_p8), %s7933_s5, 16384, %s7937_s25, %s9115_s19, %s7618_s14, %s7618_s14, %s7615_s20  }
  0xa8   : > { %s762_s17 = scalar_lea.vmem [#allocation19], %s5821_s26  ;;  %s7976_s16 = sshll.u32 %s7604_s1, 4 }
  0xa9   : > { %s769_s23 = sshll.u32 %s762_s17, 4  ;;  %s9113_s21 = scalar_lea.sflag [#allocation20], %s7815_s0  ;;  %s7973_s23 = int_to_ptr.vmem [resolvable:$true] %s769_s23 }
  0xac   : > { %s7969_s24 = scalar_lea.hbm %s9153_s11, %s6165_s12  ;;  %s7147_s25 = scalar_lea.hbm %s9153_s11, 65536 }
  0xad   : > { %s7142_s7 = scalar_lea.hbm %s7969_s24, 16384  ;;  %p7148_p5 = scmp.lt.u32.totalorder %s7969_s24, %s9153_s11 }
  0xae   : > { %p7143_p13 = scmp.ne.s32.totalorder %s7969_s24, %s7142_s7  ;;  %p7149_p11 = scmp.lt.u32.totalorder %s7147_s25, %s7142_s7 }
  0xaf   : > { %p7151_p7 = scmp.lt.u32.totalorder %s7142_s7, %s7969_s24 }
  0xb0   : > { %p7145_p1 = pnand %p7143_p13, %p7865_p12  ;;  %p7150_p0 = por %p7149_p11, %p7148_p5 }
  0xb2   : > { %p7146_p4 = pneg %p7145_p1  ;;  %p7152_p9 = por %p7151_p7, %p7150_p0 }
  0xb4   : > { %p7153_p2 = pnand %p7152_p9, %p7146_p4 }
  0xb6   : > { %7156 = shalt.err (!%p7153_p2)
}
  0xb7   : > { %s7157_s26 = scalar_lea.vmem %s7973_s23, 16384  ;;  %s7619_s22 = smov [#allocation19]  }
  0xb8   : > { %p7158_p10 = scmp.ne.s32.totalorder %s7973_s23, %s7157_s26  ;;  %s7162_s17 = sshll.u32 %s7619_s22, 4  ;;  %s7163_s17 = int_to_ptr.vmem [resolvable:$false] %s7162_s17 }
  0xb9   : > { %s7164_s5 = scalar_lea.vmem %s7163_s17, 32768  ;;  %p7165_p13 = scmp.lt.s32.totalorder %s7973_s23, %s7163_s17 }
  0xba   : > { %p7160_p3 = pnand %p7158_p10, %p7865_p12  ;;  %p7166_p1 = scmp.lt.s32.totalorder %s7164_s5, %s7157_s26 }
  0xbc   : > { %p7161_p6 = pneg %p7160_p3  ;;  %p7167_p5 = por %p7166_p1, %p7165_p13 }
  0xbe   : > { %p7168_p11 = pnand %p7167_p5, %p7161_p6 }
  0xc0   : > { %7171 = shalt.err (!%p7168_p11)
}
  0xc1   : > { %s9154_s7 = smov 4   ;;  %s9155_s13 = sld [smem:[#allocation59_spill]] }
  0xc2   : > { %6704 = dma.hbm_to_vmem [thread:$0]  (!%p9149_p8), %s7969_s24, 16384, %s7973_s23, %s9113_s21, %s7615_s20, %s7615_s20, %s9154_s7  }
  0xc3   : > { %s799_s3 = scalar_lea.vmem [#allocation22], %s7802_s27  ;;  %s9112_s22 = scalar_lea.sflag [#allocation23], %s7815_s0 }
  0xc4   : > { %s806_s26 = sshll.u32 %s799_s3, 4  ;;  %s807_s26 = int_to_ptr.vmem [resolvable:$true] %s806_s26 }
  0xc7   : > { %s8009_s14 = scalar_lea.hbm %s9155_s13, %s7976_s16  ;;  %s7177_s24 = scalar_lea.hbm %s9155_s13, 64 }
  0xc8   : > { %s7172_s17 = scalar_lea.hbm %s8009_s14, 16  ;;  %p7178_p9 = scmp.lt.u32.totalorder %s8009_s14, %s9155_s13 }
  0xc9   : > { %p7173_p4 = scmp.ne.s32.totalorder %s8009_s14, %s7172_s17  ;;  %p7179_p2 = scmp.lt.u32.totalorder %s7177_s24, %s7172_s17 }
  0xca   : > { %p7181_p3 = scmp.lt.u32.totalorder %s7172_s17, %s8009_s14 }
  0xcb   : > { %p7175_p0 = pnand %p7173_p4, %p7865_p12  ;;  %p7180_p10 = por %p7179_p2, %p7178_p9 }
  0xcd   : > { %p7176_p7 = pneg %p7175_p0  ;;  %p7182_p6 = por %p7181_p3, %p7180_p10 }
  0xcf   : > { %p7183_p13 = pnand %p7182_p6, %p7176_p7 }
  0xd1   : > { %7186 = shalt.err (!%p7183_p13)
}
  0xd2   : > { %s7187_s12 = scalar_lea.vmem %s807_s26, 16  ;;  %s7620_s25 = smov [#allocation22]  }
  0xd3   : > { %p7188_p1 = scmp.ne.s32.totalorder %s807_s26, %s7187_s12  ;;  %s7192_s3 = sshll.u32 %s7620_s25, 4  ;;  %s7193_s3 = int_to_ptr.vmem [resolvable:$false] %s7192_s3 }
  0xd4   : > { %s7194_s5 = scalar_lea.vmem %s7193_s3, 32  ;;  %p7195_p4 = scmp.lt.s32.totalorder %s807_s26, %s7193_s3 }
  0xd5   : > { %p7190_p5 = pnand %p7188_p1, %p7865_p12  ;;  %p7196_p0 = scmp.lt.s32.totalorder %s7194_s5, %s7187_s12 }
  0xd7   : > { %p7191_p11 = pneg %p7190_p5  ;;  %p7197_p8 = por %p7196_p0, %p7195_p4 }
  0xd9   : > { %p7198_p2 = pnand %p7197_p8, %p7191_p11 }
  0xdb   : > { %7201 = shalt.err (!%p7198_p2)
}
  0xdc   : > { %p9156_p9 = scmp.ne.s32.totalorder %s9142_s29, 0  ;;  %s8036_s24 = scalar_lea.hbm %s9076_s15, %s7976_s16 }
  0xdd   : > { %s833_s23 = scalar_lea.vmem [#allocation25], %s7802_s27  ;;  %s9114_s12 = scalar_lea.sflag [#allocation26], %s7815_s0 }
  0xde   : > { %6710 = dma.hbm_to_vmem [thread:$0]  (!%p9156_p9), %s8009_s14, 16, %s807_s26, %s9112_s22  }
  0xdf   : > { %s840_s7 = sshll.u32 %s833_s23, 4  ;;  %s7202_s25 = scalar_lea.hbm %s8036_s24, 16  ;;  %s841_s7 = int_to_ptr.vmem [resolvable:$true] %s840_s7 }
  0xe0   : > { %p7203_p8 = scmp.ne.s32.totalorder %s8036_s24, %s7202_s25  ;;  %s7207_s26 = scalar_lea.hbm %s9076_s15, 64 }
  0xe1   : > { %p7208_p3 = scmp.lt.u32.totalorder %s8036_s24, %s9076_s15  ;;  %p7209_p6 = scmp.lt.u32.totalorder %s7207_s26, %s7202_s25 }
  0xe2   : > { %p7205_p7 = pnand %p7203_p8, %p7865_p12  ;;  %p7211_p1 = scmp.lt.u32.totalorder %s7202_s25, %s8036_s24 }
  0xe3   : > { %p7210_p13 = por %p7209_p6, %p7208_p3 }
  0xe4   : > { %p7206_p10 = pneg %p7205_p7 }
  0xe5   : > { %p7212_p5 = por %p7211_p1, %p7210_p13 }
  0xe7   : > { %p7213_p11 = pnand %p7212_p5, %p7206_p10 }
  0xe9   : > { %7216 = shalt.err (!%p7213_p11)
}
  0xea   : > { %s7217_s20 = scalar_lea.vmem %s841_s7, 16  ;;  %s7621_s23 = smov [#allocation25]  }
  0xeb   : > { %p7218_p4 = scmp.ne.s32.totalorder %s841_s7, %s7217_s20  ;;  %s7222_s22 = sshll.u32 %s7621_s23, 4  ;;  %s7223_s22 = int_to_ptr.vmem [resolvable:$false] %s7222_s22 }
  0xec   : > { %s7224_s3 = scalar_lea.vmem %s7223_s22, 32  ;;  %p7225_p8 = scmp.lt.s32.totalorder %s841_s7, %s7223_s22 }
  0xed   : > { %p7220_p0 = pnand %p7218_p4, %p7865_p12  ;;  %p7226_p7 = scmp.lt.s32.totalorder %s7224_s3, %s7217_s20 }
  0xef   : > { %p7221_p2 = pneg %p7220_p0  ;;  %p7227_p9 = por %p7226_p7, %p7225_p8 }
  0xf1   : > { %p7228_p3 = pnand %p7227_p9, %p7221_p2 }
  0xf3   : > { %7231 = shalt.err (!%p7228_p3)
}
  0xf4   : > { %p9157_p6 = scmp.ne.s32.totalorder %s9142_s29, 0  ;;  %s7622_s25 = smov [#allocation4]  }
  0xf5   : > { %s587_s14 = sshll.u32 %s7622_s25, 4  ;;  %s9158_s17 = sld [smem:[#allocation51_spill]]  ;;  %s588_s14 = int_to_ptr.vmem [resolvable:$true] %s587_s14 }
  0xf6   : > { %6716 = dma.hbm_to_vmem [thread:$0]  (!%p9157_p6), %s8036_s24, 16, %s841_s7, %s9114_s12  }
  0xf7   : > { %p9159_p9 = scmp.ne.s32.totalorder %s9144_s30, 0 }
  0xfb   : > { %s7232_s23 = scalar_lea.hbm %s9158_s17, 32 }
  0xfc   : > { %p7233_p10 = scmp.ne.s32.totalorder %s9158_s17, %s7232_s23  ;;  %p7239_p5 = scmp.lt.u32.totalorder %s7232_s23, %s9158_s17 }
  0xfe   : > { %p7235_p13 = pnand %p7233_p10, %p9159_p9 }
 0x100   : > { %p7236_p1 = pneg %p7235_p13 }
 0x102   : > { %p7241_p11 = pnand %p7239_p5, %p7236_p1 }
 0x104   : > { %7244 = shalt.err (!%p7241_p11)
}
 0x105   : > { %s7245_s24 = scalar_lea.vmem %s588_s14, 32  ;;  %p7253_p8 = scmp.lt.s32.totalorder %s588_s14, %s588_s14 }
 0x106   : > { %p7246_p4 = scmp.ne.s32.totalorder %s588_s14, %s7245_s24  ;;  %p7254_p7 = scmp.lt.s32.totalorder %s7245_s24, %s7245_s24 }
 0x108   : > { %p7248_p0 = pnand %p7246_p4, %p9159_p9  ;;  %p7255_p3 = por %p7254_p7, %p7253_p8 }
 0x10a   : > { %p7249_p2 = pneg %p7248_p0 }
 0x10c   : > { %p7256_p6 = pnand %p7255_p3, %p7249_p2 }
 0x10e   : > { %7259 = shalt.err (!%p7256_p6)
}
 0x10f   : > { %s7623_s21 = smov 16   ;;  %s7624_s7 = smov 1  }
 0x110   : > { %p9160_p10 = scmp.ne.s32.totalorder %s9141_s28, 0  ;;  %s7625_s5 = smov [#allocation9]  }
 0x111   : > { %s615_s23 = sshll.u32 %s7625_s5, 4  ;;  %s7626_s22 = smov [#allocation28]   ;;  %s616_s23 = int_to_ptr.vmem [resolvable:$true] %s615_s23 }
 0x112   : > { %6673 = dma.hbm_to_vmem [thread:$0]  (!%p9160_p10), %s9158_s17, 32, %s588_s14, [#allocation5], %s7623_s21, %s7623_s21, %s7624_s7  }
 0x113   : > { %s629_s20 = sshll.u32 %s7626_s22, 4  ;;  %s7260_s24 = scalar_lea.hbm %s9065_s4, 16  ;;  %s630_s20 = int_to_ptr.vmem [resolvable:$true] %s629_s20 }
 0x114   : > { %p7261_p6 = scmp.ne.s32.totalorder %s9065_s4, %s7260_s24  ;;  %p7267_p5 = scmp.lt.u32.totalorder %s7260_s24, %s9065_s4 }
 0x116   : > { %p7263_p13 = pnand %p7261_p6, %p9159_p9 }
 0x118   : > { %p7264_p1 = pneg %p7263_p13 }
 0x11a   : > { %p7269_p11 = pnand %p7267_p5, %p7264_p1 }
 0x11c   : > { %7272 = shalt.err (!%p7269_p11)
}
 0x11d   : > { %s7273_s14 = scalar_lea.vmem %s616_s23, 16  ;;  %s7280_s12 = scalar_lea.vmem %s616_s23, 32 }
 0x11e   : > { %p7274_p4 = scmp.ne.s32.totalorder %s616_s23, %s7273_s14  ;;  %p7281_p8 = scmp.lt.s32.totalorder %s616_s23, %s616_s23 }
 0x11f   : > { %p7282_p7 = scmp.lt.s32.totalorder %s7280_s12, %s7273_s14 }
 0x120   : > { %p7276_p0 = pnand %p7274_p4, %p9159_p9 }
 0x121   : > { %p7283_p3 = por %p7282_p7, %p7281_p8 }
 0x122   : > { %p7277_p2 = pneg %p7276_p0 }
 0x124   : > { %p7284_p12 = pnand %p7283_p3, %p7277_p2 }
 0x126   : > { %7287 = shalt.err (!%p7284_p12)
}
 0x127   : > { %6679 = dma.hbm_to_vmem [thread:$0]  (!%p9160_p10), %s9065_s4, 16, %s616_s23, [#allocation8]  }
 0x128   : > { %s6622_s11 = smul.u32 3, %s7802_s27  ;;  %s7288_s7 = scalar_lea.hbm %s9079_s18, 16 }
 0x129   : > { %p7289_p6 = scmp.ne.s32.totalorder %s9079_s18, %s7288_s7  ;;  %p7295_p1 = scmp.lt.u32.totalorder %s7288_s7, %s9079_s18 }
 0x12b   : > { %p7291_p12 = pnand %p7289_p6, %p9159_p9 }
 0x12d   : > { %p7292_p13 = pneg %p7291_p12 }
 0x12f   : > { %p7297_p5 = pnand %p7295_p1, %p7292_p13 }
 0x131   : > { %7300 = shalt.err (!%p7297_p5)
}
 0x132   : > { %s7301_s23 = scalar_lea.vmem %s630_s20, 16  ;;  %s7308_s3 = scalar_lea.vmem %s630_s20, 32 }
 0x133   : > { %p7302_p11 = scmp.ne.s32.totalorder %s630_s20, %s7301_s23  ;;  %p7309_p2 = scmp.lt.s32.totalorder %s630_s20, %s630_s20 }
 0x134   : > { %p7310_p8 = scmp.lt.s32.totalorder %s7308_s3, %s7301_s23 }
 0x135   : > { %p7304_p4 = pnand %p7302_p11, %p9159_p9 }
 0x136   : > { %p7311_p7 = por %p7310_p8, %p7309_p2 }
 0x137   : > { %p7305_p0 = pneg %p7304_p4 }
 0x139   : > { %p7312_p3 = pnand %p7311_p7, %p7305_p0 }
 0x13b   : > { %7315 = shalt.err (!%p7312_p3)
}
 0x13c   : > { %6682 = dma.hbm_to_vmem [thread:$0]  (!%p9160_p10), %s9079_s18, 16, %s630_s20, [#allocation29]  }
 0x13d   : > { %s6623_s12 = smul.u32 48, %s7604_s1  ;;  %s665_s9 = scalar_lea.vmem [#allocation12], %s6622_s11 }
 0x13e   : > { %s673_s19 = sshll.u32 %s665_s9, 4  ;;  %p9161_p6 = scmp.ne.s32.totalorder %s9150_s2, 0  ;;  %s674_s19 = int_to_ptr.vmem [resolvable:$true] %s673_s19 }
 0x13f   : > { %s671_s21 = scalar_lea.hbm %s9067_s6, %s6623_s12  ;;  %s7321_s26 = scalar_lea.hbm %s9067_s6, 192 }
 0x140   : > { %s7316_s7 = scalar_lea.hbm %s671_s21, 48  ;;  %p7322_p10 = scmp.lt.u32.totalorder %s671_s21, %s9067_s6 }
 0x141   : > { %p7317_p9 = scmp.ne.s32.totalorder %s671_s21, %s7316_s7  ;;  %p7323_p1 = scmp.lt.u32.totalorder %s7321_s26, %s7316_s7 }
 0x142   : > { %p7325_p11 = scmp.lt.u32.totalorder %s7316_s7, %s671_s21 }
 0x143   : > { %p7319_p12 = pnand %p7317_p9, %p9161_p6  ;;  %p7324_p5 = por %p7323_p1, %p7322_p10 }
 0x145   : > { %p7320_p13 = pneg %p7319_p12  ;;  %p7326_p4 = por %p7325_p11, %p7324_p5 }
 0x147   : > { %p7327_p0 = pnand %p7326_p4, %p7320_p13 }
 0x149   : > { %7330 = shalt.err (!%p7327_p0)
}
 0x14a   : > { %s7331_s20 = scalar_lea.vmem %s674_s19, 48  ;;  %s7627_s11 = smov [#allocation12]  }
 0x14b   : > { %p7332_p2 = scmp.ne.s32.totalorder %s674_s19, %s7331_s20  ;;  %s7336_s23 = sshll.u32 %s7627_s11, 4  ;;  %s7337_s23 = int_to_ptr.vmem [resolvable:$false] %s7336_s23 }
 0x14c   : > { %s7338_s3 = scalar_lea.vmem %s7337_s23, 96  ;;  %p7339_p3 = scmp.lt.s32.totalorder %s674_s19, %s7337_s23 }
 0x14d   : > { %p7334_p8 = pnand %p7332_p2, %p9161_p6  ;;  %p7340_p9 = scmp.lt.s32.totalorder %s7338_s3, %s7331_s20 }
 0x14f   : > { %p7335_p7 = pneg %p7334_p8  ;;  %p7341_p12 = por %p7340_p9, %p7339_p3 }
 0x151   : > { %p7342_p1 = pnand %p7341_p12, %p7335_p7 }
 0x153   : > { %7345 = shalt.err (!%p7342_p1)
}
 0x154   : > { %p9162_p10 = scmp.ne.s32.totalorder %s9142_s29, 0  ;;  %s9163_s24 = scalar_lea.sflag [#allocation11], %s7815_s0 }
 0x155   : > { %s8136_s9 = scalar_lea.hbm %s9069_s8, %s7976_s16  ;;  %s704_s30 = scalar_lea.vmem [#allocation15], %s7802_s27 }
 0x156   : > { %6689 = dma.hbm_to_vmem [thread:$0]  (!%p9162_p10), %s671_s21, 48, %s674_s19, %s9163_s24  }
 0x157   : > { %s711_s13 = sshll.u32 %s704_s30, 4  ;;  %s5824_s7 = sshll.u32 %s7802_s27, 4  ;;  %s712_s13 = int_to_ptr.vmem [resolvable:$true] %s711_s13 }
 0x158   : > { %s7346_s28 = scalar_lea.hbm %s8136_s9, 16  ;;  %s7351_s21 = scalar_lea.hbm %s9069_s8, 64 }
 0x159   : > { %p7347_p13 = scmp.ne.s32.totalorder %s8136_s9, %s7346_s28  ;;  %p7352_p4 = scmp.lt.u32.totalorder %s8136_s9, %s9069_s8 }
 0x15a   : > { %p7353_p0 = scmp.lt.u32.totalorder %s7351_s21, %s7346_s28  ;;  %p7355_p8 = scmp.lt.u32.totalorder %s7346_s28, %s8136_s9 }
 0x15b   : > { %p7349_p5 = pnand %p7347_p13, %p9161_p6 }
 0x15c   : > { %p7354_p2 = por %p7353_p0, %p7352_p4 }
 0x15d   : > { %p7350_p11 = pneg %p7349_p5 }
 0x15e   : > { %p7356_p7 = por %p7355_p8, %p7354_p2 }
 0x160   : > { %p7357_p3 = pnand %p7356_p7, %p7350_p11 }
 0x162   : > { %7360 = shalt.err (!%p7357_p3)
}
 0x163   : > { %s7361_s22 = scalar_lea.vmem %s712_s13, 16  ;;  %s7628_s20 = smov [#allocation15]  }
 0x164   : > { %p7362_p9 = scmp.ne.s32.totalorder %s712_s13, %s7361_s22  ;;  %s7366_s11 = sshll.u32 %s7628_s20, 4  ;;  %s7367_s11 = int_to_ptr.vmem [resolvable:$false] %s7366_s11 }
 0x165   : > { %s7368_s23 = scalar_lea.vmem %s7367_s11, 32  ;;  %p7369_p13 = scmp.lt.s32.totalorder %s712_s13, %s7367_s11 }
 0x166   : > { %p7364_p12 = pnand %p7362_p9, %p9161_p6  ;;  %p7370_p5 = scmp.lt.s32.totalorder %s7368_s23, %s7361_s22 }
 0x168   : > { %p7365_p1 = pneg %p7364_p12  ;;  %p7371_p10 = por %p7370_p5, %p7369_p13 }
 0x16a   : > { %p7372_p0 = pnand %p7371_p10, %p7365_p1 }
 0x16c   : > { %7375 = shalt.err (!%p7372_p0)
}
 0x16d   : > { %p9164_p4 = scmp.ne.s32.totalorder %s9142_s29, 0  ;;  %s9165_s3 = scalar_lea.sflag [#allocation14], %s7815_s0 }
 0x16e   : > { %s6166_s24 = sshll.u32 %s7604_s1, 8  ;;  %s743_s28 = scalar_lea.vmem [#allocation18], %s5824_s7 }
 0x16f   : > { %6695 = dma.hbm_to_vmem [thread:$0]  (!%p9164_p4), %s8136_s9, 16, %s712_s13, %s9165_s3  }
 0x170   : > { %s8163_s30 = scalar_lea.hbm %s9071_s10, %s6166_s24  ;;  %s751_s25 = sshll.u32 %s743_s28, 4  ;;  %s752_s25 = int_to_ptr.vmem [resolvable:$true] %s751_s25 }
 0x171   : > { %s7376_s19 = scalar_lea.hbm %s8163_s30, 256  ;;  %s7381_s21 = scalar_lea.hbm %s9071_s10, 1024 }
 0x172   : > { %p7377_p10 = scmp.ne.s32.totalorder %s8163_s30, %s7376_s19  ;;  %p7382_p8 = scmp.lt.u32.totalorder %s8163_s30, %s9071_s10 }
 0x173   : > { %p7383_p7 = scmp.lt.u32.totalorder %s7381_s21, %s7376_s19  ;;  %p7385_p9 = scmp.lt.u32.totalorder %s7376_s19, %s8163_s30 }
 0x174   : > { %p7379_p11 = pnand %p7377_p10, %p9161_p6 }
 0x175   : > { %p7384_p3 = por %p7383_p7, %p7382_p8 }
 0x176   : > { %p7380_p2 = pneg %p7379_p11 }
 0x177   : > { %p7386_p12 = por %p7385_p9, %p7384_p3 }
 0x179   : > { %p7387_p1 = pnand %p7386_p12, %p7380_p2 }
 0x17b   : > { %7390 = shalt.err (!%p7387_p1)
}
 0x17c   : > { %s7391_s7 = scalar_lea.vmem %s752_s25, 256  ;;  %s7629_s22 = smov [#allocation18]  }
 0x17d   : > { %p7392_p13 = scmp.ne.s32.totalorder %s752_s25, %s7391_s7  ;;  %s7396_s20 = sshll.u32 %s7629_s22, 4  ;;  %s7397_s20 = int_to_ptr.vmem [resolvable:$false] %s7396_s20 }
 0x17e   : > { %s7398_s11 = scalar_lea.vmem %s7397_s20, 512  ;;  %p7399_p10 = scmp.lt.s32.totalorder %s752_s25, %s7397_s20 }
 0x17f   : > { %p7394_p5 = pnand %p7392_p13, %p9161_p6  ;;  %p7400_p11 = scmp.lt.s32.totalorder %s7398_s11, %s7391_s7 }
 0x181   : > { %p7395_p0 = pneg %p7394_p5  ;;  %p7401_p4 = por %p7400_p11, %p7399_p10 }
 0x183   : > { %p7402_p7 = pnand %p7401_p4, %p7395_p0 }
 0x185   : > { %7405 = shalt.err (!%p7402_p7)
}
 0x186   : > { %p9166_p8 = scmp.ne.s32.totalorder %s9142_s29, 0  ;;  %s9167_s23 = scalar_lea.sflag [#allocation17], %s7815_s0 }
 0x187   : > { %s9168_s14 = sld [smem:[#allocation58_spill]]  ;;  %s782_s28 = scalar_lea.vmem [#allocation21], %s7802_s27 }
 0x188   : > { %6701 = dma.hbm_to_vmem [thread:$0]  (!%p9166_p8), %s8163_s30, 256, %s752_s25, %s9167_s23  }
 0x189   : > { %s789_s19 = sshll.u32 %s782_s28, 4  ;;  %s790_s19 = int_to_ptr.vmem [resolvable:$true] %s789_s19 }
 0x18d   : > { %s8190_s12 = scalar_lea.hbm %s9168_s14, %s7976_s16  ;;  %s7411_s30 = scalar_lea.hbm %s9168_s14, 64 }
 0x18e   : > { %s7406_s9 = scalar_lea.hbm %s8190_s12, 16  ;;  %p7412_p9 = scmp.lt.u32.totalorder %s8190_s12, %s9168_s14 }
 0x18f   : > { %p7407_p4 = scmp.ne.s32.totalorder %s8190_s12, %s7406_s9  ;;  %p7413_p12 = scmp.lt.u32.totalorder %s7411_s30, %s7406_s9 }
 0x190   : > { %p7415_p13 = scmp.lt.u32.totalorder %s7406_s9, %s8190_s12 }
 0x191   : > { %p7409_p2 = pnand %p7407_p4, %p9161_p6  ;;  %p7414_p1 = por %p7413_p12, %p7412_p9 }
 0x193   : > { %p7410_p3 = pneg %p7409_p2  ;;  %p7416_p5 = por %p7415_p13, %p7414_p1 }
 0x195   : > { %p7417_p0 = pnand %p7416_p5, %p7410_p3 }
 0x197   : > { %7420 = shalt.err (!%p7417_p0)
}
 0x198   : > { %s7421_s5 = scalar_lea.vmem %s790_s19, 16  ;;  %s7630_s7 = smov [#allocation21]  }
 0x199   : > { %p7422_p10 = scmp.ne.s32.totalorder %s790_s19, %s7421_s5  ;;  %s7426_s22 = sshll.u32 %s7630_s7, 4  ;;  %s7427_s22 = int_to_ptr.vmem [resolvable:$false] %s7426_s22 }
 0x19a   : > { %s7428_s20 = scalar_lea.vmem %s7427_s22, 32  ;;  %p7429_p4 = scmp.lt.s32.totalorder %s790_s19, %s7427_s22 }
 0x19b   : > { %p7424_p11 = pnand %p7422_p10, %p9161_p6  ;;  %p7430_p2 = scmp.lt.s32.totalorder %s7428_s20, %s7421_s5 }
 0x19d   : > { %p7425_p7 = pneg %p7424_p11  ;;  %p7431_p8 = por %p7430_p2, %p7429_p4 }
 0x19f   : > { %p7432_p9 = pnand %p7431_p8, %p7425_p7 }
 0x1a1   : > { %7435 = shalt.err (!%p7432_p9)
}
 0x1a2   : > { %p9169_p12 = scmp.ne.s32.totalorder %s9142_s29, 0  ;;  %s9170_s11 = scalar_lea.sflag [#allocation20], %s7815_s0 }
 0x1a3   : > { %s9171_s24 = sld [smem:[#allocation60_spill]]  ;;  %s816_s9 = scalar_lea.vmem [#allocation24], %s7802_s27 }
 0x1a4   : > { %6707 = dma.hbm_to_vmem [thread:$0]  (!%p9169_p12), %s8190_s12, 16, %s790_s19, %s9170_s11  }
 0x1a5   : > { %s823_s13 = sshll.u32 %s816_s9, 4  ;;  %s824_s13 = int_to_ptr.vmem [resolvable:$true] %s823_s13 }
 0x1a9   : > { %s8216_s28 = scalar_lea.hbm %s9171_s24, %s7976_s16  ;;  %s7441_s12 = scalar_lea.hbm %s9171_s24, 64 }
 0x1aa   : > { %s7436_s21 = scalar_lea.hbm %s8216_s28, 16  ;;  %p7442_p13 = scmp.lt.u32.totalorder %s8216_s28, %s9171_s24 }
 0x1ab   : > { %p7437_p8 = scmp.ne.s32.totalorder %s8216_s28, %s7436_s21  ;;  %p7443_p5 = scmp.lt.u32.totalorder %s7441_s12, %s7436_s21 }
 0x1ac   : > { %p7445_p10 = scmp.lt.u32.totalorder %s7436_s21, %s8216_s28 }
 0x1ad   : > { %p7439_p3 = pnand %p7437_p8, %p9161_p6  ;;  %p7444_p0 = por %p7443_p5, %p7442_p13 }
 0x1af   : > { %p7440_p1 = pneg %p7439_p3  ;;  %p7446_p11 = por %p7445_p10, %p7444_p0 }
 0x1b1   : > { %p7447_p7 = pnand %p7446_p11, %p7440_p1 }
 0x1b3   : > { %7450 = shalt.err (!%p7447_p7)
}
 0x1b4   : > { %s7451_s5 = scalar_lea.vmem %s824_s13, 16  ;;  %s7631_s7 = smov [#allocation24]  }
 0x1b5   : > { %p7452_p4 = scmp.ne.s32.totalorder %s824_s13, %s7451_s5  ;;  %s7456_s22 = sshll.u32 %s7631_s7, 4  ;;  %s7457_s22 = int_to_ptr.vmem [resolvable:$false] %s7456_s22 }
 0x1b6   : > { %s7458_s20 = scalar_lea.vmem %s7457_s22, 32  ;;  %p7459_p8 = scmp.lt.s32.totalorder %s824_s13, %s7457_s22 }
 0x1b7   : > { %p7454_p2 = pnand %p7452_p4, %p9161_p6  ;;  %p7460_p3 = scmp.lt.s32.totalorder %s7458_s20, %s7451_s5 }
 0x1b9   : > { %p7455_p9 = pneg %p7454_p2  ;;  %p7461_p12 = por %p7460_p3, %p7459_p8 }
 0x1bb   : > { %p7462_p5 = pnand %p7461_p12, %p7455_p9 }
 0x1bd   : > { %7465 = shalt.err (!%p7462_p5)
}
 0x1be   : > { %p9172_p13 = scmp.ne.s32.totalorder %s9142_s29, 0  ;;  %s9173_s11 = scalar_lea.sflag [#allocation23], %s7815_s0 }
 0x1bf   : > { %s9174_s9 = sld [smem:[#allocation61_spill]]  ;;  %s850_s30 = scalar_lea.vmem [#allocation27], %s7802_s27 }
 0x1c0   : > { %6713 = dma.hbm_to_vmem [thread:$0]  (!%p9172_p13), %s8216_s28, 16, %s824_s13, %s9173_s11  }
 0x1c1   : > { %s857_s25 = sshll.u32 %s850_s30, 4  ;;  %s858_s25 = int_to_ptr.vmem [resolvable:$true] %s857_s25 }
 0x1c5   : > { %s8242_s21 = scalar_lea.hbm %s9174_s9, %s7976_s16  ;;  %s7471_s28 = scalar_lea.hbm %s9174_s9, 64 }
 0x1c6   : > { %s7466_s12 = scalar_lea.hbm %s8242_s21, 16  ;;  %p7472_p10 = scmp.lt.u32.totalorder %s8242_s21, %s9174_s9 }
 0x1c7   : > { %p7467_p12 = scmp.ne.s32.totalorder %s8242_s21, %s7466_s12  ;;  %p7473_p11 = scmp.lt.u32.totalorder %s7471_s28, %s7466_s12 }
 0x1c8   : > { %p7475_p4 = scmp.lt.u32.totalorder %s7466_s12, %s8242_s21 }
 0x1c9   : > { %p7469_p1 = pnand %p7467_p12, %p9161_p6  ;;  %p7474_p7 = por %p7473_p11, %p7472_p10 }
 0x1cb   : > { %p7470_p0 = pneg %p7469_p1  ;;  %p7476_p2 = por %p7475_p4, %p7474_p7 }
 0x1cd   : > { %p7477_p9 = pnand %p7476_p2, %p7470_p0 }
 0x1cf   : > { %7480 = shalt.err (!%p7477_p9)
}
 0x1d0   : > { %s7481_s27 = scalar_lea.vmem %s858_s25, 16  ;;  %s7632_s16 = smov [#allocation27]  }
 0x1d1   : > { %p7482_p8 = scmp.ne.s32.totalorder %s858_s25, %s7481_s27  ;;  %s7486_s7 = sshll.u32 %s7632_s16, 4  ;;  %s7487_s7 = int_to_ptr.vmem [resolvable:$false] %s7486_s7 }
 0x1d2   : > { %s7488_s22 = scalar_lea.vmem %s7487_s7, 32  ;;  %p7489_p12 = scmp.lt.s32.totalorder %s858_s25, %s7487_s7 }
 0x1d3   : > { %p7484_p3 = pnand %p7482_p8, %p9161_p6  ;;  %p7490_p1 = scmp.lt.s32.totalorder %s7488_s22, %s7481_s27 }
 0x1d5   : > { %p7485_p5 = pneg %p7484_p3  ;;  %p7491_p13 = por %p7490_p1, %p7489_p12 }
 0x1d7   : > { %p7492_p10 = pnand %p7491_p13, %p7485_p5 }
 0x1d9   : > { %7495 = shalt.err (!%p7492_p10)
}
 0x1da   : > { %p9175_p11 = scmp.ne.s32.totalorder %s9142_s29, 0  ;;  %s9176_s20 = scalar_lea.sflag [#allocation26], %s7815_s0 }
 0x1db   : > { %s9177_s11 = sld [smem:[#allocation47_spill]] }
 0x1dc   : > { %6719 = dma.hbm_to_vmem [thread:$0]  (!%p9175_p11), %s8242_s21, 16, %s858_s25, %s9176_s20  }
 0x1e1   : > { %p9178_p0 = scmp.ne.s32.totalorder %s9177_s11, 0 }
 0x1e2   : > { %s9179_s2 = sld [smem:[#allocation45_spill]] (!%p9178_p0) }
 0x1e3   : > { %866 = sbr.rel (%p9178_p0) target bundleno = 5343 (0x14df), region = 96 }
 0x1e8   : > { %p9180_p6 = scmp.eq.s32.totalorder (!%p9178_p0), %s9179_s2, 0 }
 0x1ea   : > { %7547 = dma.done.wait (%p9180_p6), [#allocation5], 32   ;;  %p9181_p7 = pmov %p9180_p6 }
 0x1eb   : > { %p9182_p4 = pmov %p9180_p6 }
 0x1ec   : > { %7549 = vsyncadd (%p9181_p7), [#allocation5], 4294967264 }
 0x1ed   : > { %7551 = dma.done.wait (%p9182_p4), [#allocation8], 80   ;;  %p9183_p13 = pmov %p9182_p4 }
 0x1ee   : > { %s9184_s29 = sld [smem:[#allocation41_spill]]  ;;  %s9185_s0 = sld [smem:[#allocation46_spill]] }
 0x1ef   : > { %7553 = vsyncadd (%p9183_p13), [#allocation8], 4294967216  ;;  %s8275_s23 = sand.u32 1, %s9179_s2  }
 0x1f0   : > { %s881_s30 = scalar_lea.sflag [#allocation11], %s8275_s23 }
 0x1f4   : > { %s8278_s3 = sand.u32 1, %s9184_s29   ;;  %p9186_p2 = scmp.ne.s32.totalorder %s9185_s0, 0 }
 0x1f5   : > { %s6624_s21 = smul.u32 192, %s8278_s3 }
 0x1f7   : > { %s8282_s25 = scalar_lea.vmem [#allocation10], %s6624_s21 }
 0x1f8   : > { %7555 = dma.done.wait (%p9186_p2), %s881_s30, 3120  }
 0x1f9   : > { %7557 = vsyncadd (%p9186_p2), %s881_s30, 4294964176  ;;  %s6625_s12 = smul.u32 3, %s8278_s3  ;;  %s5839_s19 = sshll.u32 %s8278_s3, 6 }
 0x1fa   : > { %s899_s28 = scalar_lea.sflag [#allocation14], %s8275_s23  ;;  %s8293_s13 = scalar_lea.vmem [#allocation13], %s5839_s19 }
 0x1fb   : > { %s8290_s26 = scalar_lea.vmem [#allocation12], %s6625_s12 }
 0x1fc   : > { %7559 = dma.done.wait (%p9186_p2), %s899_s28, 1040  }
 0x1fd   : > { %7561 = vsyncadd (%p9186_p2), %s899_s28, 4294966256  ;;  %s5840_s5 = sshll.u32 %s8278_s3, 10  ;;  %s910_s27 = scalar_lea.vmem [#allocation15], %s8278_s3 }
 0x1fe   : > { %s916_s16 = scalar_lea.sflag [#allocation17], %s8275_s23  ;;  %s8302_s7 = scalar_lea.vmem [#allocation16], %s5840_s5 }
 0x1ff   : > { %7563 = dma.done.wait (%p9186_p2), %s916_s16, 16640  }
 0x200   : > { %7565 = vsyncadd (%p9186_p2), %s916_s16, 4294950656  ;;  %s5841_s22 = sshll.u32 %s8278_s3, 4  ;;  %s934_s11 = scalar_lea.sflag [#allocation20], %s8275_s23 }
 0x201   : > { %s8309_s20 = scalar_lea.vmem [#allocation18], %s5841_s22  ;;  %s8312_s29 = scalar_lea.vmem [#allocation19], %s5840_s5 }
 0x202   : > { %7567 = dma.done.wait (%p9186_p2), %s934_s11, 16400  }
 0x203   : > { %7569 = vsyncadd (%p9186_p2), %s934_s11, 4294950896  ;;  %s945_s21 = scalar_lea.vmem [#allocation21], %s8278_s3  ;;  %s951_s30 = scalar_lea.sflag [#allocation23], %s8275_s23 }
 0x204   : > { %s953_s12 = scalar_lea.vmem [#allocation22], %s8278_s3 }
 0x205   : > { %7571 = dma.done.wait (%p9186_p2), %s951_s30, 32  }
 0x206   : > { %7573 = vsyncadd (%p9186_p2), %s951_s30, 4294967264  ;;  %s961_s19 = scalar_lea.vmem [#allocation24], %s8278_s3  ;;  %s967_s28 = scalar_lea.sflag [#allocation26], %s8275_s23 }
 0x207   : > { %s969_s5 = scalar_lea.vmem [#allocation25], %s8278_s3 }
 0x208   : > { %7575 = dma.done.wait (%p9186_p2), %s967_s28, 32  }
 0x209   : > { %7577 = vsyncadd (%p9186_p2), %s967_s28, 4294967264  ;;  %s977_s16 = scalar_lea.vmem [#allocation27], %s8278_s3  ;;  %p9187_p9 = pmov %p9182_p4 }
 0x20a   : > { %p9188_p8 = pmov %p9182_p4 }
 0x20b   : > { %7579 = dma.done.wait (%p9187_p9), [#allocation29], 16  }
 0x20c   : > { %7581 = vsyncadd (%p9188_p8), [#allocation29], 4294967280  ;;  %v8337_v0 = vld [vmem:[#allocation4] sm:$0x1]  ;;  %v8339_v1 = vld [vmem:[#allocation4 + $0x1] sm:$0x1] }
 0x20d   : > { %v1096_v2 = vsub.f32 1.0, %v8337_v0  ;;  %v1097_v3 = vsub.f32 1.0, %v8339_v1  ;;  %s9189_s0 = sld [smem:[#allocation43_spill]] }
 0x20f   : > { %v8343_v4 = vmul.f32 -1e+09, %v1096_v2  ;;  %v8345_v5 = vmul.f32 -1e+09, %v1097_v3 }
 0x213   : > { %p5844_p3 = scmp.ne.s32.totalorder %s9189_s0, 0 }
 0x214   : > { %s9190_s11 = sld [smem:[#allocation50_spill]] (!%p5844_p3)  ;;  %v7633_v7 = vmov (!%p5844_p3), 1   ;;  %v7634_v8 = vmov (!%p5844_p3), 0   ;;  %v7635_v10 = vmov (!%p5844_p3), 2   ;;  %v1117_v11 = vlaneseq (!%p5844_p3)  ;;  %v1106_v15 = vld [vmem:[#allocation7] sm:$0x7] (!%p5844_p3) }
 0x215   : > { %1103 = sbr.rel (%p5844_p3) target bundleno = 685 (0x2ad), region = 164  ;;  %6807 = vset.pattern.permute.xlu1 (!%p5844_p3), %v7633_v7  ;;  %6806 = vset.pattern.permute.xlu0 (!%p5844_p3), %v7634_v8  ;;  %v5845_v34 = vld [vmem:[#allocation9] ss:$0 sm:$0xff] (!%p5844_p3)  ;;  %s9191_s23 = sld [smem:[#allocation52_spill]] (!%p5844_p3) }
 0x216   : > { %v1118_v12 = vshrl.u32 (!%p5844_p3), %v1117_v11, 7 }
 0x218   : > { %v1133_v13 = vsub.s32 (!%p5844_p3), 1, %v1118_v12  ;;  %v1119_v14 = vsub.s32 (!%p5844_p3), 0, %v1118_v12  ;;  %v1149_v18 = vsub.s32 (!%p5844_p3), 2, %v1118_v12 }
 0x21a   : > { %v1104_v6 = vld [vmem:[%s9190_s11] sm:$0xff] (!%p5844_p3)  ;;  %v1105_v9 = vld [vmem:[%s9190_s11 + $0x8] sm:$0xff] (!%p5844_p3)  ;;  %v1134_v19 = vrot.slane (!%p5844_p3), %v1106_v15, %v1133_v13  ;;  %v1120_v20 = vrot.slane (!%p5844_p3), %v1106_v15, %v1119_v14  ;;  %v1150_v23 = vrot.slane (!%p5844_p3), %v1106_v15, %v1149_v18 }
 0x21b   : > { %1124 = vperm.xlu1 (!%p5844_p3), %6807, %v1104_v6   ;;  %1109 = vperm.xlu0 (!%p5844_p3), %6806, %v1104_v6   ;;  %v1164_v37 = vld [vmem:[%s9191_s23] sm:$0xff] (!%p5844_p3) }
 0x21f   : > { %1128 = vperm.xlu1 %6807, %v1105_v9   ;;  %1114 = vperm.xlu0 %6806, %v1105_v9  }
 0x223   : > { %6809 = vset.pattern.permute.xlu1 %v7635_v10  ;;  %6808 = vset.pattern.permute.xlu0 %v7635_v10 }
 0x224   : > { %1144 = vperm.xlu1 %6809, %v1105_v9   ;;  %1140 = vperm.xlu0 %6808, %v1104_v6  }
 0x29a   : > { %v1125_v16 = vpop.permute.xlu1 %1124  ;;  %v1110_v17 = vpop.permute.xlu0 %1109 }
 0x29b   : > { %v1135_v24 = vmul.f32 %v1134_v19, %v1125_v16  ;;  %v1121_v25 = vmul.f32 %v1120_v20, %v1110_v17 }
 0x29d   : > { %v1137_v30 = vadd.f32 %v1135_v24, %v1121_v25 }
 0x29e   : > { %v1129_v21 = vpop.permute.xlu1 %1128  ;;  %v1115_v22 = vpop.permute.xlu0 %1114 }
 0x29f   : > { %v1136_v26 = vmul.f32 %v1134_v19, %v1129_v21  ;;  %v1122_v27 = vmul.f32 %v1120_v20, %v1115_v22 }
 0x2a1   : > { %v1138_v31 = vadd.f32 %v1136_v26, %v1122_v27 }
 0x2a3   : > { %v1145_v28 = vpop.permute.xlu1 %1144  ;;  %v1141_v29 = vpop.permute.xlu0 %1140 }
 0x2a4   : > { %v1152_v32 = vmul.f32 %v1150_v23, %v1145_v28  ;;  %v1151_v33 = vmul.f32 %v1150_v23, %v1141_v29 }
 0x2a6   : > { %v1154_v35 = vadd.f32 %v1152_v32, %v1138_v31  ;;  %v1153_v36 = vadd.f32 %v1151_v33, %v1137_v30 }
 0x2a8   : > { %v1163_v38 = vadd.f32 %v5845_v34, %v1154_v35  ;;  %v1162_v39 = vadd.f32 %v5845_v34, %v1153_v36 }
 0x2aa   : > { %v1166_v40 = vadd.f32 %v1164_v37, %v1163_v38  ;;  %v1165_v41 = vadd.f32 %v1164_v37, %v1162_v39 }
 0x2ac   : > { %1168 = vst [vmem:[#allocation2 + $0x8] sm:$0xff] %v1166_v40  ;;  %1167 = vst [vmem:[#allocation2] sm:$0xff] %v1165_v41 }
 0x2ad PF: > { %v6810_v42 = vld [vmem:[%s8282_s25 + $0x4] ss:$12 sps:$4 sm:$0xff]   ;;  %v6812_v43 = vld [vmem:[%s8282_s25] ss:$12 sps:$4 sm:$0xff]   ;;  %v7636_v44 = vmov 0   ;;  %v7637_v45 = vmov 0.0   ;;  %v1206_v11 = vlaneseq }
 0x2ae   : > { %1381 = vmatprep.mubr.bf16.mxu0 %v7636_v44  ;;  %6415 = vmatprep.subr.bf16.mxu1 %v7637_v45  ;;  %v6813_v46 = vld [vmem:[%s8282_s25 + $0x1c] ss:$12 sps:$4 sm:$0xff]   ;;  %v6815_v47 = vld [vmem:[%s8282_s25 + $0x18] ss:$12 sps:$4 sm:$0xff]   ;;  %v6816_v48 = vld [vmem:[%s8282_s25 + $0x34] ss:$12 sps:$4 sm:$0xff]  }
 0x2af   : > { %1349 = vmatprep.subr.bf16.mxu0 %v6810_v42  ;;  %v6818_v49 = vld [vmem:[%s8282_s25 + $0x30] ss:$12 sps:$4 sm:$0xff]   ;;  %v6819_v50 = vld [vmem:[%s8282_s25 + $0x4c] ss:$12 sps:$4 sm:$0xff]   ;;  %v6821_v51 = vld [vmem:[%s8282_s25 + $0x48] ss:$12 sps:$4 sm:$0xff]  }
 0x2b0   : > { %1350 = vmatpush1.bf16.msra.mxu0 %v6812_v43  ;;  %v6822_v52 = vld [vmem:[%s8282_s25 + $0x64] ss:$12 sps:$4 sm:$0xff]   ;;  %v6834_v53 = vld [vmem:[%s8282_s25 + $0x8] ss:$12 sps:$4 sm:$0xff]   ;;  %v6835_v54 = vld [vmem:[%s8282_s25 + $0x20] ss:$12 sps:$4 sm:$0xff]  }
 0x2b1   : > { %1351 = vmatprep.subr.bf16.mxu0 %v6813_v46  ;;  %6416 = vmatpush3.bf16.msra.mxu1 %v6834_v53  ;;  %v6824_v55 = vld [vmem:[%s8282_s25 + $0x60] ss:$12 sps:$4 sm:$0xff]   ;;  %v6825_v56 = vld [vmem:[%s8282_s25 + $0x7c] ss:$12 sps:$4 sm:$0xff]   ;;  %v6836_v57 = vld [vmem:[%s8282_s25 + $0x38] ss:$12 sps:$4 sm:$0xff]  }
 0x2b2   : > { %6417 = vmatprep.subr.bf16.mxu1 %v7637_v45  ;;  %v6827_v58 = vld [vmem:[%s8282_s25 + $0x78] ss:$12 sps:$4 sm:$0xff]   ;;  %v6828_v59 = vld [vmem:[%s8282_s25 + $0x94] ss:$12 sps:$4 sm:$0xff]   ;;  %v6837_v60 = vld [vmem:[%s8282_s25 + $0x50] ss:$12 sps:$4 sm:$0xff]  }
 0x2b3   : > { %v6830_v61 = vld [vmem:[%s8282_s25 + $0x90] ss:$12 sps:$4 sm:$0xff]   ;;  %v6831_v62 = vld [vmem:[%s8282_s25 + $0xac] ss:$12 sps:$4 sm:$0xff]   ;;  %v6838_v63 = vld [vmem:[%s8282_s25 + $0x68] ss:$12 sps:$4 sm:$0xff]  }
 0x2b4   : > { %1352 = vmatpush1.bf16.msra.mxu0 %v6815_v47  ;;  %v6833_v2 = vld [vmem:[%s8282_s25 + $0xa8] ss:$12 sps:$4 sm:$0xff]   ;;  %v1169_v3 = vld [vmem:[#allocation2] sm:$0xff]  ;;  %v1170_v6 = vld [vmem:[#allocation2 + $0x8] sm:$0xff]  ;;  %vm7638_vm0 = vmmov 0   ;;  %v8398_v12 = vshrl.u32 %v1206_v11, 7 }
 0x2b5   : > { %1353 = vmatprep.subr.bf16.mxu0 %v6816_v48  ;;  %6418 = vmatpush3.bf16.msra.mxu1 %v6835_v54  ;;  %v6839_v7 = vld [vmem:[%s8282_s25 + $0x80] ss:$12 sps:$4 sm:$0xff]   ;;  %v1171_v8 = vpack.c.bf16 %v1170_v6, %v1169_v3  ;;  %v6840_v9 = vld [vmem:[%s8282_s25 + $0x98] ss:$12 sps:$4 sm:$0xff]   ;;  %v6841_v10 = vld [vmem:[%s8282_s25 + $0xb0] ss:$12 sps:$4 sm:$0xff]  }
 0x2b6   : > { %6419 = vmatprep.subr.bf16.mxu1 %v7637_v45  ;;  %6431 = vmatprep.mubr.msk.bf16.mxu1 %vm7638_vm0, %v7637_v45  ;;  %v8401_v13 = vsub.s32 1, %v8398_v12  ;;  %v1204_v14 = vld [vmem:[%s8290_s26] sm:$0x7]  ;;  %v8406_v16 = vsub.s32 0, %v8398_v12  ;;  %vm1451_vm1 = vcmask 261120   ;;  %v8432_v32 = vsub.s32 2, %v8398_v12 }
 0x2b7   : > { %vm1572_vm2 = vcmask 1043456   ;;  %vm1544_vm3 = vcmask 64512   ;;  %s7639_s25 = smov 96   ;;  %s7640_s26 = smov 64   ;;  %vm1898_vm4 = vcmask 523520   ;;  %vm2129_vm5 = vcmask 785920  }
 0x2b8   : > { %1354 = vmatpush1.bf16.msra.mxu0 %v6818_v49  ;;  %v1213_v15 = vrot.slane %v1204_v14, %v8401_v13  ;;  %v1209_v22 = vrot.slane %v1204_v14, %v8406_v16  ;;  %v1217_v33 = vrot.slane %v1204_v14, %v8432_v32  ;;  %v8442_v42 = vrot.slane %v8343_v4, %v8406_v16  ;;  %s7641_s22 = smov 32  }
 0x2b9   : > { %1355 = vmatprep.subr.bf16.mxu0 %v6819_v50  ;;  %6420 = vmatpush3.bf16.msra.mxu1 %v6836_v57  ;;  %vm2360_vm6 = vcmask 1048320  }
 0x2ba   : > { %6421 = vmatprep.subr.bf16.mxu1 %v7637_v45 }
 0x2bc   : > { %1356 = vmatpush1.bf16.msra.mxu0 %v6821_v51  ;;  %v8448_v51 = vrot.slane %v8345_v5, %v8406_v16 }
 0x2bd   : > { %1357 = vmatprep.subr.bf16.mxu0 %v6822_v52  ;;  %6422 = vmatpush3.bf16.msra.mxu1 %v6837_v60 }
 0x2be   : > { %6423 = vmatprep.subr.bf16.mxu1 %v7637_v45 }
 0x2c0   : > { %1358 = vmatpush1.bf16.msra.mxu0 %v6824_v55 }
 0x2c1   : > { %1359 = vmatprep.subr.bf16.mxu0 %v6825_v56  ;;  %6424 = vmatpush3.bf16.msra.mxu1 %v6838_v63 }
 0x2c2   : > { %6425 = vmatprep.subr.bf16.mxu1 %v7637_v45 }
 0x2c4   : > { %1360 = vmatpush1.bf16.msra.mxu0 %v6827_v58 }
 0x2c5   : > { %1361 = vmatprep.subr.bf16.mxu0 %v6828_v59  ;;  %6426 = vmatpush3.bf16.msra.mxu1 %v6839_v7 }
 0x2c6   : > { %6427 = vmatprep.subr.bf16.mxu1 %v7637_v45 }
 0x2c8   : > { %1362 = vmatpush1.bf16.msra.mxu0 %v6830_v61 }
 0x2c9   : > { %1363 = vmatprep.subr.bf16.mxu0 %v6831_v62  ;;  %6428 = vmatpush3.bf16.msra.mxu1 %v6840_v9 }
 0x2ca   : > { %6429 = vmatprep.subr.bf16.mxu1 %v7637_v45 }
 0x2cc   : > { %1364 = vmatpush1.bf16.msra.mxu0 %v6833_v2 }
 0x2cd   : > { %6459 = vmatprep.subr.bf16.mxu0 %v7637_v45  ;;  %6430 = vmatpush3.bf16.msra.mxu1 %v6841_v10 }
 0x2ce   : > { %6435 = vmatprep.subr.bf16.mxu1 %v7637_v45 }
 0x2cf   : > { %1382 = vmatmul.mubr.bf16.vlgmr.msra.gmra.mrb[0].mxu0 %v1171_v8 }
 0x2d0   : > { %6461 = vmatprep.mubr.msk.bf16.mxu0 %vm7638_vm0, %v7637_v45  ;;  %6432 = vmatmul.mubr.bf16.vlgmr.msra.gmra.mrb[0].mxu1 %v1171_v8 }
 0x2d1   : > { %6437 = vmatprep.mubr.msk.bf16.mxu1 %vm7638_vm0, %v7637_v45 }
 0x3a2   : > { %v1383_v17 = vpop.f32.mrb[0].mxu0 }
 0x3a3   : > { %v1385_v18 = vpop.f32.mrb[1].mxu0  ;;  %v1384_v26 = vadd.f32 %v1383_v17, %v1209_v22  ;;  %v1426_v34 = vpop.f32.mrb[0].mxu1 }
 0x3a4   : > { %v1386_v19 = vadd.f32 %v1385_v18, %v1213_v15  ;;  %v1387_v20 = vpop.f32.mrb[2].mxu0  ;;  %v1427_v35 = vadd.f32 %v1426_v34, %v1217_v33  ;;  %v6433_v36 = vpop.f32.mrb[1].mxu1 }
 0x3a5   : > { %v1389_v21 = vpop.f32.mrb[3].mxu0  ;;  %v8416_v28 = vpack.c.bf16 %v1384_v26, %v1384_v26  ;;  %v1388_v30 = vadd.f32 %v1387_v20, %v1209_v22  ;;  %v1429_v37 = vpop.f32.mrb[2].mxu1 }
 0x3a6   : > { %v8409_v23 = vpack.c.bf16 %v1386_v19, %v1386_v19  ;;  %v1390_v24 = vadd.f32 %v1389_v21, %v1213_v15  ;;  %v8435_v38 = vpack.c.bf16 %v1427_v35, %v1427_v35  ;;  %v1430_v39 = vadd.f32 %v1429_v37, %v1217_v33  ;;  %v6434_v40 = vpop.f32.mrb[3].mxu1 }
 0x3a7   : > { %v8425_v31 = vpack.c.bf16 %v1388_v30, %v1388_v30 }
 0x3a8   : > { %v1456_v25 = vsel %vm1451_vm1, %v8409_v23, 0  ;;  %v8414_v27 = vpack.c.bf16 %v1390_v24, %v1390_v24  ;;  %v1574_v41 = vsel %vm1572_vm2, %v8435_v38, 0  ;;  %v8464_v10 = vpack.c.bf16 %v1430_v39, %v1430_v39 }
 0x3a9   : > { %6436 = vmatpush3.bf16.xpose.msra.mxu1 %v1456_v25 }
 0x3aa   : > { %6441 = vmatprep.subr.bf16.mxu1 %v7637_v45  ;;  %v1502_v29 = vsel %vm1451_vm1, %v8414_v27, 0  ;;  %v1620_v15 = vsel %vm1572_vm2, %v8464_v10, 0 }
 0x3b0   : > { %6438 = vmatmul.mubr.msk.bf16.vlgmr.msra.gmra.mrb[4].mxu1 %vm1451_vm1, %v8416_v28 }
 0x3b1   : > { %6442 = vmatpush3.bf16.xpose.msra.mxu1 %v1502_v29  ;;  %6443 = vmatprep.mubr.msk.bf16.mxu1 %vm7638_vm0, %v7637_v45 }
 0x3b2   : > { %6447 = vmatprep.subr.bf16.mxu1 %v7637_v45 }
 0x3b8   : > { %6444 = vmatmul.mubr.msk.bf16.vlgmr.msra.gmra.mrb[8].mxu1 %vm1451_vm1, %v8425_v31 }
 0x3b9   : > { %6449 = vmatprep.mubr.msk.bf16.mxu1 %vm7638_vm0, %v7637_v45  ;;  %6448 = vmatpush3.bf16.msra.mxu1 %v1574_v41 }
 0x3ba   : > { %6453 = vmatprep.subr.bf16.mxu1 %v7637_v45 }
 0x483   : > { %v1492_v43 = vpop.f32.mrb[4].mxu1 }
 0x484   : > { %v1493_v46 = vadd.f32 %v1492_v43, %v8442_v42  ;;  %v6439_v47 = vpop.f32.mrb[5].mxu1 }
 0x485   : > { %v1495_v48 = vpop.f32.mrb[6].mxu1 }
 0x486   : > { %v6440_v49 = vpop.f32.mrb[7].mxu1  ;;  %v1545_v50 = vsel %vm1544_vm3, %v1493_v46, -inf }
 0x487   : > { %1546 = vmax.xlane.f32.xlu0 %v1545_v50 }
 0x48b   : > { %v1538_v52 = vpop.f32.mrb[8].mxu1 }
 0x48c   : > { %v1539_v53 = vadd.f32 %v1538_v52, %v8448_v51  ;;  %v6445_v54 = vpop.f32.mrb[9].mxu1 }
 0x48d   : > { %v1541_v4 = vpop.f32.mrb[10].mxu1 }
 0x48e   : > { %v6446_v55 = vpop.f32.mrb[11].mxu1  ;;  %v1548_v56 = vsel %vm1544_vm3, %v1539_v53, -inf }
 0x48f   : > { %1549 = vmax.xlane.f32.xlu0 %v1548_v56 }
 0x4a5   : > { %1668 = vrot.lane.b32.xlu0 %v8409_v23, %s7639_s25 }
 0x514   : > { %v1547_v57 = vpop.xlane.xlu0 %1546 }
 0x515   : > { %v1551_v58 = vsub.f32 %v1493_v46, %v1547_v57 }
 0x517   : > { %v1553_v59 = vmul.f32 1.442695, %v1551_v58 }
 0x519   : > { %6978 = vpow2.f32 %v1553_v59 }
 0x51c   : > { %v1550_v60 = vpop.xlane.xlu0 %1549 }
 0x51d   : > { %v1552_v2 = vsub.f32 %v1539_v53, %v1550_v60 }
 0x51f   : > { %v1555_v3 = vmul.f32 1.442695, %v1552_v2 }
 0x520   : > { %v1669_v5 = vpop.permute.xlu0 %1668 }
 0x521   : > { %v1674_v61 = vsel %vm1451_vm1, %v1669_v5, 0  ;;  %6980 = vpow2.f32 %v1555_v3 }
 0x522   : > { %6460 = vmatpush3.bf16.xpose.msra.mxu0 %v1674_v61 }
 0x523   : > { %v6979_v62 = vpop.eup %6978  ;;  %6471 = vmatprep.subr.bf16.mxu0 %v7637_v45 }
 0x524   : > { %v1557_v63 = vsel %vm1544_vm3, %v6979_v62, 0.0 }
 0x525   : > { %1558 = vadd.xlane.f32.xlu1 %v1557_v63 }
 0x52b   : > { %v6981_v6 = vpop.eup %6980 }
 0x52c   : > { %v1560_v7 = vsel %vm1544_vm3, %v6981_v6, 0.0 }
 0x536   : > { %1720 = vrot.lane.b32.xlu1 %v8414_v27, %s7639_s25 }
 0x55a   : > { %1561 = vadd.xlane.f32.xlu1 %v1560_v7 }
 0x56b   : > { %1665 = vrot.lane.b32.xlu1 %v8416_v28, %s7639_s25 }
 0x56f   : > { %1717 = vrot.lane.b32.xlu1 %v8425_v31, %s7639_s25 }
 0x5b2   : > { %v1559_v8 = vpop.xlane.xlu1 %1558 }
 0x5b3   : > { %6982 = vrcp.f32 %v1559_v8 }
 0x5b6   : > { %v1721_v17 = vpop.permute.xlu1 %1720 }
 0x5b7   : > { %v1726_v24 = vsel %vm1451_vm1, %v1721_v17, 0 }
 0x5bd   : > { %v6983_v9 = vpop.eup %6982 }
 0x5be   : > { %v1564_v11 = vmul.f32 %v6983_v9, %v6979_v62 }
 0x5c0   : > { %v1567_v14 = vpack.c.bf16 %v1564_v11, %v1564_v11 }
 0x5c2   : > { %6450 = vmatmul.mubr.msk.bf16.vlgmr.msra.gmra.mrb[12].mxu1 %vm1544_vm3, %v1567_v14 }
 0x5c3   : > { %6454 = vmatpush3.bf16.msra.mxu1 %v1620_v15  ;;  %6455 = vmatprep.mubr.msk.bf16.mxu1 %vm7638_vm0, %v7637_v45 }
 0x5c4   : > { %6465 = vmatprep.subr.bf16.mxu1 %v7637_v45 }
 0x5e7   : > { %v1562_v18 = vpop.xlane.xlu1 %1561 }
 0x5e8   : > { %6984 = vrcp.f32 %v1562_v18 }
 0x5eb   : > { %v1666_v19 = vpop.permute.xlu1 %1665 }
 0x5ec   : > { %6462 = vmatmul.mubr.msk.bf16.vlgmr.msra.gmra.mrb[4].mxu0 %vm1451_vm1, %v1666_v19 }
 0x5ed   : > { %6473 = vmatprep.mubr.msk.bf16.mxu0 %vm7638_vm0, %v7637_v45 }
 0x5ef   : > { %v1718_v25 = vpop.permute.xlu1 %1717 }
 0x5f2   : > { %v6985_v20 = vpop.eup %6984 }
 0x5f3   : > { %v1566_v21 = vmul.f32 %v6985_v20, %v6981_v6 }
 0x5f5   : > { %v1568_v22 = vpack.c.bf16 %v1566_v21, %v1566_v21 }
 0x5f7   : > { %6456 = vmatmul.mubr.msk.bf16.vlgmr.msra.gmra.mrb[16].mxu1 %vm1544_vm3, %v1568_v22 }
 0x5f8   : > { %6466 = vmatpush3.bf16.xpose.msra.mxu1 %v1726_v24  ;;  %6467 = vmatprep.mubr.msk.bf16.mxu1 %vm7638_vm0, %v7637_v45 }
 0x5f9   : > { %6477 = vmatprep.subr.bf16.mxu1 %v7637_v45 }
 0x5ff   : > { %6468 = vmatmul.mubr.msk.bf16.vlgmr.msra.gmra.mrb[20].mxu1 %vm1451_vm1, %v1718_v25 }
 0x600   : > { %6479 = vmatprep.mubr.msk.bf16.mxu1 %vm7638_vm0, %v7637_v45 }
 0x695   : > { %v1610_v26 = vpop.f32.mrb[12].mxu1 }
 0x696   : > { %1662 = vst.msk [vmem:[#allocation3] sm:$0xff] %vm1451_vm1, %v1610_v26  ;;  %v6451_v29 = vpop.f32.mrb[13].mxu1 }
 0x697   : > { %v1613_v30 = vpop.f32.mrb[14].mxu1 }
 0x698   : > { %v6452_v33 = vpop.f32.mrb[15].mxu1 }
 0x6bf   : > { %v1710_v34 = vpop.f32.mrb[4].mxu0 }
 0x6c0   : > { %v1711_v35 = vadd.f32 %v1710_v34, %v8442_v42  ;;  %v6463_v36 = vpop.f32.mrb[5].mxu0 }
 0x6c1   : > { %v1713_v37 = vpop.f32.mrb[6].mxu0 }
 0x6c2   : > { %v6464_v39 = vpop.f32.mrb[7].mxu0  ;;  %v1768_v40 = vsel %vm1544_vm3, %v1711_v35, -inf }
 0x6c3   : > { %1769 = vmax.xlane.f32.xlu0 %v1768_v40 }
 0x6ca   : > { %v1656_v41 = vpop.f32.mrb[16].mxu1 }
 0x6cb   : > { %1663 = vst.msk [vmem:[#allocation3 + $0x8] sm:$0xff] %vm1451_vm1, %v1656_v41  ;;  %v6457_v43 = vpop.f32.mrb[17].mxu1 }
 0x6cc   : > { %v1659_v46 = vpop.f32.mrb[18].mxu1 }
 0x6cd   : > { %v6458_v47 = vpop.f32.mrb[19].mxu1 }
 0x6d2   : > { %v1762_v48 = vpop.f32.mrb[20].mxu1 }
 0x6d3   : > { %v1763_v49 = vadd.f32 %v1762_v48, %v8448_v51  ;;  %v6469_v50 = vpop.f32.mrb[21].mxu1 }
 0x6d4   : > { %v1765_v52 = vpop.f32.mrb[22].mxu1 }
 0x6d5   : > { %v6470_v53 = vpop.f32.mrb[23].mxu1  ;;  %v1771_v54 = vsel %vm1544_vm3, %v1763_v49, -inf }
 0x6d6   : > { %1772 = vmax.xlane.f32.xlu1 %v1771_v54 }
 0x6e7   : > { %1842 = vrot.lane.b32.xlu1 %v8464_v10, %s7639_s25 }
 0x6eb   : > { %1903 = vrot.lane.b32.xlu1 %v8409_v23, %s7640_s26 }
 0x6ef   : > { %1953 = vrot.lane.b32.xlu1 %v8414_v27, %s7640_s26 }
 0x6f3   : > { %1951 = vrot.lane.b32.xlu1 %v8425_v31, %s7640_s26 }
 0x750   : > { %v1770_v4 = vpop.xlane.xlu0 %1769 }
 0x751   : > { %v1774_v55 = vsub.f32 %v1711_v35, %v1770_v4 }
 0x753   : > { %v1776_v56 = vmul.f32 1.442695, %v1774_v55 }
 0x755   : > { %6986 = vpow2.f32 %v1776_v56 }
 0x75f   : > { %v6987_v57 = vpop.eup %6986 }
 0x760   : > { %v1780_v58 = vsel %vm1544_vm3, %v6987_v57, 0.0 }
 0x761   : > { %1781 = vadd.xlane.f32.xlu0 %v1780_v58 }
 0x763   : > { %v1773_v59 = vpop.xlane.xlu1 %1772 }
 0x764   : > { %v1775_v60 = vsub.f32 %v1763_v49, %v1773_v59 }
 0x766   : > { %v1778_v5 = vmul.f32 1.442695, %v1775_v60 }
 0x767   : > { %v1843_v61 = vpop.permute.xlu1 %1842 }
 0x768   : > { %6988 = vpow2.f32 %v1778_v5  ;;  %v1848_v62 = vsel %vm1572_vm2, %v1843_v61, 0 }
 0x769   : > { %6478 = vmatpush3.bf16.msra.mxu1 %v1848_v62 }
 0x76a   : > { %6489 = vmatprep.subr.bf16.mxu1 %v7637_v45 }
 0x76b   : > { %v1904_v14 = vpop.permute.xlu1 %1903 }
 0x76c   : > { %v1909_v20 = vsel %vm1451_vm1, %v1904_v14, 0 }
 0x76f   : > { %v1954_v19 = vpop.permute.xlu1 %1953 }
 0x770   : > { %v1959_v22 = vsel %vm1451_vm1, %v1954_v19, 0 }
 0x772   : > { %v6989_v63 = vpop.eup %6988 }
 0x773   : > { %v1783_v2 = vsel %vm1544_vm3, %v6989_v63, 0.0  ;;  %v1952_v25 = vpop.permute.xlu1 %1951 }
 0x774   : > { %1784 = vadd.xlane.f32.xlu0 %v1783_v2 }
 0x78a   : > { %1793 = vrot.lane.b32.xlu0 %v8435_v38, %s7639_s25 }
 0x78e   : > { %1901 = vrot.lane.b32.xlu0 %v8416_v28, %s7640_s26 }
 0x7ee   : > { %v1782_v3 = vpop.xlane.xlu0 %1781 }
 0x7ef   : > { %6990 = vrcp.f32 %v1782_v3 }
 0x7f9   : > { %v6991_v6 = vpop.eup %6990 }
 0x7fa   : > { %v1787_v8 = vmul.f32 %v6991_v6, %v6987_v57 }
 0x7fc   : > { %v1790_v15 = vpack.c.bf16 %v1787_v8, %v1787_v8 }
 0x801   : > { %v1785_v7 = vpop.xlane.xlu0 %1784 }
 0x802   : > { %6992 = vrcp.f32 %v1785_v7 }
 0x805   : > { %v1794_v9 = vpop.permute.xlu0 %1793 }
 0x806   : > { %v1799_v11 = vsel %vm1572_vm2, %v1794_v9, 0 }
 0x807   : > { %6472 = vmatpush3.bf16.msra.mxu0 %v1799_v11 }
 0x808   : > { %6483 = vmatprep.subr.bf16.mxu0 %v7637_v45 }
 0x809   : > { %v1902_v24 = vpop.permute.xlu0 %1901 }
 0x80a   : > { %6474 = vmatmul.mubr.msk.bf16.vlgmr.msra.gmra.mrb[8].mxu0 %vm1544_vm3, %v1790_v15 }
 0x80b   : > { %6485 = vmatprep.mubr.msk.bf16.mxu0 %vm7638_vm0, %v7637_v45 }
 0x80c   : > { %v6993_v17 = vpop.eup %6992 }
 0x80d   : > { %v1789_v18 = vmul.f32 %v6993_v17, %v6989_v63 }
 0x80f   : > { %v1791_v21 = vpack.c.bf16 %v1789_v18, %v1789_v18 }
 0x810   : > { %6484 = vmatpush3.bf16.xpose.msra.mxu0 %v1909_v20 }
 0x811   : > { %6480 = vmatmul.mubr.msk.bf16.vlgmr.msra.gmra.mrb[24].mxu1 %vm1544_vm3, %v1791_v21  ;;  %6495 = vmatprep.subr.bf16.mxu0 %v7637_v45 }
 0x812   : > { %6490 = vmatpush3.bf16.xpose.msra.mxu1 %v1959_v22  ;;  %6491 = vmatprep.mubr.msk.bf16.mxu1 %vm7638_vm0, %v7637_v45 }
 0x813   : > { %6501 = vmatprep.subr.bf16.mxu1 %v7637_v45 }
 0x817   : > { %6486 = vmatmul.mubr.msk.bf16.vlgmr.msra.gmra.mrb[12].mxu0 %vm1451_vm1, %v1902_v24 }
 0x818   : > { %6497 = vmatprep.mubr.msk.bf16.mxu0 %vm7638_vm0, %v7637_v45 }
 0x819   : > { %6492 = vmatmul.mubr.msk.bf16.vlgmr.msra.gmra.mrb[28].mxu1 %vm1451_vm1, %v1952_v25 }
 0x81a   : > { %6503 = vmatprep.mubr.msk.bf16.mxu1 %vm7638_vm0, %v7637_v45 }
 0x8dd   : > { %v8523_v26 = vpop.f32.mrb[8].mxu0 }
 0x8de   : > { %v6475_v29 = vpop.f32.mrb[9].mxu0 }
 0x8df   : > { %v1838_v30 = vpop.f32.mrb[10].mxu0 }
 0x8e0   : > { %v6476_v33 = vpop.f32.mrb[11].mxu0 }
 0x8e4   : > { %v8525_v34 = vpop.f32.mrb[24].mxu1 }
 0x8e5   : > { %v6481_v35 = vpop.f32.mrb[25].mxu1 }
 0x8e6   : > { %v1887_v36 = vpop.f32.mrb[26].mxu1 }
 0x8e7   : > { %v6482_v37 = vpop.f32.mrb[27].mxu1 }
 0x8ea   : > { %v1945_v39 = vpop.f32.mrb[12].mxu0 }
 0x8eb   : > { %v1946_v40 = vadd.f32 %v1945_v39, %v8442_v42  ;;  %v6487_v41 = vpop.f32.mrb[13].mxu0 }
 0x8ec   : > { %v1948_v43 = vpop.f32.mrb[14].mxu0  ;;  %v1995_v46 = vpop.f32.mrb[28].mxu1 }
 0x8ed   : > { %v1996_v47 = vadd.f32 %v1995_v46, %v8448_v51  ;;  %v6488_v48 = vpop.f32.mrb[15].mxu0  ;;  %v6493_v49 = vpop.f32.mrb[29].mxu1  ;;  %v2001_v50 = vsel %vm1544_vm3, %v1946_v40, -inf }
 0x8ee   : > { %2002 = vmax.xlane.f32.xlu0 %v2001_v50  ;;  %v1998_v52 = vpop.f32.mrb[30].mxu1 }
 0x8ef   : > { %v6494_v53 = vpop.f32.mrb[31].mxu1  ;;  %v2004_v54 = vsel %vm1544_vm3, %v1996_v47, -inf }
 0x8f0   : > { %2005 = vmax.xlane.f32.xlu1 %v2004_v54 }
 0x901   : > { %2073 = vrot.lane.b32.xlu1 %v8464_v10, %s7640_s26 }
 0x905   : > { %2134 = vrot.lane.b32.xlu1 %v8409_v23, %s7641_s22 }
 0x909   : > { %2184 = vrot.lane.b32.xlu1 %v8414_v27, %s7641_s22 }
 0x90d   : > { %2182 = vrot.lane.b32.xlu1 %v8425_v31, %s7641_s22 }
 0x97b   : > { %v2003_v4 = vpop.xlane.xlu0 %2002 }
 0x97c   : > { %v2007_v55 = vsub.f32 %v1946_v40, %v2003_v4 }
 0x97d   : > { %v2006_v56 = vpop.xlane.xlu1 %2005 }
 0x97e   : > { %v2009_v57 = vmul.f32 1.442695, %v2007_v55  ;;  %v2008_v58 = vsub.f32 %v1996_v47, %v2006_v56 }
 0x980   : > { %6994 = vpow2.f32 %v2009_v57  ;;  %v2011_v59 = vmul.f32 1.442695, %v2008_v58 }
 0x981   : > { %v2074_v60 = vpop.permute.xlu1 %2073 }
 0x982   : > { %6996 = vpow2.f32 %v2011_v59  ;;  %v2079_v5 = vsel %vm1572_vm2, %v2074_v60, 0 }
 0x983   : > { %6502 = vmatpush3.bf16.msra.mxu1 %v2079_v5 }
 0x984   : > { %6513 = vmatprep.subr.bf16.mxu1 %v7637_v45 }
 0x985   : > { %v2135_v7 = vpop.permute.xlu1 %2134 }
 0x989   : > { %v2185_v15 = vpop.permute.xlu1 %2184 }
 0x98a   : > { %v6995_v23 = vpop.eup %6994  ;;  %v2190_v18 = vsel %vm1451_vm1, %v2185_v15, 0  ;;  %v6846_v15 = vld [vmem:[%s8293_s13 + $0x20] sm:$0xff]  }
 0x98b   : > { %v2013_v27 = vsel %vm1544_vm3, %v6995_v23, 0.0 }
 0x98c   : > { %v6997_v61 = vpop.eup %6996  ;;  %2014 = vadd.xlane.f32.xlu0 %v2013_v27 }
 0x98d   : > { %v2016_v31 = vsel %vm1544_vm3, %v6997_v61, 0.0  ;;  %v2183_v20 = vpop.permute.xlu1 %2182 }
 0x990   : > { %2017 = vadd.xlane.f32.xlu0 %v2016_v31 }
 0x9a6   : > { %2025 = vrot.lane.b32.xlu0 %v8435_v38, %s7640_s26 }
 0x9aa   : > { %2132 = vrot.lane.b32.xlu0 %v8416_v28, %s7641_s22  ;;  %v2140_v28 = vsel %vm1451_vm1, %v2135_v7, 0 }
 0xa19   : > { %v2015_v62 = vpop.xlane.xlu0 %2014 }
 0xa1a   : > { %6998 = vrcp.f32 %v2015_v62 }
 0xa1d   : > { %v2018_v63 = vpop.xlane.xlu0 %2017 }
 0xa1e   : > { %7000 = vrcp.f32 %v2018_v63 }
 0xa21   : > { %v2026_v2 = vpop.permute.xlu0 %2025 }
 0xa22   : > { %v2031_v3 = vsel %vm1572_vm2, %v2026_v2, 0 }
 0xa23   : > { %6496 = vmatpush3.bf16.msra.mxu0 %v2031_v3 }
 0xa24   : > { %v6999_v6 = vpop.eup %6998  ;;  %6507 = vmatprep.subr.bf16.mxu0 %v7637_v45 }
 0xa25   : > { %v2020_v8 = vmul.f32 %v6999_v6, %v6995_v23  ;;  %v2133_v19 = vpop.permute.xlu0 %2132 }
 0xa27   : > { %v2023_v9 = vpack.c.bf16 %v2020_v8, %v2020_v8  ;;  %v6842_v8 = vld [vmem:[%s8293_s13] sm:$0xff]  }
 0xa28   : > { %v7001_v11 = vpop.eup %7000 }
 0xa29   : > { %v2022_v14 = vmul.f32 %v7001_v11, %v6997_v61  ;;  %6498 = vmatmul.mubr.msk.bf16.vlgmr.msra.gmra.mrb[16].mxu0 %vm1544_vm3, %v2023_v9  ;;  %v6843_v9 = vld [vmem:[%s8293_s13 + $0x8] sm:$0xff]   ;;  %v6844_v11 = vld [vmem:[%s8293_s13 + $0x10] sm:$0xff]  }
 0xa2a   : > { %6509 = vmatprep.mubr.msk.bf16.mxu0 %vm7638_vm0, %v7637_v45 }
 0xa2b   : > { %v2024_v17 = vpack.c.bf16 %v2022_v14, %v2022_v14  ;;  %v6845_v14 = vld [vmem:[%s8293_s13 + $0x18] sm:$0xff]  }
 0xa2c   : > { %6508 = vmatpush3.bf16.xpose.msra.mxu0 %v2140_v28  ;;  %v6847_v28 = vld [vmem:[%s8293_s13 + $0x28] sm:$0xff]  }
 0xa2d   : > { %6504 = vmatmul.mubr.msk.bf16.vlgmr.msra.gmra.mrb[32].mxu1 %vm1544_vm3, %v2024_v17  ;;  %6519 = vmatprep.subr.bf16.mxu0 %v7637_v45  ;;  %v6848_v17 = vld [vmem:[%s8293_s13 + $0x30] sm:$0xff]  }
 0xa2e   : > { %6514 = vmatpush3.bf16.xpose.msra.mxu1 %v2190_v18  ;;  %6515 = vmatprep.mubr.msk.bf16.mxu1 %vm7638_vm0, %v7637_v45  ;;  %v6849_v18 = vld [vmem:[%s8293_s13 + $0x38] sm:$0xff]   ;;  %s9192_s13 = sld [smem:[#allocation43_spill]] }
 0xa2f   : > { %6525 = vmatprep.subr.bf16.mxu1 %v7637_v45 }
 0xa33   : > { %6510 = vmatmul.mubr.msk.bf16.vlgmr.msra.gmra.mrb[20].mxu0 %vm1451_vm1, %v2133_v19 }
 0xa34   : > { %6521 = vmatprep.mubr.msk.bf16.mxu0 %vm7638_vm0, %v7637_v45  ;;  %p6156_p5 = scmp.ne.s32.totalorder %s9192_s13, 3 }
 0xa35   : > { %6516 = vmatmul.mubr.msk.bf16.vlgmr.msra.gmra.mrb[36].mxu1 %vm1451_vm1, %v2183_v20  ;;  %vm5319_vm7 = vcmask (!%p6156_p5), 57344   ;;  %vm7643_vm8 = vmmov (!%p6156_p5), 0   ;;  %vm5358_vm9 = vcmask (!%p6156_p5), 1041409   ;;  %vm5456_vm10 = vcmask (!%p6156_p5), 81920  }
 0xa36   : > { %6527 = vmatprep.mubr.msk.bf16.mxu1 %vm7638_vm0, %v7637_v45 }
 0xafc   : > { %v2067_v21 = vpop.f32.mrb[16].mxu0 }
 0xafd   : > { %v6499_v22 = vpop.f32.mrb[17].mxu0 }
 0xafe   : > { %v2070_v24 = vpop.f32.mrb[18].mxu0 }
 0xaff   : > { %v6500_v25 = vpop.f32.mrb[19].mxu0 }
 0xb00   : > { %v2115_v29 = vpop.f32.mrb[32].mxu1 }
 0xb01   : > { %v6505_v30 = vpop.f32.mrb[33].mxu1 }
 0xb02   : > { %v2118_v33 = vpop.f32.mrb[34].mxu1 }
 0xb03   : > { %v6506_v35 = vpop.f32.mrb[35].mxu1 }
 0xb06   : > { %v2176_v36 = vpop.f32.mrb[20].mxu0 }
 0xb07   : > { %v2177_v37 = vadd.f32 %v2176_v36, %v8442_v42  ;;  %v6511_v39 = vpop.f32.mrb[21].mxu0 }
 0xb08   : > { %v2179_v40 = vpop.f32.mrb[22].mxu0  ;;  %v2226_v41 = vpop.f32.mrb[36].mxu1  ;;  %v5886_v39 = vld [vmem:[%s910_s27] ss:$0 sm:$0xff] }
 0xb09   : > { %v2227_v43 = vadd.f32 %v2226_v41, %v8448_v51  ;;  %v6512_v46 = vpop.f32.mrb[23].mxu0  ;;  %v6517_v47 = vpop.f32.mrb[37].mxu1  ;;  %v2232_v48 = vsel %vm1544_vm3, %v2177_v37, -inf }
 0xb0a   : > { %2233 = vmax.xlane.f32.xlu0 %v2232_v48  ;;  %v2229_v49 = vpop.f32.mrb[38].mxu1 }
 0xb0b   : > { %v6518_v50 = vpop.f32.mrb[39].mxu1  ;;  %v2235_v52 = vsel %vm1544_vm3, %v2227_v43, -inf  ;;  %v7018_v49 = vld [vmem:[#allocation2] sm:$0xff] }
 0xb0c   : > { %2236 = vmax.xlane.f32.xlu1 %v2235_v52  ;;  %v7019_v52 = vld [vmem:[#allocation2 + $0x8] sm:$0xff] }
 0xb1d   : > { %2304 = vrot.lane.b32.xlu1 %v8464_v10, %s7641_s22 }
 0xb21   : > { %1892 = vrot.lane.b32.xlu1 %v8523_v26, %s7641_s22 }
 0xb25   : > { %1894 = vrot.lane.b32.xlu1 %v8525_v34, %s7641_s22 }
 0xb29   : > { %2125 = vrot.lane.b32.xlu1 %v2115_v29, %s7640_s26 }
 0xb97   : > { %v2234_v42 = vpop.xlane.xlu0 %2233 }
 0xb98   : > { %v2238_v51 = vsub.f32 %v2177_v37, %v2234_v42 }
 0xb99   : > { %v2237_v53 = vpop.xlane.xlu1 %2236 }
 0xb9a   : > { %v2240_v54 = vmul.f32 1.442695, %v2238_v51  ;;  %v2239_v4 = vsub.f32 %v2227_v43, %v2237_v53  ;;  %v2522_v51 = vld [vmem:[%s8302_s7] sm:$0xff] }
 0xb9b   : > { %v2530_v53 = vld [vmem:[%s8302_s7 + $0x40] sm:$0xff] }
 0xb9c   : > { %7002 = vpow2.f32 %v2240_v54  ;;  %v2242_v55 = vmul.f32 1.442695, %v2239_v4  ;;  %v2523_v54 = vld [vmem:[%s8302_s7 + $0x8] sm:$0xff]  ;;  %v5897_v4 = vcombine.low %v2522_v51, %v2530_v53 }
 0xb9d   : > { %v2305_v56 = vpop.permute.xlu1 %2304 }
 0xb9e   : > { %7004 = vpow2.f32 %v2242_v55  ;;  %v2310_v57 = vsel %vm1572_vm2, %v2305_v56, 0  ;;  %v5898_v55 = vcombine.high %v2522_v51, %v2530_v53  ;;  %v2531_v56 = vld [vmem:[%s8302_s7 + $0x48] sm:$0xff]  ;;  %v2626_v51 = vld [vmem:[%s8302_s7 + $0x340] sm:$0xff] }
 0xb9f   : > { %6526 = vmatpush3.bf16.msra.mxu1 %v2310_v57  ;;  %v2538_v57 = vld [vmem:[%s8302_s7 + $0x80] sm:$0xff]  ;;  %v2619_v53 = vld [vmem:[%s8302_s7 + $0x308] sm:$0xff] }
 0xba0   : > { %3374 = vmatprep.subr.bf16.mxu1 %v5898_v55 }
 0xba1   : > { %v1893_v10 = vpop.permute.xlu1 %1892 }
 0xba2   : > { %1899 = vst.msk [vmem:[#allocation3] sm:$0xff] %vm1898_vm4, %v1893_v10  ;;  %v2546_v10 = vld [vmem:[%s8302_s7 + $0xc0] sm:$0xff] }
 0xba5   : > { %v1895_v26 = vpop.permute.xlu1 %1894 }
 0xba6   : > { %v7003_v58 = vpop.eup %7002  ;;  %1900 = vst.msk [vmem:[#allocation3 + $0x8] sm:$0xff] %vm1898_vm4, %v1895_v26  ;;  %v5899_v26 = vcombine.low %v2523_v54, %v2531_v56 }
 0xba7   : > { %v2244_v34 = vsel %vm1544_vm3, %v7003_v58, 0.0 }
 0xba8   : > { %v7005_v59 = vpop.eup %7004  ;;  %2245 = vadd.xlane.f32.xlu0 %v2244_v34  ;;  %v5914_v34 = vcombine.high %v2538_v57, %v2546_v10 }
 0xba9   : > { %v2126_v60 = vpop.permute.xlu1 %2125  ;;  %v2247_v5 = vsel %vm1544_vm3, %v7005_v59, 0.0 }
 0xbaa   : > { %2131 = vst.msk [vmem:[#allocation3 + $0x8] sm:$0xff] %vm2129_vm5, %v2126_v60  ;;  %v2547_v60 = vld [vmem:[%s8302_s7 + $0xc8] sm:$0xff] }
 0xbac   : > { %2248 = vadd.xlane.f32.xlu0 %v2247_v5 }
 0xbc2   : > { %2256 = vrot.lane.b32.xlu0 %v8435_v38, %s7641_s22 }
 0xbc6   : > { %2123 = vrot.lane.b32.xlu0 %v2067_v21, %s7640_s26 }
 0xc35   : > { %v2246_v23 = vpop.xlane.xlu0 %2245 }
 0xc36   : > { %7006 = vrcp.f32 %v2246_v23  ;;  %v5913_v23 = vcombine.low %v2538_v57, %v2546_v10  ;;  %v2634_v10 = vld [vmem:[%s8302_s7 + $0x380] sm:$0xff] }
 0xc39   : > { %v2249_v27 = vpop.xlane.xlu0 %2248 }
 0xc3a   : > { %7008 = vrcp.f32 %v2249_v27 }
 0xc3d   : > { %v2257_v61 = vpop.permute.xlu0 %2256 }
 0xc3e   : > { %v2262_v31 = vsel %vm1572_vm2, %v2257_v61, 0 }
 0xc3f   : > { %6520 = vmatpush3.bf16.msra.mxu0 %v2262_v31 }
 0xc40   : > { %v7007_v62 = vpop.eup %7006  ;;  %6531 = vmatprep.subr.bf16.mxu0 %v7637_v45 }
 0xc41   : > { %v2251_v63 = vmul.f32 %v7007_v62, %v7003_v58  ;;  %v2124_v2 = vpop.permute.xlu0 %2123  ;;  %v5900_v58 = vcombine.high %v2523_v54, %v2531_v56 }
 0xc42   : > { %2130 = vst.msk [vmem:[#allocation3] sm:$0xff] %vm2129_vm5, %v2124_v2 }
 0xc43   : > { %v2254_v38 = vpack.c.bf16 %v2251_v63, %v2251_v63 }
 0xc44   : > { %v7009_v3 = vpop.eup %7008 }
 0xc45   : > { %v2253_v6 = vmul.f32 %v7009_v3, %v7005_v59  ;;  %6522 = vmatmul.mubr.msk.bf16.vlgmr.msra.gmra.mrb[24].mxu0 %vm1544_vm3, %v2254_v38  ;;  %v2539_v59 = vld [vmem:[%s8302_s7 + $0x88] sm:$0xff] }
 0xc46   : > { %6547 = vmatprep.mubr.msk.bf16.mxu0 %vm7638_vm0, %v7637_v45  ;;  %6532 = vmatpush3.bf16.msra.mxu0 %v6842_v8  ;;  %v5916_v5 = vcombine.high %v2539_v59, %v2547_v60  ;;  %v5915_v27 = vcombine.low %v2539_v59, %v2547_v60  ;;  %v2562_v8 = vld [vmem:[%s8302_s7 + $0x140] sm:$0xff]  ;;  %v2643_v59 = vld [vmem:[%s8302_s7 + $0x3c8] sm:$0xff] }
 0xc47   : > { %v2255_v7 = vpack.c.bf16 %v2253_v6, %v2253_v6  ;;  %6533 = vmatprep.subr.bf16.mxu0 %v7637_v45 }
 0xc49   : > { %6528 = vmatmul.mubr.msk.bf16.vlgmr.msra.gmra.mrb[40].mxu1 %vm1544_vm3, %v2255_v7  ;;  %v2554_v7 = vld [vmem:[%s8302_s7 + $0x100] sm:$0xff] }
 0xc4a   : > { %3406 = vmatprep.mubr.bf16.mxu1 %v7636_v44  ;;  %6534 = vmatpush3.bf16.msra.mxu0 %v6843_v9  ;;  %v2555_v9 = vld [vmem:[%s8302_s7 + $0x108] sm:$0xff] }
 0xc4b   : > { %6535 = vmatprep.subr.bf16.mxu0 %v7637_v45  ;;  %3375 = vmatpush1.bf16.msra.mxu1 %v5897_v4  ;;  %v2627_v4 = vld [vmem:[%s8302_s7 + $0x348] sm:$0xff] }
 0xc4c   : > { %3376 = vmatprep.subr.bf16.mxu1 %v5914_v34  ;;  %v5995_v56 = vcombine.low %v2619_v53, %v2627_v4  ;;  %v5996_v57 = vcombine.high %v2619_v53, %v2627_v4 }
 0xc4e   : > { %6536 = vmatpush3.bf16.msra.mxu0 %v6844_v11  ;;  %v5930_v11 = vcombine.high %v2554_v7, %v2562_v8 }
 0xc4f   : > { %6537 = vmatprep.subr.bf16.mxu0 %v7637_v45  ;;  %3377 = vmatpush1.bf16.msra.mxu1 %v5913_v23 }
 0xc50   : > { %3378 = vmatprep.subr.bf16.mxu1 %v5930_v11 }
 0xc52   : > { %6538 = vmatpush3.bf16.msra.mxu0 %v6845_v14  ;;  %v2563_v14 = vld [vmem:[%s8302_s7 + $0x148] sm:$0xff] }
 0xc53   : > { %6539 = vmatprep.subr.bf16.mxu0 %v7637_v45 }
 0xc56   : > { %6540 = vmatpush3.bf16.msra.mxu0 %v6846_v15  ;;  %v5929_v15 = vcombine.low %v2554_v7, %v2562_v8 }
 0xc57   : > { %6541 = vmatprep.subr.bf16.mxu0 %v7637_v45 }
 0xc58   : > { %3379 = vmatpush1.bf16.msra.mxu1 %v5929_v15 }
 0xc5a   : > { %6542 = vmatpush3.bf16.msra.mxu0 %v6847_v28  ;;  %v5931_v28 = vcombine.low %v2555_v9, %v2563_v14 }
 0xc5b   : > { %6543 = vmatprep.subr.bf16.mxu0 %v7637_v45 }
 0xc5e   : > { %6544 = vmatpush3.bf16.msra.mxu0 %v6848_v17  ;;  %v5932_v17 = vcombine.high %v2555_v9, %v2563_v14 }
 0xc5f   : > { %6545 = vmatprep.subr.bf16.mxu0 %v7637_v45 }
 0xc62   : > { %6546 = vmatpush3.bf16.msra.mxu0 %v6849_v18  ;;  %v2570_v18 = vld [vmem:[%s8302_s7 + $0x180] sm:$0xff] }
 0xc63   : > { %3417 = vmatprep.subr.bf16.mxu0 %v5900_v58  ;;  %v2635_v58 = vld [vmem:[%s8302_s7 + $0x388] sm:$0xff] }
 0xc64   : > { %v6012_v23 = vcombine.high %v2635_v58, %v2643_v59 }
 0xd18   : > { %v2298_v19 = vpop.f32.mrb[24].mxu0 }
 0xd19   : > { %2354 = vrot.lane.b32.xlu0 %v2298_v19, %s7639_s25  ;;  %v6523_v20 = vpop.f32.mrb[25].mxu0  ;;  %v2578_v19 = vld [vmem:[%s8302_s7 + $0x1c0] sm:$0xff] }
 0xd1a   : > { %v2301_v21 = vpop.f32.mrb[26].mxu0  ;;  %v2571_v20 = vld [vmem:[%s8302_s7 + $0x188] sm:$0xff] }
 0xd1b   : > { %v6524_v22 = vpop.f32.mrb[27].mxu0  ;;  %v5946_v21 = vcombine.high %v2570_v18, %v2578_v19 }
 0xd1c   : > { %v2346_v24 = vpop.f32.mrb[40].mxu1  ;;  %v2579_v22 = vld [vmem:[%s8302_s7 + $0x1c8] sm:$0xff] }
 0xd1d   : > { %2356 = vrot.lane.b32.xlu1 %v2346_v24, %s7639_s25  ;;  %v6529_v25 = vpop.f32.mrb[41].mxu1  ;;  %v5945_v24 = vcombine.low %v2570_v18, %v2578_v19  ;;  %3380 = vmatprep.subr.bf16.mxu1 %v5946_v21  ;;  %v5895_v19 = vld [vmem:[%s953_s12] ss:$0 sm:$0xff] }
 0xd1e   : > { %v2349_v29 = vpop.f32.mrb[42].mxu1  ;;  %v5947_v25 = vcombine.low %v2571_v20, %v2579_v22 }
 0xd1f   : > { %v6530_v30 = vpop.f32.mrb[43].mxu1  ;;  %v5948_v29 = vcombine.high %v2571_v20, %v2579_v22  ;;  %3381 = vmatpush1.bf16.msra.mxu1 %v5945_v24  ;;  %v5896_v24 = vld [vmem:[%s961_s19] ss:$0 sm:$0xff] }
 0xd20   : > { %v2586_v30 = vld [vmem:[%s8302_s7 + $0x200] sm:$0xff] }
 0xd8b   : > { %v2355_v33 = vpop.permute.xlu0 %2354 }
 0xd8c   : > { %2361 = vst.msk [vmem:[#allocation3] sm:$0xff] %vm2360_vm6, %v2355_v33  ;;  %v2594_v33 = vld [vmem:[%s8302_s7 + $0x240] sm:$0xff] }
 0xd8f   : > { %v2357_v35 = vpop.permute.xlu1 %2356 }
 0xd90   : > { %2362 = vst.msk [vmem:[#allocation3 + $0x8] sm:$0xff] %vm2360_vm6, %v2357_v35  ;;  %v2587_v35 = vld [vmem:[%s8302_s7 + $0x208] sm:$0xff] }
 0xd93   : > { %v2363_v45 = vld [vmem:[#allocation3] sm:$0xff] }
 0xd97   : > { %v2364_v36 = vld [vmem:[#allocation3 + $0x8] sm:$0xff] }
 0xd98   : > { %v2365_v37 = vpack.c.bf16 %v2364_v36, %v2363_v45  ;;  %v5962_v45 = vcombine.high %v2586_v30, %v2594_v33  ;;  %v2595_v36 = vld [vmem:[%s8302_s7 + $0x248] sm:$0xff] }
 0xd9a   : > { %6548 = vmatmul.mubr.bf16.vlgmr.msra.gmra.mrb[28].mxu0 %v2365_v37  ;;  %v5961_v37 = vcombine.low %v2586_v30, %v2594_v33  ;;  %3382 = vmatprep.subr.bf16.mxu1 %v5962_v45  ;;  %v2548_v30 = vld [vmem:[%s8302_s7 + $0xd0] sm:$0xff]  ;;  %v2541_v33 = vld [vmem:[%s8302_s7 + $0x98] sm:$0xff] }
 0xd9b   : > { %3449 = vmatprep.mubr.bf16.mxu0 %v7636_v44  ;;  %3418 = vmatpush1.bf16.msra.mxu0 %v5899_v26  ;;  %v2642_v26 = vld [vmem:[%s8302_s7 + $0x3c0] sm:$0xff] }
 0xd9c   : > { %3419 = vmatprep.subr.bf16.mxu0 %v5916_v5  ;;  %3383 = vmatpush1.bf16.msra.mxu1 %v5961_v37  ;;  %v6010_v34 = vcombine.high %v2634_v10, %v2642_v26  ;;  %v6009_v60 = vcombine.low %v2634_v10, %v2642_v26  ;;  %v6011_v5 = vcombine.low %v2635_v58, %v2643_v59  ;;  %v2589_v10 = vld [vmem:[%s8302_s7 + $0x218] sm:$0xff] }
 0xd9d   : > { %v2597_v26 = vld [vmem:[%s8302_s7 + $0x258] sm:$0xff] }
 0xd9f   : > { %3420 = vmatpush1.bf16.msra.mxu0 %v5915_v27  ;;  %v2524_v27 = vld [vmem:[%s8302_s7 + $0x10] sm:$0xff] }
 0xda0   : > { %3421 = vmatprep.subr.bf16.mxu0 %v5932_v17 }
 0xda3   : > { %3422 = vmatpush1.bf16.msra.mxu0 %v5931_v28 }
 0xda4   : > { %3423 = vmatprep.subr.bf16.mxu0 %v5948_v29  ;;  %v2540_v29 = vld [vmem:[%s8302_s7 + $0x90] sm:$0xff] }
 0xda5   : > { %v5918_v37 = vcombine.high %v2540_v29, %v2548_v30 }
 0xda7   : > { %3424 = vmatpush1.bf16.msra.mxu0 %v5947_v25 }
 0xe6d   : > { %v2471_v40 = vpop.f32.mrb[28].mxu0 }
 0xe6e   : > { %v2472_v41 = vadd.f32 %v5886_v39, %v2471_v40  ;;  %v6549_v43 = vpop.f32.mrb[29].mxu0  ;;  %v5964_v40 = vcombine.high %v2587_v35, %v2595_v36 }
 0xe6f   : > { %v2474_v46 = vpop.f32.mrb[30].mxu0  ;;  %v2610_v43 = vld [vmem:[%s8302_s7 + $0x2c0] sm:$0xff] }
 0xe70   : > { %v2475_v47 = vadd.f32 %v5886_v39, %v2474_v46  ;;  %v6550_v48 = vpop.f32.mrb[31].mxu0  ;;  %v2478_v50 = vadd.f32 %v7018_v49, %v2472_v41  ;;  %v5963_v39 = vcombine.low %v2587_v35, %v2595_v36  ;;  %3425 = vmatprep.subr.bf16.mxu0 %v5964_v40  ;;  %v2602_v41 = vld [vmem:[%s8302_s7 + $0x280] sm:$0xff]  ;;  %v2603_v46 = vld [vmem:[%s8302_s7 + $0x288] sm:$0xff]  ;;  %v2549_v35 = vld [vmem:[%s8302_s7 + $0xd8] sm:$0xff] }
 0xe71   : > { %v2611_v48 = vld [vmem:[%s8302_s7 + $0x2c8] sm:$0xff]  ;;  %v5977_v49 = vcombine.low %v2602_v41, %v2610_v43  ;;  %v2564_v40 = vld [vmem:[%s8302_s7 + $0x150] sm:$0xff] }
 0xe72   : > { %2482 = vadd.xlane.f32.xlu0 %v2478_v50  ;;  %v2479_v42 = vadd.f32 %v7019_v52, %v2475_v47  ;;  %3426 = vmatpush1.bf16.msra.mxu0 %v5963_v39  ;;  %v5978_v47 = vcombine.high %v2602_v41, %v2610_v43  ;;  %v5980_v52 = vcombine.high %v2603_v46, %v2611_v48  ;;  %v2557_v41 = vld [vmem:[%s8302_s7 + $0x118] sm:$0xff] }
 0xe73   : > { %v5920_v39 = vcombine.high %v2541_v33, %v2549_v35  ;;  %v2565_v43 = vld [vmem:[%s8302_s7 + $0x158] sm:$0xff] }
 0xe74   : > { %2484 = vadd.xlane.f32.xlu1 %v2479_v42  ;;  %3384 = vmatprep.subr.bf16.mxu1 %v5978_v47  ;;  %v5919_v47 = vcombine.low %v2541_v33, %v2549_v35  ;;  %v2527_v33 = vld [vmem:[%s8302_s7 + $0x28] sm:$0xff] }
 0xe75   : > { %3427 = vmatprep.subr.bf16.mxu0 %v5980_v52  ;;  %3385 = vmatpush1.bf16.msra.mxu1 %v5977_v49  ;;  %v5936_v49 = vcombine.high %v2557_v41, %v2565_v43  ;;  %v2580_v52 = vld [vmem:[%s8302_s7 + $0x1d0] sm:$0xff]  ;;  %v2535_v35 = vld [vmem:[%s8302_s7 + $0x68] sm:$0xff] }
 0xeff   : > { %v2483_v61 = vpop.xlane.xlu0 %2482 }
 0xf00   : > { %v2487_v31 = vmul.f32 0.0078125, %v2483_v61  ;;  %v2532_v61 = vld [vmem:[%s8302_s7 + $0x50] sm:$0xff] }
 0xf01   : > { %v2485_v62 = vpop.xlane.xlu1 %2484 }
 0xf02   : > { %v8619_v63 = vsub.f32 %v2478_v50, %v2487_v31  ;;  %v2488_v2 = vmul.f32 0.0078125, %v2485_v62  ;;  %v5979_v50 = vcombine.low %v2603_v46, %v2611_v48  ;;  %v2525_v31 = vld [vmem:[%s8302_s7 + $0x18] sm:$0xff]  ;;  %v5901_v62 = vcombine.low %v2524_v27, %v2532_v61 }
 0xf03   : > { %v5917_v46 = vcombine.low %v2540_v29, %v2548_v30  ;;  %v2526_v29 = vld [vmem:[%s8302_s7 + $0x20] sm:$0xff] }
 0xf04   : > { %v8621_v38 = vsub.f32 %v2479_v42, %v2488_v2  ;;  %v2491_v3 = vmul.f32 %v8619_v63, %v8619_v63  ;;  %v2618_v42 = vld [vmem:[%s8302_s7 + $0x300] sm:$0xff]  ;;  %3428 = vmatpush1.bf16.msra.mxu0 %v5979_v50  ;;  %v5902_v2 = vcombine.high %v2524_v27, %v2532_v61  ;;  %v2572_v50 = vld [vmem:[%s8302_s7 + $0x190] sm:$0xff]  ;;  %v2605_v27 = vld [vmem:[%s8302_s7 + $0x298] sm:$0xff] }
 0xf05   : > { %v5994_v54 = vcombine.high %v2618_v42, %v2626_v51  ;;  %v5993_v55 = vcombine.low %v2618_v42, %v2626_v51  ;;  %3429 = vmatprep.subr.bf16.mxu0 %v5996_v57  ;;  %v2573_v42 = vld [vmem:[%s8302_s7 + $0x198] sm:$0xff]  ;;  %v5950_v4 = vcombine.high %v2572_v50, %v2580_v52  ;;  %v2596_v57 = vld [vmem:[%s8302_s7 + $0x250] sm:$0xff]  ;;  %v5949_v58 = vcombine.low %v2572_v50, %v2580_v52  ;;  %v2534_v30 = vld [vmem:[%s8302_s7 + $0x60] sm:$0xff] }
 0xf06   : > { %2493 = vadd.xlane.f32.xlu0 %v2491_v3  ;;  %v2492_v6 = vmul.f32 %v8621_v38, %v8621_v38  ;;  %v2533_v3 = vld [vmem:[%s8302_s7 + $0x58] sm:$0xff] }
 0xf07   : > { %3386 = vmatprep.subr.bf16.mxu1 %v5994_v54  ;;  %v5904_v7 = vcombine.high %v2525_v31, %v2533_v3  ;;  %v2581_v51 = vld [vmem:[%s8302_s7 + $0x1d8] sm:$0xff]  ;;  %v5935_v54 = vcombine.low %v2557_v41, %v2565_v43  ;;  %v2542_v41 = vld [vmem:[%s8302_s7 + $0xa0] sm:$0xff] }
 0xf08   : > { %3387 = vmatpush1.bf16.msra.mxu1 %v5993_v55  ;;  %3430 = vmatpush1.bf16.msra.mxu0 %v5995_v56  ;;  %v5952_v55 = vcombine.high %v2573_v42, %v2581_v51  ;;  %v2588_v56 = vld [vmem:[%s8302_s7 + $0x210] sm:$0xff]  ;;  %v2613_v61 = vld [vmem:[%s8302_s7 + $0x2d8] sm:$0xff]  ;;  %v2550_v43 = vld [vmem:[%s8302_s7 + $0xe0] sm:$0xff] }
 0xf09   : > { %3388 = vmatprep.subr.bf16.mxu1 %v6010_v34  ;;  %3431 = vmatprep.subr.bf16.mxu0 %v6012_v23  ;;  %v5951_v34 = vcombine.low %v2573_v42, %v2581_v51  ;;  %v5966_v59 = vcombine.high %v2588_v56, %v2596_v57  ;;  %v2612_v23 = vld [vmem:[%s8302_s7 + $0x2d0] sm:$0xff]  ;;  %v5922_v50 = vcombine.high %v2542_v41, %v2550_v43  ;;  %v2558_v42 = vld [vmem:[%s8302_s7 + $0x120] sm:$0xff] }
 0xf0a   : > { %2495 = vadd.xlane.f32.xlu0 %v2492_v6  ;;  %v5903_v6 = vcombine.low %v2525_v31, %v2533_v3  ;;  %v5965_v31 = vcombine.low %v2588_v56, %v2596_v57  ;;  %v5984_v3 = vcombine.high %v2605_v27, %v2613_v61  ;;  %v2566_v51 = vld [vmem:[%s8302_s7 + $0x160] sm:$0xff] }
 0xf0b   : > { %v5938_v56 = vcombine.high %v2558_v42, %v2566_v51 }
 0xf0c   : > { %3389 = vmatpush1.bf16.msra.mxu1 %v6009_v60  ;;  %3432 = vmatpush1.bf16.msra.mxu0 %v6011_v5  ;;  %v5968_v60 = vcombine.high %v2589_v10, %v2597_v26  ;;  %v2604_v5 = vld [vmem:[%s8302_s7 + $0x290] sm:$0xff] }
 0xf0d   : > { %3460 = vmatprep.subr.bf16.mxu1 %v5902_v2  ;;  %3503 = vmatprep.subr.bf16.mxu0 %v5904_v7  ;;  %v5982_v2 = vcombine.high %v2604_v5, %v2612_v23  ;;  %v2628_v7 = vld [vmem:[%s8302_s7 + $0x350] sm:$0xff] }
 0xf93   : > { %v2494_v8 = vpop.xlane.xlu0 %2493 }
 0xf94   : > { %v2497_v9 = vmul.f32 0.0078125, %v2494_v8  ;;  %v2621_v8 = vld [vmem:[%s8302_s7 + $0x318] sm:$0xff] }
 0xf96   : > { %v2499_v11 = vadd.f32 1e-05, %v2497_v9  ;;  %v2629_v9 = vld [vmem:[%s8302_s7 + $0x358] sm:$0xff] }
 0xf97   : > { %v2496_v14 = vpop.xlane.xlu0 %2495 }
 0xf98   : > { %7010 = vrsqrt.f32 %v2499_v11  ;;  %v2498_v15 = vmul.f32 0.0078125, %v2496_v14  ;;  %v5981_v11 = vcombine.low %v2604_v5, %v2612_v23  ;;  %v5983_v14 = vcombine.low %v2605_v27, %v2613_v61  ;;  %v2590_v27 = vld [vmem:[%s8302_s7 + $0x220] sm:$0xff] }
 0xf99   : > { %v2598_v61 = vld [vmem:[%s8302_s7 + $0x260] sm:$0xff] }
 0xf9a   : > { %v2500_v28 = vadd.f32 1e-05, %v2498_v15 }
 0xf9c   : > { %7012 = vrsqrt.f32 %v2500_v28  ;;  %v6000_v28 = vcombine.high %v2621_v8, %v2629_v9 }
 0xfa2   : > { %v7011_v17 = vpop.eup %7010 }
 0xfa3   : > { %v2503_v18 = vmul.f32 %v7011_v17, %v8619_v63  ;;  %v2636_v17 = vld [vmem:[%s8302_s7 + $0x390] sm:$0xff] }
 0xfa5   : > { %v2511_v21 = vmul.f32 %v5895_v19, %v2503_v18  ;;  %v2644_v18 = vld [vmem:[%s8302_s7 + $0x3d0] sm:$0xff] }
 0xfa6   : > { %v7013_v20 = vpop.eup %7012 }
 0xfa7   : > { %v2504_v22 = vmul.f32 %v7013_v20, %v8621_v38  ;;  %v8665_v45 = vadd.f32 %v5896_v24, %v2511_v21  ;;  %v2556_v38 = vld [vmem:[%s8302_s7 + $0x110] sm:$0xff]  ;;  %v2645_v20 = vld [vmem:[%s8302_s7 + $0x3d8] sm:$0xff] }
 0xfa8   : > { %v5934_v48 = vcombine.high %v2556_v38, %v2564_v40  ;;  %v5933_v53 = vcombine.low %v2556_v38, %v2564_v40  ;;  %v5906_v38 = vcombine.high %v2526_v29, %v2534_v30  ;;  %v5908_v40 = vcombine.high %v2527_v33, %v2535_v35 }
 0xfa9   : > { %v2512_v25 = vmul.f32 %v5895_v19, %v2504_v22  ;;  %v2637_v19 = vld [vmem:[%s8302_s7 + $0x398] sm:$0xff]  ;;  %v5999_v22 = vcombine.low %v2621_v8, %v2629_v9  ;;  %v2606_v8 = vld [vmem:[%s8302_s7 + $0x2a0] sm:$0xff] }
 0xfaa   : > { %v2614_v9 = vld [vmem:[%s8302_s7 + $0x2e0] sm:$0xff] }
 0xfab   : > { %v8667_v63 = vadd.f32 %v5896_v24, %v2512_v25  ;;  %v6014_v24 = vcombine.high %v2636_v17, %v2644_v18  ;;  %v6016_v25 = vcombine.high %v2637_v19, %v2645_v20 }
 0xfad   : > { %v8671_v36 = vpack.c.bf16 %v8667_v63, %v8665_v45 }
 0xfaf   : > { %3407 = vmatmul.mubr.bf16.vlgmr.msra.gmra.mrb[44].mxu1 %v8671_v36  ;;  %3450 = vmatmul.mubr.bf16.vlgmr.msra.gmra.mrb[32].mxu0 %v8671_v36 }
 0xfb0   : > { %3461 = vmatpush1.bf16.msra.mxu1 %v5901_v62  ;;  %3504 = vmatpush1.bf16.msra.mxu0 %v5903_v6  ;;  %v5967_v62 = vcombine.low %v2589_v10, %v2597_v26  ;;  %v2620_v6 = vld [vmem:[%s8302_s7 + $0x310] sm:$0xff]  ;;  %v2574_v10 = vld [vmem:[%s8302_s7 + $0x1a0] sm:$0xff] }
 0xfb1   : > { %3462 = vmatprep.subr.bf16.mxu1 %v5918_v37  ;;  %3505 = vmatprep.subr.bf16.mxu0 %v5920_v39  ;;  %v5998_v15 = vcombine.high %v2620_v6, %v2628_v7  ;;  %v5997_v21 = vcombine.low %v2620_v6, %v2628_v7  ;;  %v6013_v37 = vcombine.low %v2636_v17, %v2644_v18  ;;  %v2582_v26 = vld [vmem:[%s8302_s7 + $0x1e0] sm:$0xff] }
 0xfb2   : > { %3492 = vmatprep.mubr.bf16.mxu1 %v7636_v44  ;;  %3535 = vmatprep.mubr.bf16.mxu0 %v7636_v44  ;;  %v6015_v39 = vcombine.low %v2637_v19, %v2645_v20  ;;  %v5954_v5 = vcombine.high %v2574_v10, %v2582_v26  ;;  %v5970_v6 = vcombine.high %v2590_v27, %v2598_v61  ;;  %v2622_v19 = vld [vmem:[%s8302_s7 + $0x320] sm:$0xff] }
 0xfb3   : > { %v5986_v17 = vcombine.high %v2606_v8, %v2614_v9  ;;  %v2630_v20 = vld [vmem:[%s8302_s7 + $0x360] sm:$0xff] }
 0xfb4   : > { %3463 = vmatpush1.bf16.msra.mxu1 %v5917_v46  ;;  %3506 = vmatpush1.bf16.msra.mxu0 %v5919_v47  ;;  %v2543_v46 = vld [vmem:[%s8302_s7 + $0xa8] sm:$0xff] }
 0xfb5   : > { %3464 = vmatprep.subr.bf16.mxu1 %v5934_v48  ;;  %3507 = vmatprep.subr.bf16.mxu0 %v5936_v49  ;;  %v2551_v47 = vld [vmem:[%s8302_s7 + $0xe8] sm:$0xff]  ;;  %v5905_v48 = vcombine.low %v2526_v29, %v2534_v30  ;;  %v5907_v49 = vcombine.low %v2527_v33, %v2535_v35  ;;  %v6002_v29 = vcombine.high %v2622_v19, %v2630_v20  ;;  %v2638_v33 = vld [vmem:[%s8302_s7 + $0x3a0] sm:$0xff] }
 0xfb6   : > { %v5924_v52 = vcombine.high %v2543_v46, %v2551_v47  ;;  %v2646_v35 = vld [vmem:[%s8302_s7 + $0x3e0] sm:$0xff] }
 0xfb8   : > { %3465 = vmatpush1.bf16.msra.mxu1 %v5933_v53  ;;  %3508 = vmatpush1.bf16.msra.mxu0 %v5935_v54  ;;  %v2559_v53 = vld [vmem:[%s8302_s7 + $0x128] sm:$0xff] }
 0xfb9   : > { %3466 = vmatprep.subr.bf16.mxu1 %v5950_v4  ;;  %3509 = vmatprep.subr.bf16.mxu0 %v5952_v55  ;;  %v2567_v54 = vld [vmem:[%s8302_s7 + $0x168] sm:$0xff]  ;;  %v5921_v4 = vcombine.low %v2542_v41, %v2550_v43  ;;  %v5923_v55 = vcombine.low %v2543_v46, %v2551_v47  ;;  %v6018_v41 = vcombine.high %v2638_v33, %v2646_v35  ;;  %v2528_v46 = vld [vmem:[%s8302_s7 + $0x30] sm:$0xff] }
 0xfba   : > { %v5940_v57 = vcombine.high %v2559_v53, %v2567_v54  ;;  %v2536_v47 = vld [vmem:[%s8302_s7 + $0x70] sm:$0xff] }
 0xfbc   : > { %3467 = vmatpush1.bf16.msra.mxu1 %v5949_v58  ;;  %3510 = vmatpush1.bf16.msra.mxu0 %v5951_v34  ;;  %v2575_v58 = vld [vmem:[%s8302_s7 + $0x1a8] sm:$0xff] }
 0xfbd   : > { %3468 = vmatprep.subr.bf16.mxu1 %v5966_v59  ;;  %3511 = vmatprep.subr.bf16.mxu0 %v5968_v60  ;;  %v2583_v34 = vld [vmem:[%s8302_s7 + $0x1e8] sm:$0xff]  ;;  %v5937_v59 = vcombine.low %v2558_v42, %v2566_v51  ;;  %v5939_v60 = vcombine.low %v2559_v53, %v2567_v54  ;;  %v5910_v42 = vcombine.high %v2528_v46, %v2536_v47  ;;  %v2544_v53 = vld [vmem:[%s8302_s7 + $0xb0] sm:$0xff] }
 0xfbe   : > { %v5956_v23 = vcombine.high %v2575_v58, %v2583_v34  ;;  %v2552_v54 = vld [vmem:[%s8302_s7 + $0xf0] sm:$0xff] }
 0xfc0   : > { %3469 = vmatpush1.bf16.msra.mxu1 %v5965_v31  ;;  %3512 = vmatpush1.bf16.msra.mxu0 %v5967_v62  ;;  %v2591_v31 = vld [vmem:[%s8302_s7 + $0x228] sm:$0xff] }
 0xfc1   : > { %3470 = vmatprep.subr.bf16.mxu1 %v5982_v2  ;;  %3513 = vmatprep.subr.bf16.mxu0 %v5984_v3  ;;  %v2599_v62 = vld [vmem:[%s8302_s7 + $0x268] sm:$0xff]  ;;  %v5953_v2 = vcombine.low %v2574_v10, %v2582_v26  ;;  %v5955_v3 = vcombine.low %v2575_v58, %v2583_v34  ;;  %v5926_v10 = vcombine.high %v2544_v53, %v2552_v54  ;;  %v2560_v58 = vld [vmem:[%s8302_s7 + $0x130] sm:$0xff] }
 0xfc2   : > { %v5972_v7 = vcombine.high %v2591_v31, %v2599_v62  ;;  %v2568_v34 = vld [vmem:[%s8302_s7 + $0x170] sm:$0xff] }
 0xfc4   : > { %3471 = vmatpush1.bf16.msra.mxu1 %v5981_v11  ;;  %3514 = vmatpush1.bf16.msra.mxu0 %v5983_v14  ;;  %v2607_v11 = vld [vmem:[%s8302_s7 + $0x2a8] sm:$0xff] }
 0xfc5   : > { %3472 = vmatprep.subr.bf16.mxu1 %v5998_v15  ;;  %3515 = vmatprep.subr.bf16.mxu0 %v6000_v28  ;;  %v2615_v14 = vld [vmem:[%s8302_s7 + $0x2e8] sm:$0xff]  ;;  %v5969_v15 = vcombine.low %v2590_v27, %v2598_v61  ;;  %v5971_v28 = vcombine.low %v2591_v31, %v2599_v62  ;;  %v5942_v27 = vcombine.high %v2560_v58, %v2568_v34  ;;  %v2576_v31 = vld [vmem:[%s8302_s7 + $0x1b0] sm:$0xff] }
 0xfc6   : > { %v5988_v18 = vcombine.high %v2607_v11, %v2615_v14  ;;  %v2584_v62 = vld [vmem:[%s8302_s7 + $0x1f0] sm:$0xff] }
 0xfc8   : > { %3473 = vmatpush1.bf16.msra.mxu1 %v5997_v21  ;;  %3516 = vmatpush1.bf16.msra.mxu0 %v5999_v22  ;;  %v2623_v21 = vld [vmem:[%s8302_s7 + $0x328] sm:$0xff] }
 0xfc9   : > { %3474 = vmatprep.subr.bf16.mxu1 %v6014_v24  ;;  %3517 = vmatprep.subr.bf16.mxu0 %v6016_v25  ;;  %v2631_v22 = vld [vmem:[%s8302_s7 + $0x368] sm:$0xff]  ;;  %v5985_v24 = vcombine.low %v2606_v8, %v2614_v9  ;;  %v5987_v25 = vcombine.low %v2607_v11, %v2615_v14  ;;  %v5958_v8 = vcombine.high %v2576_v31, %v2584_v62  ;;  %v2592_v11 = vld [vmem:[%s8302_s7 + $0x230] sm:$0xff] }
 0xfca   : > { %v6004_v30 = vcombine.high %v2623_v21, %v2631_v22  ;;  %v2600_v14 = vld [vmem:[%s8302_s7 + $0x270] sm:$0xff] }
 0xfcc   : > { %3475 = vmatpush1.bf16.msra.mxu1 %v6013_v37  ;;  %3518 = vmatpush1.bf16.msra.mxu0 %v6015_v39  ;;  %v2639_v37 = vld [vmem:[%s8302_s7 + $0x3a8] sm:$0xff] }
 0xfcd   : > { %3546 = vmatprep.subr.bf16.mxu1 %v5906_v38  ;;  %3589 = vmatprep.subr.bf16.mxu0 %v5908_v40  ;;  %v2647_v39 = vld [vmem:[%s8302_s7 + $0x3e8] sm:$0xff]  ;;  %v6001_v38 = vcombine.low %v2622_v19, %v2630_v20  ;;  %v6003_v40 = vcombine.low %v2623_v21, %v2631_v22  ;;  %v2608_v20 = vld [vmem:[%s8302_s7 + $0x2b0] sm:$0xff]  ;;  %v2609_v22 = vld [vmem:[%s8302_s7 + $0x2b8] sm:$0xff] }
 0xfce   : > { %v6020_v43 = vcombine.high %v2639_v37, %v2647_v39  ;;  %v2616_v21 = vld [vmem:[%s8302_s7 + $0x2f0] sm:$0xff] }
 0xfcf   : > { %3493 = vmatmul.mubr.bf16.vlgmr.msra.gmra.mrb[48].mxu1 %v8671_v36  ;;  %3536 = vmatmul.mubr.bf16.vlgmr.msra.gmra.mrb[36].mxu0 %v8671_v36 }
 0xfd0   : > { %3547 = vmatpush1.bf16.msra.mxu1 %v5905_v48  ;;  %3590 = vmatpush1.bf16.msra.mxu0 %v5907_v49  ;;  %v2529_v48 = vld [vmem:[%s8302_s7 + $0x38] sm:$0xff] }
 0xfd1   : > { %3548 = vmatprep.subr.bf16.mxu1 %v5922_v50  ;;  %3591 = vmatprep.subr.bf16.mxu0 %v5924_v52  ;;  %v2537_v49 = vld [vmem:[%s8302_s7 + $0x78] sm:$0xff]  ;;  %v6017_v50 = vcombine.low %v2638_v33, %v2646_v35  ;;  %v6019_v52 = vcombine.low %v2639_v37, %v2647_v39  ;;  %v2624_v35 = vld [vmem:[%s8302_s7 + $0x330] sm:$0xff] }
 0xfd2   : > { %3578 = vmatprep.mubr.bf16.mxu1 %v7636_v44  ;;  %3621 = vmatprep.mubr.bf16.mxu0 %v7636_v44  ;;  %v5912_v51 = vcombine.high %v2529_v48, %v2537_v49  ;;  %v2632_v37 = vld [vmem:[%s8302_s7 + $0x370] sm:$0xff]  ;;  %v2625_v39 = vld [vmem:[%s8302_s7 + $0x338] sm:$0xff] }
 0xfd4   : > { %3549 = vmatpush1.bf16.msra.mxu1 %v5921_v4  ;;  %3592 = vmatpush1.bf16.msra.mxu0 %v5923_v55  ;;  %v2545_v4 = vld [vmem:[%s8302_s7 + $0xb8] sm:$0xff] }
 0xfd5   : > { %3550 = vmatprep.subr.bf16.mxu1 %v5938_v56  ;;  %3593 = vmatprep.subr.bf16.mxu0 %v5940_v57  ;;  %v2553_v55 = vld [vmem:[%s8302_s7 + $0xf8] sm:$0xff]  ;;  %v5909_v56 = vcombine.low %v2528_v46, %v2536_v47  ;;  %v5911_v57 = vcombine.low %v2529_v48, %v2537_v49  ;;  %v2640_v47 = vld [vmem:[%s8302_s7 + $0x3b0] sm:$0xff] }
 0xfd6   : > { %v5928_v26 = vcombine.high %v2545_v4, %v2553_v55  ;;  %v2648_v48 = vld [vmem:[%s8302_s7 + $0x3f0] sm:$0xff]  ;;  %v2641_v49 = vld [vmem:[%s8302_s7 + $0x3b8] sm:$0xff] }
 0xfd8   : > { %3551 = vmatpush1.bf16.msra.mxu1 %v5937_v59  ;;  %3594 = vmatpush1.bf16.msra.mxu0 %v5939_v60  ;;  %v2561_v59 = vld [vmem:[%s8302_s7 + $0x138] sm:$0xff] }
 0xfd9   : > { %3552 = vmatprep.subr.bf16.mxu1 %v5954_v5  ;;  %3595 = vmatprep.subr.bf16.mxu0 %v5956_v23  ;;  %v2569_v60 = vld [vmem:[%s8302_s7 + $0x178] sm:$0xff]  ;;  %v5925_v5 = vcombine.low %v2544_v53, %v2552_v54  ;;  %v5927_v23 = vcombine.low %v2545_v4, %v2553_v55  ;;  %v6021_v54 = vcombine.low %v2640_v47, %v2648_v48  ;;  %v6850_v55 = vld [vmem:[%s8312_s29 + $0x40] sm:$0xff]  }
 0xfda   : > { %v5944_v61 = vcombine.high %v2561_v59, %v2569_v60 }
 0xfdc   : > { %3553 = vmatpush1.bf16.msra.mxu1 %v5953_v2  ;;  %3596 = vmatpush1.bf16.msra.mxu0 %v5955_v3  ;;  %v2577_v2 = vld [vmem:[%s8302_s7 + $0x1b8] sm:$0xff] }
 0xfdd   : > { %3554 = vmatprep.subr.bf16.mxu1 %v5970_v6  ;;  %3597 = vmatprep.subr.bf16.mxu0 %v5972_v7  ;;  %v2585_v3 = vld [vmem:[%s8302_s7 + $0x1f8] sm:$0xff]  ;;  %v5941_v6 = vcombine.low %v2560_v58, %v2568_v34  ;;  %v5943_v7 = vcombine.low %v2561_v59, %v2569_v60  ;;  %v6855_v58 = vld [vmem:[%s8312_s29 + $0xc8] sm:$0xff]   ;;  %v6858_v60 = vld [vmem:[%s8312_s29 + $0x50] sm:$0xff]  }
 0xfde   : > { %v5960_v9 = vcombine.high %v2577_v2, %v2585_v3  ;;  %v6856_v34 = vld [vmem:[%s8312_s29 + $0x8] sm:$0xff]  }
 0xfdf   : > { %v6857_v59 = vld [vmem:[%s8312_s29 + $0x88] sm:$0xff]  }
 0xfe0   : > { %3555 = vmatpush1.bf16.msra.mxu1 %v5969_v15  ;;  %3598 = vmatpush1.bf16.msra.mxu0 %v5971_v28  ;;  %v2593_v15 = vld [vmem:[%s8302_s7 + $0x238] sm:$0xff] }
 0xfe1   : > { %3556 = vmatprep.subr.bf16.mxu1 %v5986_v17  ;;  %3599 = vmatprep.subr.bf16.mxu0 %v5988_v18  ;;  %v2601_v28 = vld [vmem:[%s8302_s7 + $0x278] sm:$0xff]  ;;  %v5957_v17 = vcombine.low %v2576_v31, %v2584_v62  ;;  %v5974_v18 = vcombine.high %v2592_v11, %v2600_v14 }
 0xfe2   : > { %v5976_v19 = vcombine.high %v2593_v15, %v2601_v28  ;;  %v6864_v31 = vld [vmem:[%s8312_s29 + $0x18] sm:$0xff]  }
 0xfe3   : > { %v6865_v62 = vld [vmem:[%s8312_s29 + $0x98] sm:$0xff]  }
 0xfe4   : > { %3557 = vmatpush1.bf16.msra.mxu1 %v5985_v24  ;;  %3600 = vmatpush1.bf16.msra.mxu0 %v5987_v25  ;;  %v2617_v24 = vld [vmem:[%s8302_s7 + $0x2f8] sm:$0xff]  ;;  %v5973_v25 = vcombine.low %v2592_v11, %v2600_v14  ;;  %v6872_v11 = vld [vmem:[%s8312_s29 + $0x28] sm:$0xff]  }
 0xfe5   : > { %3558 = vmatprep.subr.bf16.mxu1 %v6002_v29  ;;  %3601 = vmatprep.subr.bf16.mxu0 %v6004_v30  ;;  %v5975_v29 = vcombine.low %v2593_v15, %v2601_v28  ;;  %v5990_v30 = vcombine.high %v2608_v20, %v2616_v21  ;;  %v5992_v33 = vcombine.high %v2609_v22, %v2617_v24  ;;  %v6873_v14 = vld [vmem:[%s8312_s29 + $0xa8] sm:$0xff]   ;;  %v6874_v15 = vld [vmem:[%s8312_s29 + $0x70] sm:$0xff]  }
 0xfe6   : > { %v6875_v28 = vld [vmem:[%s8312_s29 + $0xf0] sm:$0xff]  }
 0xfe8   : > { %3559 = vmatpush1.bf16.msra.mxu1 %v6001_v38  ;;  %3602 = vmatpush1.bf16.msra.mxu0 %v6003_v40  ;;  %v2633_v38 = vld [vmem:[%s8302_s7 + $0x378] sm:$0xff]  ;;  %v5989_v40 = vcombine.low %v2608_v20, %v2616_v21 }
 0xfe9   : > { %3560 = vmatprep.subr.bf16.mxu1 %v6018_v41  ;;  %3603 = vmatprep.subr.bf16.mxu0 %v6020_v43  ;;  %v5991_v41 = vcombine.low %v2609_v22, %v2617_v24  ;;  %v6006_v43 = vcombine.high %v2624_v35, %v2632_v37  ;;  %v6008_v46 = vcombine.high %v2625_v39, %v2633_v38  ;;  %v6880_v20 = vld [vmem:[%s8312_s29 + $0x38] sm:$0xff]   ;;  %v6882_v22 = vld [vmem:[%s8312_s29 + $0x140] sm:$0xff]  }
 0xfea   : > { %v6881_v21 = vld [vmem:[%s8312_s29 + $0xb8] sm:$0xff]   ;;  %v6883_v24 = vld [vmem:[%s8312_s29 + $0x1c0] sm:$0xff]  }
 0xfec   : > { %3561 = vmatpush1.bf16.msra.mxu1 %v6017_v50  ;;  %3604 = vmatpush1.bf16.msra.mxu0 %v6019_v52  ;;  %v2649_v50 = vld [vmem:[%s8302_s7 + $0x3f8] sm:$0xff]  ;;  %v6005_v52 = vcombine.low %v2624_v35, %v2632_v37 }
 0xfed   : > { %3632 = vmatprep.subr.bf16.mxu1 %v5910_v42  ;;  %3675 = vmatprep.subr.bf16.mxu0 %v5912_v51  ;;  %v6007_v42 = vcombine.low %v2625_v39, %v2633_v38  ;;  %v6022_v51 = vcombine.high %v2640_v47, %v2648_v48  ;;  %v6024_v53 = vcombine.high %v2641_v49, %v2649_v50 }
 0xfee   : > { %v6023_v4 = vcombine.low %v2641_v49, %v2649_v50 }
 0xfef   : > { %3579 = vmatmul.mubr.bf16.vlgmr.msra.gmra.mrb[52].mxu1 %v8671_v36  ;;  %3622 = vmatmul.mubr.bf16.vlgmr.msra.gmra.mrb[40].mxu0 %v8671_v36 }
 0xff0   : > { %3633 = vmatpush1.bf16.msra.mxu1 %v5909_v56  ;;  %3676 = vmatpush1.bf16.msra.mxu0 %v5911_v57  ;;  %v6851_v56 = vld [vmem:[%s8312_s29 + $0xc0] sm:$0xff]  }
 0xff1   : > { %3634 = vmatprep.subr.bf16.mxu1 %v5926_v10  ;;  %3677 = vmatprep.subr.bf16.mxu0 %v5928_v26  ;;  %v6852_v57 = vld [vmem:[%s8312_s29] sm:$0xff]   ;;  %v6854_v26 = vld [vmem:[%s8312_s29 + $0x48] sm:$0xff]  }
 0xff2   : > { %3664 = vmatprep.mubr.bf16.mxu1 %v7636_v44  ;;  %3707 = vmatprep.mubr.bf16.mxu0 %v7636_v44  ;;  %v5959_v44 = vcombine.low %v2577_v2, %v2585_v3  ;;  %v6853_v10 = vld [vmem:[%s8312_s29 + $0x80] sm:$0xff]  }
 0xff3   : > { %v6866_v2 = vld [vmem:[%s8312_s29 + $0x60] sm:$0xff]  }
 0xff4   : > { %3635 = vmatpush1.bf16.msra.mxu1 %v5925_v5  ;;  %3678 = vmatpush1.bf16.msra.mxu0 %v5927_v23  ;;  %v6859_v5 = vld [vmem:[%s8312_s29 + $0xd0] sm:$0xff]   ;;  %v6867_v3 = vld [vmem:[%s8312_s29 + $0xe0] sm:$0xff]  }
 0xff5   : > { %3636 = vmatprep.subr.bf16.mxu1 %v5942_v27  ;;  %3679 = vmatprep.subr.bf16.mxu0 %v5944_v61  ;;  %v6860_v23 = vld [vmem:[%s8312_s29 + $0x10] sm:$0xff]   ;;  %v6863_v61 = vld [vmem:[%s8312_s29 + $0xd8] sm:$0xff]  }
 0xff6   : > { %v6861_v27 = vld [vmem:[%s8312_s29 + $0x90] sm:$0xff]  }
 0xff8   : > { %3637 = vmatpush1.bf16.msra.mxu1 %v5941_v6  ;;  %3680 = vmatpush1.bf16.msra.mxu0 %v5943_v7  ;;  %v6868_v6 = vld [vmem:[%s8312_s29 + $0x20] sm:$0xff]  }
 0xff9   : > { %3638 = vmatprep.subr.bf16.mxu1 %v5958_v8  ;;  %3681 = vmatprep.subr.bf16.mxu0 %v5960_v9  ;;  %v6869_v7 = vld [vmem:[%s8312_s29 + $0xa0] sm:$0xff]   ;;  %v6870_v8 = vld [vmem:[%s8312_s29 + $0x68] sm:$0xff]  }
 0xffa   : > { %v6871_v9 = vld [vmem:[%s8312_s29 + $0xe8] sm:$0xff]  }
 0xffc   : > { %3639 = vmatpush1.bf16.msra.mxu1 %v5957_v17  ;;  %3682 = vmatpush1.bf16.msra.mxu0 %v5959_v44  ;;  %v6876_v17 = vld [vmem:[%s8312_s29 + $0x30] sm:$0xff]  }
 0xffd   : > { %3640 = vmatprep.subr.bf16.mxu1 %v5974_v18  ;;  %3683 = vmatprep.subr.bf16.mxu0 %v5976_v19  ;;  %v6877_v44 = vld [vmem:[%s8312_s29 + $0xb0] sm:$0xff]   ;;  %v6878_v18 = vld [vmem:[%s8312_s29 + $0x78] sm:$0xff]  }
 0xffe   : > { %v6879_v19 = vld [vmem:[%s8312_s29 + $0xf8] sm:$0xff]  }
0x1000   : > { %3641 = vmatpush1.bf16.msra.mxu1 %v5973_v25  ;;  %3684 = vmatpush1.bf16.msra.mxu0 %v5975_v29  ;;  %v8810_v25 = vld [vmem:[%s8309_s20] sm:$0xff]  ;;  %v2668_v29 = vsub.s32 3, %v8398_v12 }
0x1001   : > { %3642 = vmatprep.subr.bf16.mxu1 %v5990_v30  ;;  %3685 = vmatprep.subr.bf16.mxu0 %v5992_v33  ;;  %v2657_v30 = vrot.slane %v8810_v25, %v8406_v16  ;;  %v2665_v33 = vrot.slane %v8810_v25, %v8432_v32  ;;  %v2661_v35 = vrot.slane %v8810_v25, %v8401_v13 }
0x1002   : > { %v2669_v37 = vrot.slane %v8810_v25, %v2668_v29 }
0x1004   : > { %3643 = vmatpush1.bf16.msra.mxu1 %v5989_v40  ;;  %3686 = vmatpush1.bf16.msra.mxu0 %v5991_v41 }
0x1005   : > { %3644 = vmatprep.subr.bf16.mxu1 %v6006_v43  ;;  %3687 = vmatprep.subr.bf16.mxu0 %v6008_v46 }
0x1008   : > { %3645 = vmatpush1.bf16.msra.mxu1 %v6005_v52  ;;  %3688 = vmatpush1.bf16.msra.mxu0 %v6007_v42 }
0x1009   : > { %3646 = vmatprep.subr.bf16.mxu1 %v6022_v51  ;;  %3689 = vmatprep.subr.bf16.mxu0 %v6024_v53 }
0x100c   : > { %3647 = vmatpush1.bf16.msra.mxu1 %v6021_v54  ;;  %3690 = vmatpush1.bf16.msra.mxu0 %v6023_v4 }
0x100d   : > { %6218 = vmatprep.subr.bf16.mxu1 %v6850_v55  ;;  %6240 = vmatprep.subr.bf16.mxu0 %v6851_v56 }
0x100f   : > { %3665 = vmatmul.mubr.bf16.vlgmr.msra.gmra.mrb[56].mxu1 %v8671_v36  ;;  %3708 = vmatmul.mubr.bf16.vlgmr.msra.gmra.mrb[44].mxu0 %v8671_v36  ;;  %v6862_v36 = vld [vmem:[%s8312_s29 + $0x58] sm:$0xff]  }
0x1010   : > { %6219 = vmatpush3.bf16.msra.mxu1 %v6852_v57  ;;  %6241 = vmatpush3.bf16.msra.mxu0 %v6853_v10 }
0x1011   : > { %6220 = vmatprep.subr.bf16.mxu1 %v6854_v26  ;;  %6242 = vmatprep.subr.bf16.mxu0 %v6855_v58 }
0x1014   : > { %6221 = vmatpush3.bf16.msra.mxu1 %v6856_v34  ;;  %6243 = vmatpush3.bf16.msra.mxu0 %v6857_v59 }
0x1015   : > { %6222 = vmatprep.subr.bf16.mxu1 %v6858_v60  ;;  %6244 = vmatprep.subr.bf16.mxu0 %v6859_v5 }
0x1018   : > { %6223 = vmatpush3.bf16.msra.mxu1 %v6860_v23  ;;  %6245 = vmatpush3.bf16.msra.mxu0 %v6861_v27 }
0x1019   : > { %6224 = vmatprep.subr.bf16.mxu1 %v6862_v36  ;;  %6246 = vmatprep.subr.bf16.mxu0 %v6863_v61  ;;  %v6884_v36 = vld [vmem:[%s8312_s29 + $0x100] sm:$0xff]  }
0x101a   : > { %v6885_v61 = vld [vmem:[%s8312_s29 + $0x180] sm:$0xff]  }
0x101c   : > { %6225 = vmatpush3.bf16.msra.mxu1 %v6864_v31  ;;  %6247 = vmatpush3.bf16.msra.mxu0 %v6865_v62  ;;  %v6886_v31 = vld [vmem:[%s8312_s29 + $0x148] sm:$0xff]  }
0x101d   : > { %6226 = vmatprep.subr.bf16.mxu1 %v6866_v2  ;;  %6248 = vmatprep.subr.bf16.mxu0 %v6867_v3  ;;  %v6887_v62 = vld [vmem:[%s8312_s29 + $0x1c8] sm:$0xff]  }
0x101e   : > { %v6888_v2 = vld [vmem:[%s8312_s29 + $0x108] sm:$0xff]  }
0x101f   : > { %v6889_v3 = vld [vmem:[%s8312_s29 + $0x188] sm:$0xff]  }
0x1020   : > { %6227 = vmatpush3.bf16.msra.mxu1 %v6868_v6  ;;  %6249 = vmatpush3.bf16.msra.mxu0 %v6869_v7  ;;  %v6890_v6 = vld [vmem:[%s8312_s29 + $0x150] sm:$0xff]  }
0x1021   : > { %6228 = vmatprep.subr.bf16.mxu1 %v6870_v8  ;;  %6250 = vmatprep.subr.bf16.mxu0 %v6871_v9  ;;  %v6891_v7 = vld [vmem:[%s8312_s29 + $0x1d0] sm:$0xff]  }
0x1022   : > { %v6892_v8 = vld [vmem:[%s8312_s29 + $0x110] sm:$0xff]  }
0x1023   : > { %v6893_v9 = vld [vmem:[%s8312_s29 + $0x190] sm:$0xff]  }
0x1024   : > { %6229 = vmatpush3.bf16.msra.mxu1 %v6872_v11  ;;  %6251 = vmatpush3.bf16.msra.mxu0 %v6873_v14  ;;  %v6894_v11 = vld [vmem:[%s8312_s29 + $0x158] sm:$0xff]  }
0x1025   : > { %6230 = vmatprep.subr.bf16.mxu1 %v6874_v15  ;;  %6252 = vmatprep.subr.bf16.mxu0 %v6875_v28  ;;  %v6895_v14 = vld [vmem:[%s8312_s29 + $0x1d8] sm:$0xff]  }
0x1026   : > { %v6896_v15 = vld [vmem:[%s8312_s29 + $0x118] sm:$0xff]  }
0x1027   : > { %v6897_v28 = vld [vmem:[%s8312_s29 + $0x198] sm:$0xff]  }
0x1028   : > { %6231 = vmatpush3.bf16.msra.mxu1 %v6876_v17  ;;  %6253 = vmatpush3.bf16.msra.mxu0 %v6877_v44  ;;  %v6898_v17 = vld [vmem:[%s8312_s29 + $0x160] sm:$0xff]  }
0x1029   : > { %6232 = vmatprep.subr.bf16.mxu1 %v6878_v18  ;;  %6254 = vmatprep.subr.bf16.mxu0 %v6879_v19  ;;  %v6899_v44 = vld [vmem:[%s8312_s29 + $0x1e0] sm:$0xff]  }
0x102a   : > { %v6900_v18 = vld [vmem:[%s8312_s29 + $0x120] sm:$0xff]  }
0x102b   : > { %v6901_v19 = vld [vmem:[%s8312_s29 + $0x1a0] sm:$0xff]  }
0x102c   : > { %6233 = vmatpush3.bf16.msra.mxu1 %v6880_v20  ;;  %6255 = vmatpush3.bf16.msra.mxu0 %v6881_v21  ;;  %v6902_v20 = vld [vmem:[%s8312_s29 + $0x168] sm:$0xff]  }
0x102d   : > { %6262 = vmatprep.subr.bf16.mxu1 %v6882_v22  ;;  %6284 = vmatprep.subr.bf16.mxu0 %v6883_v24  ;;  %v6903_v21 = vld [vmem:[%s8312_s29 + $0x1e8] sm:$0xff]   ;;  %v2672_v22 = vsub.s32 4, %v8398_v12  ;;  %v2680_v24 = vsub.s32 6, %v8398_v12 }
0x1082   : > { %v3408_v39 = vpop.f32.mrb[44].mxu1  ;;  %v3451_v38 = vpop.f32.mrb[32].mxu0 }
0x1083   : > { %v3409_v40 = vadd.f32 %v3408_v39, %v2657_v30  ;;  %v3452_v41 = vadd.f32 %v3451_v38, %v2665_v33  ;;  %v3410_v43 = vpop.f32.mrb[45].mxu1  ;;  %v3453_v46 = vpop.f32.mrb[33].mxu0  ;;  %v2673_v39 = vrot.slane %v8810_v25, %v2672_v22  ;;  %v2681_v38 = vrot.slane %v8810_v25, %v2680_v24 }
0x1084   : > { %v3411_v47 = vadd.f32 %v3410_v43, %v2661_v35  ;;  %v3454_v48 = vadd.f32 %v3453_v46, %v2669_v37  ;;  %v3412_v49 = vpop.f32.mrb[46].mxu1  ;;  %v3455_v50 = vpop.f32.mrb[34].mxu0 }
0x1085   : > { %v3413_v52 = vadd.f32 %v3412_v49, %v2657_v30  ;;  %v3456_v42 = vadd.f32 %v3455_v50, %v2665_v33  ;;  %v3414_v51 = vpop.f32.mrb[47].mxu1  ;;  %v3457_v53 = vpop.f32.mrb[35].mxu0  ;;  %v3718_v55 = vmax.f32 %v3409_v40, 0.0  ;;  %v3720_v56 = vmax.f32 %v3452_v41, 0.0  ;;  %v6906_v40 = vld [vmem:[%s8312_s29 + $0x170] sm:$0xff]  }
0x1086   : > { %v3415_v54 = vadd.f32 %v3414_v51, %v2661_v35  ;;  %v3458_v4 = vadd.f32 %v3457_v53, %v2669_v37  ;;  %v3719_v26 = vmax.f32 %v3411_v47, 0.0  ;;  %v3721_v58 = vmax.f32 %v3454_v48, 0.0  ;;  %v6904_v35 = vld [vmem:[%s8312_s29 + $0x128] sm:$0xff]   ;;  %v6907_v41 = vld [vmem:[%s8312_s29 + $0x1f0] sm:$0xff]  }
0x1087   : > { %v3734_v57 = vmax.f32 %v3413_v52, 0.0  ;;  %v3736_v10 = vmax.f32 %v3456_v42, 0.0  ;;  %v2676_v30 = vsub.s32 5, %v8398_v12  ;;  %v2684_v33 = vsub.s32 7, %v8398_v12  ;;  %v6905_v37 = vld [vmem:[%s8312_s29 + $0x1a8] sm:$0xff]   ;;  %v6908_v49 = vld [vmem:[%s8312_s29 + $0x130] sm:$0xff]  }
0x1088   : > { %v3735_v34 = vmax.f32 %v3415_v54, 0.0  ;;  %v3737_v59 = vmax.f32 %v3458_v4, 0.0  ;;  %v6909_v50 = vld [vmem:[%s8312_s29 + $0x1b0] sm:$0xff]   ;;  %v6910_v54 = vld [vmem:[%s8312_s29 + $0x178] sm:$0xff]  }
0x1089   : > { %v3750_v60 = vpack.c.bf16 %v3734_v57, %v3718_v55  ;;  %v3752_v5 = vpack.c.bf16 %v3736_v10, %v3720_v56  ;;  %v2677_v43 = vrot.slane %v8810_v25, %v2676_v30  ;;  %v2685_v46 = vrot.slane %v8810_v25, %v2684_v33  ;;  %v6911_v4 = vld [vmem:[%s8312_s29 + $0x1f8] sm:$0xff]  }
0x108a   : > { %v3751_v23 = vpack.c.bf16 %v3735_v34, %v3719_v26  ;;  %v3753_v27 = vpack.c.bf16 %v3737_v59, %v3721_v58 }
0x108c   : > { %4829 = vmatprep.mubr.bf16.mxu1 %v3751_v23  ;;  %4870 = vmatprep.mubr.bf16.mxu0 %v3753_v27  ;;  %v6913_v23 = vld [vmem:[%s8312_s29 + $0x1b8] sm:$0xff]  }
0x108d   : > { %4830 = vmatmul.mubr.bf16.vlgmr.msra.gmra.mrb[60].mxu1 %v3750_v60  ;;  %4871 = vmatmul.mubr.bf16.vlgmr.msra.gmra.mrb[48].mxu0 %v3752_v5  ;;  %v6912_v5 = vld [vmem:[%s8312_s29 + $0x138] sm:$0xff]  }
0x108e   : > { %6263 = vmatpush3.bf16.msra.mxu1 %v6884_v36  ;;  %6285 = vmatpush3.bf16.msra.mxu0 %v6885_v61 }
0x108f   : > { %6264 = vmatprep.subr.bf16.mxu1 %v6886_v31  ;;  %6286 = vmatprep.subr.bf16.mxu0 %v6887_v62  ;;  %v6914_v62 = vld [vmem:[%s8312_s29 + $0x240] sm:$0xff]  }
0x1092   : > { %6265 = vmatpush3.bf16.msra.mxu1 %v6888_v2  ;;  %6287 = vmatpush3.bf16.msra.mxu0 %v6889_v3  ;;  %v6915_v2 = vld [vmem:[%s8312_s29 + $0x2c0] sm:$0xff]  }
0x1093   : > { %6266 = vmatprep.subr.bf16.mxu1 %v6890_v6  ;;  %6288 = vmatprep.subr.bf16.mxu0 %v6891_v7 }
0x1096   : > { %6267 = vmatpush3.bf16.msra.mxu1 %v6892_v8  ;;  %6289 = vmatpush3.bf16.msra.mxu0 %v6893_v9 }
0x1097   : > { %6268 = vmatprep.subr.bf16.mxu1 %v6894_v11  ;;  %6290 = vmatprep.subr.bf16.mxu0 %v6895_v14 }
0x109a   : > { %6269 = vmatpush3.bf16.msra.mxu1 %v6896_v15  ;;  %6291 = vmatpush3.bf16.msra.mxu0 %v6897_v28  ;;  %v6916_v28 = vld [vmem:[%s8312_s29 + $0x200] sm:$0xff]  }
0x109b   : > { %6270 = vmatprep.subr.bf16.mxu1 %v6898_v17  ;;  %6292 = vmatprep.subr.bf16.mxu0 %v6899_v44  ;;  %v6917_v17 = vld [vmem:[%s8312_s29 + $0x280] sm:$0xff]   ;;  %v6918_v44 = vld [vmem:[%s8312_s29 + $0x248] sm:$0xff]  }
0x109e   : > { %6271 = vmatpush3.bf16.msra.mxu1 %v6900_v18  ;;  %6293 = vmatpush3.bf16.msra.mxu0 %v6901_v19  ;;  %v6919_v18 = vld [vmem:[%s8312_s29 + $0x2c8] sm:$0xff]  }
0x109f   : > { %6272 = vmatprep.subr.bf16.mxu1 %v6902_v20  ;;  %6294 = vmatprep.subr.bf16.mxu0 %v6903_v21  ;;  %v6920_v19 = vld [vmem:[%s8312_s29 + $0x208] sm:$0xff]   ;;  %v6922_v21 = vld [vmem:[%s8312_s29 + $0x250] sm:$0xff]  }
0x10a0   : > { %v6921_v20 = vld [vmem:[%s8312_s29 + $0x288] sm:$0xff]  }
0x10a2   : > { %v3494_v47 = vpop.f32.mrb[48].mxu1  ;;  %v3537_v48 = vpop.f32.mrb[36].mxu0  ;;  %6273 = vmatpush3.bf16.msra.mxu1 %v6904_v35  ;;  %6295 = vmatpush3.bf16.msra.mxu0 %v6905_v37  ;;  %v6923_v35 = vld [vmem:[%s8312_s29 + $0x2d0] sm:$0xff]  }
0x10a3   : > { %v3495_v52 = vadd.f32 %v3494_v47, %v2673_v39  ;;  %v3538_v42 = vadd.f32 %v3537_v48, %v2681_v38  ;;  %v3496_v51 = vpop.f32.mrb[49].mxu1  ;;  %v3539_v53 = vpop.f32.mrb[37].mxu0  ;;  %6274 = vmatprep.subr.bf16.mxu1 %v6906_v40  ;;  %6296 = vmatprep.subr.bf16.mxu0 %v6907_v41  ;;  %v6924_v37 = vld [vmem:[%s8312_s29 + $0x210] sm:$0xff]   ;;  %v6927_v40 = vld [vmem:[%s8312_s29 + $0x2d8] sm:$0xff]   ;;  %v6931_v47 = vld [vmem:[%s8312_s29 + $0x2e0] sm:$0xff]  }
0x10a4   : > { %v3497_v55 = vadd.f32 %v3496_v51, %v2677_v43  ;;  %v3540_v56 = vadd.f32 %v3539_v53, %v2685_v46  ;;  %v3498_v57 = vpop.f32.mrb[50].mxu1  ;;  %v3541_v25 = vpop.f32.mrb[38].mxu0  ;;  %v6928_v41 = vld [vmem:[%s8312_s29 + $0x218] sm:$0xff]   ;;  %v6932_v48 = vld [vmem:[%s8312_s29 + $0x220] sm:$0xff]   ;;  %v6936_v51 = vld [vmem:[%s8312_s29 + $0x228] sm:$0xff]  }
0x10a5   : > { %v3499_v10 = vadd.f32 %v3498_v57, %v2673_v39  ;;  %v3542_v26 = vadd.f32 %v3541_v25, %v2681_v38  ;;  %v3500_v58 = vpop.f32.mrb[51].mxu1  ;;  %v3543_v34 = vpop.f32.mrb[39].mxu0  ;;  %v3722_v27 = vmax.f32 %v3495_v52, 0.0  ;;  %v3724_v36 = vmax.f32 %v3538_v42, 0.0  ;;  %v6925_v39 = vld [vmem:[%s8312_s29 + $0x290] sm:$0xff]   ;;  %v6926_v38 = vld [vmem:[%s8312_s29 + $0x258] sm:$0xff]  }
0x10a6   : > { %v3501_v59 = vadd.f32 %v3500_v58, %v2677_v43  ;;  %v3544_v60 = vadd.f32 %v3543_v34, %v2685_v46  ;;  %6275 = vmatpush3.bf16.msra.mxu1 %v6908_v49  ;;  %6297 = vmatpush3.bf16.msra.mxu0 %v6909_v50  ;;  %v3723_v3 = vmax.f32 %v3497_v55, 0.0  ;;  %v3725_v6 = vmax.f32 %v3540_v56, 0.0  ;;  %v6929_v43 = vld [vmem:[%s8312_s29 + $0x298] sm:$0xff]   ;;  %v6930_v46 = vld [vmem:[%s8312_s29 + $0x260] sm:$0xff]   ;;  %v6934_v50 = vld [vmem:[%s8312_s29 + $0x268] sm:$0xff]  }
0x10a7   : > { %v3738_v61 = vmax.f32 %v3499_v10, 0.0  ;;  %v3740_v31 = vmax.f32 %v3542_v26, 0.0  ;;  %6276 = vmatprep.subr.bf16.mxu1 %v6910_v54  ;;  %6298 = vmatprep.subr.bf16.mxu0 %v6911_v4  ;;  %v6933_v49 = vld [vmem:[%s8312_s29 + $0x2a0] sm:$0xff]   ;;  %v6935_v52 = vld [vmem:[%s8312_s29 + $0x2e8] sm:$0xff]   ;;  %v6938_v55 = vld [vmem:[%s8312_s29 + $0x270] sm:$0xff]  }
0x10a8   : > { %v3739_v7 = vmax.f32 %v3501_v59, 0.0  ;;  %v3741_v8 = vmax.f32 %v3544_v60, 0.0  ;;  %v8891_v42 = vld [vmem:[%s8309_s20 + $0x8] sm:$0xff]  ;;  %v6939_v56 = vld [vmem:[%s8312_s29 + $0x2f0] sm:$0xff]   ;;  %s9193_s20 = sld [smem:[#allocation62_spill]] (!%p6156_p5) }
0x10a9   : > { %v3754_v9 = vpack.c.bf16 %v3738_v61, %v3722_v27  ;;  %v3756_v11 = vpack.c.bf16 %v3740_v31, %v3724_v36  ;;  %v6937_v53 = vld [vmem:[%s8312_s29 + $0x2a8] sm:$0xff]   ;;  %v2689_v54 = vrot.slane %v8891_v42, %v8406_v16  ;;  %v2697_v4 = vrot.slane %v8891_v42, %v8432_v32  ;;  %v6940_v58 = vld [vmem:[%s8312_s29 + $0x230] sm:$0xff]  }
0x10aa   : > { %v3755_v14 = vpack.c.bf16 %v3739_v7, %v3723_v3  ;;  %v3757_v15 = vpack.c.bf16 %v3741_v8, %v3725_v6  ;;  %6277 = vmatpush3.bf16.msra.mxu1 %v6912_v5  ;;  %6299 = vmatpush3.bf16.msra.mxu0 %v6913_v23  ;;  %v2693_v57 = vrot.slane %v8891_v42, %v8401_v13  ;;  %v6941_v16 = vld [vmem:[%s8312_s29 + $0x2b0] sm:$0xff]   ;;  %v6942_v5 = vld [vmem:[%s8312_s29 + $0x278] sm:$0xff]  }
0x10ab   : > { %6306 = vmatprep.subr.bf16.mxu1 %v6914_v62  ;;  %6328 = vmatprep.subr.bf16.mxu0 %v6915_v2  ;;  %v2701_v25 = vrot.slane %v8891_v42, %v2668_v29  ;;  %v6943_v13 = vld [vmem:[%s8312_s29 + $0x2f8] sm:$0xff]  }
0x10ac   : > { %4911 = vmatprep.mubr.bf16.mxu1 %v3755_v14  ;;  %4952 = vmatprep.mubr.bf16.mxu0 %v3757_v15  ;;  %v6944_v7 = vld [vmem:[%s8312_s29 + $0x238] sm:$0xff]  }
0x10ad   : > { %4912 = vmatmul.mubr.bf16.vlgmr.msra.gmra.mrb[64].mxu1 %v3754_v9  ;;  %4953 = vmatmul.mubr.bf16.vlgmr.msra.gmra.mrb[52].mxu0 %v3756_v11  ;;  %v6945_v8 = vld [vmem:[%s8312_s29 + $0x2b8] sm:$0xff]  }
0x10ae   : > { %6307 = vmatpush3.bf16.msra.mxu1 %v6916_v28  ;;  %6329 = vmatpush3.bf16.msra.mxu0 %v6917_v17  ;;  %v6946_v28 = vld [vmem:[%s8312_s29 + $0x340] sm:$0xff]  }
0x10af   : > { %6308 = vmatprep.subr.bf16.mxu1 %v6918_v44  ;;  %6330 = vmatprep.subr.bf16.mxu0 %v6919_v18  ;;  %v6947_v17 = vld [vmem:[%s8312_s29 + $0x3c0] sm:$0xff]  }
0x10b2   : > { %6309 = vmatpush3.bf16.msra.mxu1 %v6920_v19  ;;  %6331 = vmatpush3.bf16.msra.mxu0 %v6921_v20 }
0x10b3   : > { %6310 = vmatprep.subr.bf16.mxu1 %v6922_v21  ;;  %6332 = vmatprep.subr.bf16.mxu0 %v6923_v35 }
0x10b6   : > { %6311 = vmatpush3.bf16.msra.mxu1 %v6924_v37  ;;  %6333 = vmatpush3.bf16.msra.mxu0 %v6925_v39 }
0x10b7   : > { %6312 = vmatprep.subr.bf16.mxu1 %v6926_v38  ;;  %6334 = vmatprep.subr.bf16.mxu0 %v6927_v40  ;;  %v6948_v38 = vld [vmem:[%s8312_s29 + $0x300] sm:$0xff]  }
0x10b8   : > { %v6949_v40 = vld [vmem:[%s8312_s29 + $0x380] sm:$0xff]  }
0x10ba   : > { %6313 = vmatpush3.bf16.msra.mxu1 %v6928_v41  ;;  %6335 = vmatpush3.bf16.msra.mxu0 %v6929_v43  ;;  %v6950_v41 = vld [vmem:[%s8312_s29 + $0x348] sm:$0xff]  }
0x10bb   : > { %6314 = vmatprep.subr.bf16.mxu1 %v6930_v46  ;;  %6336 = vmatprep.subr.bf16.mxu0 %v6931_v47  ;;  %v6951_v43 = vld [vmem:[%s8312_s29 + $0x3c8] sm:$0xff]  }
0x10bc   : > { %v6952_v46 = vld [vmem:[%s8312_s29 + $0x308] sm:$0xff]  }
0x10bd   : > { %v6953_v47 = vld [vmem:[%s8312_s29 + $0x388] sm:$0xff]  }
0x10be   : > { %6315 = vmatpush3.bf16.msra.mxu1 %v6932_v48  ;;  %6337 = vmatpush3.bf16.msra.mxu0 %v6933_v49  ;;  %v6954_v48 = vld [vmem:[%s8312_s29 + $0x350] sm:$0xff]  }
0x10bf   : > { %6316 = vmatprep.subr.bf16.mxu1 %v6934_v50  ;;  %6338 = vmatprep.subr.bf16.mxu0 %v6935_v52  ;;  %v6955_v49 = vld [vmem:[%s8312_s29 + $0x3d0] sm:$0xff]  }
0x10c0   : > { %v6956_v50 = vld [vmem:[%s8312_s29 + $0x310] sm:$0xff]  }
0x10c1   : > { %v6957_v52 = vld [vmem:[%s8312_s29 + $0x390] sm:$0xff]  }
0x10c2   : > { %v3580_v10 = vpop.f32.mrb[52].mxu1  ;;  %v3623_v26 = vpop.f32.mrb[40].mxu0  ;;  %6317 = vmatpush3.bf16.msra.mxu1 %v6936_v51  ;;  %6339 = vmatpush3.bf16.msra.mxu0 %v6937_v53  ;;  %v6958_v51 = vld [vmem:[%s8312_s29 + $0x358] sm:$0xff]  }
0x10c3   : > { %v3581_v34 = vadd.f32 %v3580_v10, %v2689_v54  ;;  %v3624_v59 = vadd.f32 %v3623_v26, %v2697_v4  ;;  %v3582_v32 = vpop.f32.mrb[53].mxu1  ;;  %v3625_v60 = vpop.f32.mrb[41].mxu0  ;;  %6318 = vmatprep.subr.bf16.mxu1 %v6938_v55  ;;  %6340 = vmatprep.subr.bf16.mxu0 %v6939_v56  ;;  %v6959_v53 = vld [vmem:[%s8312_s29 + $0x3d8] sm:$0xff]   ;;  %v6962_v55 = vld [vmem:[%s8312_s29 + $0x360] sm:$0xff]   ;;  %v6966_v10 = vld [vmem:[%s8312_s29 + $0x368] sm:$0xff]  }
0x10c4   : > { %v3583_v23 = vadd.f32 %v3582_v32, %v2693_v57  ;;  %v3626_v27 = vadd.f32 %v3625_v60, %v2701_v25  ;;  %v3584_v36 = vpop.f32.mrb[54].mxu1  ;;  %v3627_v29 = vpop.f32.mrb[42].mxu0  ;;  %v6963_v56 = vld [vmem:[%s8312_s29 + $0x3e0] sm:$0xff]   ;;  %v6967_v26 = vld [vmem:[%s8312_s29 + $0x3e8] sm:$0xff]   ;;  %v6970_v32 = vld [vmem:[%s8312_s29 + $0x370] sm:$0xff]  }
0x10c5   : > { %v3585_v61 = vadd.f32 %v3584_v36, %v2689_v54  ;;  %v3628_v31 = vadd.f32 %v3627_v29, %v2697_v4  ;;  %v3586_v62 = vpop.f32.mrb[55].mxu1  ;;  %v3629_v2 = vpop.f32.mrb[43].mxu0  ;;  %v3726_v9 = vmax.f32 %v3581_v34, 0.0  ;;  %v3728_v11 = vmax.f32 %v3624_v59, 0.0  ;;  %v6960_v54 = vld [vmem:[%s8312_s29 + $0x318] sm:$0xff]   ;;  %v6971_v60 = vld [vmem:[%s8312_s29 + $0x3f0] sm:$0xff]  }
0x10c6   : > { %v3587_v3 = vadd.f32 %v3586_v62, %v2693_v57  ;;  %v3630_v6 = vadd.f32 %v3629_v2, %v2701_v25  ;;  %6319 = vmatpush3.bf16.msra.mxu1 %v6940_v58  ;;  %6341 = vmatpush3.bf16.msra.mxu0 %v6941_v16  ;;  %v3727_v44 = vmax.f32 %v3583_v23, 0.0  ;;  %v3729_v18 = vmax.f32 %v3626_v27, 0.0  ;;  %v6961_v4 = vld [vmem:[%s8312_s29 + $0x398] sm:$0xff]   ;;  %v6964_v57 = vld [vmem:[%s8312_s29 + $0x320] sm:$0xff]   ;;  %v6968_v58 = vld [vmem:[%s8312_s29 + $0x328] sm:$0xff]  }
0x10c7   : > { %v3742_v14 = vmax.f32 %v3585_v61, 0.0  ;;  %v3744_v15 = vmax.f32 %v3628_v31, 0.0  ;;  %6320 = vmatprep.subr.bf16.mxu1 %v6942_v5  ;;  %6342 = vmatprep.subr.bf16.mxu0 %v6943_v13  ;;  %v6965_v25 = vld [vmem:[%s8312_s29 + $0x3a0] sm:$0xff]   ;;  %v6969_v16 = vld [vmem:[%s8312_s29 + $0x3a8] sm:$0xff]   ;;  %v2705_v34 = vrot.slane %v8891_v42, %v2672_v22  ;;  %v2713_v59 = vrot.slane %v8891_v42, %v2680_v24  ;;  %v6972_v22 = vld [vmem:[%s8312_s29 + $0x330] sm:$0xff]  }
0x10c8   : > { %v3743_v19 = vmax.f32 %v3587_v3, 0.0  ;;  %v3745_v20 = vmax.f32 %v3630_v6, 0.0  ;;  %v2709_v5 = vrot.slane %v8891_v42, %v2676_v30  ;;  %v2717_v13 = vrot.slane %v8891_v42, %v2684_v33  ;;  %v6973_v36 = vld [vmem:[%s8312_s29 + $0x3b0] sm:$0xff]   ;;  %v6974_v62 = vld [vmem:[%s8312_s29 + $0x378] sm:$0xff]  }
0x10c9   : > { %v3758_v21 = vpack.c.bf16 %v3742_v14, %v3726_v9  ;;  %v3760_v35 = vpack.c.bf16 %v3744_v15, %v3728_v11  ;;  %v6975_v30 = vld [vmem:[%s8312_s29 + $0x3f8] sm:$0xff]  }
0x10ca   : > { %v3759_v37 = vpack.c.bf16 %v3743_v19, %v3727_v44  ;;  %v3761_v39 = vpack.c.bf16 %v3745_v20, %v3729_v18  ;;  %6321 = vmatpush3.bf16.msra.mxu1 %v6944_v7  ;;  %6343 = vmatpush3.bf16.msra.mxu0 %v6945_v8  ;;  %v6976_v15 = vld [vmem:[%s8312_s29 + $0x338] sm:$0xff]  }
0x10cb   : > { %6350 = vmatprep.subr.bf16.mxu1 %v6946_v28  ;;  %6372 = vmatprep.subr.bf16.mxu0 %v6947_v17  ;;  %v6977_v28 = vld [vmem:[%s8312_s29 + $0x3b8] sm:$0xff]   ;;  %s9194_s29 = smov (!%p6156_p5), %s9193_s20 }
0x10cc   : > { %4993 = vmatprep.mubr.bf16.mxu1 %v3759_v37  ;;  %5034 = vmatprep.mubr.bf16.mxu0 %v3761_v39 }
0x10cd   : > { %4994 = vmatmul.mubr.bf16.vlgmr.msra.gmra.mrb[68].mxu1 %v3758_v21  ;;  %5035 = vmatmul.mubr.bf16.vlgmr.msra.gmra.mrb[56].mxu0 %v3760_v35 }
0x10ce   : > { %6351 = vmatpush3.bf16.msra.mxu1 %v6948_v38  ;;  %6373 = vmatpush3.bf16.msra.mxu0 %v6949_v40 }
0x10cf   : > { %6352 = vmatprep.subr.bf16.mxu1 %v6950_v41  ;;  %6374 = vmatprep.subr.bf16.mxu0 %v6951_v43 }
0x10d2   : > { %6353 = vmatpush3.bf16.msra.mxu1 %v6952_v46  ;;  %6375 = vmatpush3.bf16.msra.mxu0 %v6953_v47  ;;  %v6025_v47 = vld [vmem:[%s945_s21] ss:$0 sm:$0xff] }
0x10d3   : > { %6354 = vmatprep.subr.bf16.mxu1 %v6954_v48  ;;  %6376 = vmatprep.subr.bf16.mxu0 %v6955_v49 }
0x10d6   : > { %6355 = vmatpush3.bf16.msra.mxu1 %v6956_v50  ;;  %6377 = vmatpush3.bf16.msra.mxu0 %v6957_v52 }
0x10d7   : > { %6356 = vmatprep.subr.bf16.mxu1 %v6958_v51  ;;  %6378 = vmatprep.subr.bf16.mxu0 %v6959_v53 }
0x10da   : > { %6357 = vmatpush3.bf16.msra.mxu1 %v6960_v54  ;;  %6379 = vmatpush3.bf16.msra.mxu0 %v6961_v4 }
0x10db   : > { %6358 = vmatprep.subr.bf16.mxu1 %v6962_v55  ;;  %6380 = vmatprep.subr.bf16.mxu0 %v6963_v56 }
0x10de   : > { %6359 = vmatpush3.bf16.msra.mxu1 %v6964_v57  ;;  %6381 = vmatpush3.bf16.msra.mxu0 %v6965_v25 }
0x10df   : > { %6360 = vmatprep.subr.bf16.mxu1 %v6966_v10  ;;  %6382 = vmatprep.subr.bf16.mxu0 %v6967_v26 }
0x10e2   : > { %v3666_v23 = vpop.f32.mrb[56].mxu1  ;;  %v3709_v27 = vpop.f32.mrb[44].mxu0  ;;  %6361 = vmatpush3.bf16.msra.mxu1 %v6968_v58  ;;  %6383 = vmatpush3.bf16.msra.mxu0 %v6969_v16 }
0x10e3   : > { %v3667_v29 = vadd.f32 %v3666_v23, %v2705_v34  ;;  %v3710_v24 = vadd.f32 %v3709_v27, %v2713_v59  ;;  %v3668_v61 = vpop.f32.mrb[57].mxu1  ;;  %v3711_v31 = vpop.f32.mrb[45].mxu0  ;;  %6362 = vmatprep.subr.bf16.mxu1 %v6970_v32  ;;  %6384 = vmatprep.subr.bf16.mxu0 %v6971_v60 }
0x10e4   : > { %v3669_v2 = vadd.f32 %v3668_v61, %v2709_v5  ;;  %v3712_v3 = vadd.f32 %v3711_v31, %v2717_v13  ;;  %v3670_v6 = vpop.f32.mrb[58].mxu1  ;;  %v3713_v33 = vpop.f32.mrb[46].mxu0 }
0x10e5   : > { %v3671_v42 = vadd.f32 %v3670_v6, %v2705_v34  ;;  %v3714_v7 = vadd.f32 %v3713_v33, %v2713_v59  ;;  %v3672_v8 = vpop.f32.mrb[59].mxu1  ;;  %v3715_v9 = vpop.f32.mrb[47].mxu0  ;;  %v3730_v17 = vmax.f32 %v3667_v29, 0.0  ;;  %v3732_v44 = vmax.f32 %v3710_v24, 0.0 }
0x10e6   : > { %v3673_v11 = vadd.f32 %v3672_v8, %v2709_v5  ;;  %v3716_v14 = vadd.f32 %v3715_v9, %v2717_v13  ;;  %6363 = vmatpush3.bf16.msra.mxu1 %v6972_v22  ;;  %6385 = vmatpush3.bf16.msra.mxu0 %v6973_v36  ;;  %v3731_v20 = vmax.f32 %v3669_v2, 0.0  ;;  %v3733_v21 = vmax.f32 %v3712_v3, 0.0 }
0x10e7   : > { %v3746_v18 = vmax.f32 %v3671_v42, 0.0  ;;  %v3748_v19 = vmax.f32 %v3714_v7, 0.0  ;;  %6364 = vmatprep.subr.bf16.mxu1 %v6974_v62  ;;  %6386 = vmatprep.subr.bf16.mxu0 %v6975_v30 }
0x10e8   : > { %v3747_v35 = vmax.f32 %v3673_v11, 0.0  ;;  %v3749_v37 = vmax.f32 %v3716_v14, 0.0 }
0x10e9   : > { %v3762_v39 = vpack.c.bf16 %v3746_v18, %v3730_v17  ;;  %v3764_v38 = vpack.c.bf16 %v3748_v19, %v3732_v44 }
0x10ea   : > { %v3763_v40 = vpack.c.bf16 %v3747_v35, %v3731_v20  ;;  %v3765_v41 = vpack.c.bf16 %v3749_v37, %v3733_v21  ;;  %6365 = vmatpush3.bf16.msra.mxu1 %v6976_v15  ;;  %6387 = vmatpush3.bf16.msra.mxu0 %v6977_v28 }
0x10ec   : > { %5075 = vmatprep.mubr.bf16.mxu1 %v3763_v40  ;;  %5116 = vmatprep.mubr.bf16.mxu0 %v3765_v41 }
0x10ed   : > { %5076 = vmatmul.mubr.bf16.vlgmr.msra.gmra.mrb[72].mxu1 %v3762_v39  ;;  %5117 = vmatmul.mubr.bf16.vlgmr.msra.gmra.mrb[60].mxu0 %v3764_v38 }
0x1160   : > { %v6234_v43 = vpop.f32.mrb[60].mxu1  ;;  %v6256_v46 = vpop.f32.mrb[48].mxu0 }
0x1161   : > { %v6235_v48 = vpop.f32.mrb[61].mxu1  ;;  %v6257_v49 = vpop.f32.mrb[49].mxu0 }
0x1162   : > { %v6236_v50 = vadd.f32 %v6235_v48, %v6234_v43  ;;  %v6258_v52 = vadd.f32 %v6257_v49, %v6256_v46  ;;  %v6237_v51 = vpop.f32.mrb[62].mxu1  ;;  %v6259_v53 = vpop.f32.mrb[50].mxu0 }
0x1163   : > { %v6238_v54 = vpop.f32.mrb[63].mxu1  ;;  %v6260_v4 = vpop.f32.mrb[51].mxu0 }
0x1164   : > { %v4832_v55 = vadd.f32 %v6236_v50, %v6025_v47  ;;  %v6239_v56 = vadd.f32 %v6238_v54, %v6237_v51  ;;  %v6261_v57 = vadd.f32 %v6260_v4, %v6259_v53 }
0x1166   : > { %v4873_v25 = vadd.f32 %v6258_v52, %v4832_v55  ;;  %v4835_v10 = vadd.f32 %v6239_v56, %v6025_v47 }
0x1168   : > { %v4876_v26 = vadd.f32 %v6261_v57, %v4835_v10 }
0x1180   : > { %v6278_v58 = vpop.f32.mrb[64].mxu1  ;;  %v6300_v16 = vpop.f32.mrb[52].mxu0 }
0x1181   : > { %v6279_v34 = vpop.f32.mrb[65].mxu1  ;;  %v6301_v59 = vpop.f32.mrb[53].mxu0 }
0x1182   : > { %v6280_v32 = vadd.f32 %v6279_v34, %v6278_v58  ;;  %v6302_v60 = vadd.f32 %v6301_v59, %v6300_v16  ;;  %v6281_v5 = vpop.f32.mrb[66].mxu1  ;;  %v6303_v13 = vpop.f32.mrb[54].mxu0 }
0x1183   : > { %v6282_v23 = vpop.f32.mrb[67].mxu1  ;;  %v6304_v27 = vpop.f32.mrb[55].mxu0 }
0x1184   : > { %v4914_v22 = vadd.f32 %v6280_v32, %v4873_v25  ;;  %v6283_v36 = vadd.f32 %v6282_v23, %v6281_v5  ;;  %v6305_v29 = vadd.f32 %v6304_v27, %v6303_v13  ;;  %v6154_v32 = vld [vmem:[%s969_s5] ss:$0 sm:$0xff] }
0x1185   : > { %v6155_v13 = vld [vmem:[%s977_s16] ss:$0 sm:$0xff] }
0x1186   : > { %v4955_v24 = vadd.f32 %v6302_v60, %v4914_v22  ;;  %v4917_v61 = vadd.f32 %v6283_v36, %v4876_v26 }
0x1188   : > { %v4958_v31 = vadd.f32 %v6305_v29, %v4917_v61  ;;  %v5333_v61 = vld [vmem:[%s9194_s29 + $0x8] sm:$0xff] (!%p6156_p5) }
0x11a0   : > { %v6322_v62 = vpop.f32.mrb[68].mxu1  ;;  %v6344_v30 = vpop.f32.mrb[56].mxu0 }
0x11a1   : > { %v6323_v2 = vpop.f32.mrb[69].mxu1  ;;  %v6345_v3 = vpop.f32.mrb[57].mxu0 }
0x11a2   : > { %v6324_v6 = vadd.f32 %v6323_v2, %v6322_v62  ;;  %v6346_v33 = vadd.f32 %v6345_v3, %v6344_v30  ;;  %v6325_v42 = vpop.f32.mrb[70].mxu1  ;;  %v6347_v7 = vpop.f32.mrb[58].mxu0  ;;  %v5323_v62 = vsel (!%p6156_p5), %vm5319_vm7, %v8339_v1, 0.0  ;;  %v5320_v2 = vsel (!%p6156_p5), %vm5319_vm7, %v8337_v0, 0.0  ;;  %v5334_v3 = vld [vmem:[%s9194_s29 + $0x10] sm:$0xff] (!%p6156_p5) }
0x11a3   : > { %v6326_v8 = vpop.f32.mrb[71].mxu1  ;;  %v6348_v9 = vpop.f32.mrb[59].mxu0 }
0x11a4   : > { %v4996_v11 = vadd.f32 %v6324_v6, %v4955_v24  ;;  %v6327_v14 = vadd.f32 %v6326_v8, %v6325_v42  ;;  %v6349_v15 = vadd.f32 %v6348_v9, %v6347_v7  ;;  %v5332_v24 = vld [vmem:[%s9193_s20] sm:$0xff] (!%p6156_p5)  ;;  %v5335_v6 = vld [vmem:[%s9194_s29 + $0x18] sm:$0xff] (!%p6156_p5)  ;;  %v5337_v7 = vld [vmem:[%s9194_s29 + $0x28] sm:$0xff] (!%p6156_p5) }
0x11a5   : > { %v6597_v30 = vpack.c.bf16 (!%p6156_p5), %v5333_v61, %v5332_v24  ;;  %v6600_v42 = vpack.c.bf16 (!%p6156_p5), %v5335_v6, %v5334_v3  ;;  %v5338_v9 = vld [vmem:[%s9194_s29 + $0x30] sm:$0xff] (!%p6156_p5) }
0x11a6   : > { %v5037_v28 = vadd.f32 %v6346_v33, %v4996_v11  ;;  %v4999_v17 = vadd.f32 %v6327_v14, %v4958_v31  ;;  %v7642_v31 = vmov (!%p6156_p5), 0.0   ;;  %v7644_v33 = vmov (!%p6156_p5), 0.0|0.0   ;;  %v5340_v11 = vld [vmem:[%s9194_s29 + $0x40] sm:$0xff] (!%p6156_p5) }
0x11a7   : > { %6551 = vmatprep.subr.mxu1 (!%p6156_p5), %v7642_v31  ;;  %6553 = vmatprep.mubr.msk.f32.mxu1 (!%p6156_p5), %vm7643_vm8, %v7642_v31 }
0x11a8   : > { %v5040_v44 = vadd.f32 %v6349_v15, %v4999_v17  ;;  %6596 = vmatprep.subr.bf16.mxu0 (!%p6156_p5), %v7644_v33  ;;  %6593 = vmatprep.mubr.msk.f32.mxu0 (!%p6156_p5), %vm7643_vm8, %v7642_v31  ;;  %v5341_v15 = vld [vmem:[%s9194_s29 + $0x48] sm:$0xff] (!%p6156_p5)  ;;  %v5342_v17 = vld [vmem:[%s9194_s29 + $0x50] sm:$0xff] (!%p6156_p5) }
0x11a9   : > { %6598 = vmatpush3.bf16.msra.mxu0 (!%p6156_p5), %v6597_v30 }
0x11aa   : > { %6599 = vmatprep.subr.bf16.mxu0 (!%p6156_p5), %v7644_v33 }
0x11ad   : > { %6601 = vmatpush3.bf16.msra.mxu0 (!%p6156_p5), %v6600_v42 }
0x11ae   : > { %6602 = vmatprep.subr.bf16.mxu0 (!%p6156_p5), %v7644_v33 }
0x11c0   : > { %v6366_v18 = vpop.f32.mrb[72].mxu1  ;;  %v6388_v19 = vpop.f32.mrb[60].mxu0 }
0x11c1   : > { %v6367_v20 = vpop.f32.mrb[73].mxu1  ;;  %v6389_v21 = vpop.f32.mrb[61].mxu0 }
0x11c2   : > { %v6368_v35 = vadd.f32 %v6367_v20, %v6366_v18  ;;  %v6390_v37 = vadd.f32 %v6389_v21, %v6388_v19  ;;  %v6369_v39 = vpop.f32.mrb[74].mxu1  ;;  %v6391_v38 = vpop.f32.mrb[62].mxu0  ;;  %v5344_v19 = vld [vmem:[%s9194_s29 + $0x60] sm:$0xff] (!%p6156_p5)  ;;  %v5345_v20 = vld [vmem:[%s9194_s29 + $0x68] sm:$0xff] (!%p6156_p5) }
0x11c3   : > { %v6370_v40 = vpop.f32.mrb[75].mxu1  ;;  %v6392_v41 = vpop.f32.mrb[63].mxu0  ;;  %v6615_v21 = vpack.c.bf16 (!%p6156_p5), %v5345_v20, %v5344_v19 }
0x11c4   : > { %v5078_v43 = vadd.f32 %v6368_v35, %v5037_v28  ;;  %v6371_v46 = vadd.f32 %v6370_v40, %v6369_v39  ;;  %v6393_v47 = vadd.f32 %v6392_v41, %v6391_v38  ;;  %v6609_v28 = vpack.c.bf16 (!%p6156_p5), %v5341_v15, %v5340_v11  ;;  %v5346_v35 = vld [vmem:[%s9194_s29 + $0x70] sm:$0xff] (!%p6156_p5) }
0x11c6   : > { %v5119_v48 = vadd.f32 %v6390_v37, %v5078_v43  ;;  %v5081_v49 = vadd.f32 %v6371_v46, %v5040_v44  ;;  %v5343_v44 = vld [vmem:[%s9194_s29 + $0x58] sm:$0xff] (!%p6156_p5) }
0x11c7   : > { %v6612_v18 = vpack.c.bf16 (!%p6156_p5), %v5343_v44, %v5342_v17  ;;  %v5347_v37 = vld [vmem:[%s9194_s29 + $0x78] sm:$0xff] (!%p6156_p5) }
0x11c8   : > { %v5122_v50 = vadd.f32 %v6393_v47, %v5081_v49  ;;  %v5125_v52 = vadd.f32 %v5119_v48, %v8665_v45  ;;  %v6618_v39 = vpack.c.bf16 (!%p6156_p5), %v5347_v37, %v5346_v35 }
0x11ca   : > { %5129 = vadd.xlane.f32.xlu0 %v5125_v52  ;;  %v5126_v51 = vadd.f32 %v5122_v50, %v8667_v63 }
0x11cc   : > { %5131 = vadd.xlane.f32.xlu1 %v5126_v51 }
0x1257   : > { %v5130_v53 = vpop.xlane.xlu0 %5129 }
0x1258   : > { %v5133_v54 = vmul.f32 0.0078125, %v5130_v53 }
0x1259   : > { %v5132_v4 = vpop.xlane.xlu1 %5131 }
0x125a   : > { %v5135_v55 = vsub.f32 %v5125_v52, %v5133_v54  ;;  %v5134_v56 = vmul.f32 0.0078125, %v5132_v4 }
0x125c   : > { %v5136_v57 = vsub.f32 %v5126_v51, %v5134_v56  ;;  %v5137_v25 = vmul.f32 %v5135_v55, %v5135_v55 }
0x125e   : > { %5139 = vadd.xlane.f32.xlu0 %v5137_v25  ;;  %v5138_v10 = vmul.f32 %v5136_v57, %v5136_v57  ;;  %v6159_v25 = vld [vmem:[#allocation28] ss:$0 sm:$0xff] (!%p6156_p5) }
0x1260   : > { %5141 = vadd.xlane.f32.xlu1 %v5138_v10 }
0x1262   : > { %5324 = vadd.xlane.f32.xlu0 (!%p6156_p5), %v5323_v62 }
0x1266   : > { %5321 = vadd.xlane.f32.xlu0 (!%p6156_p5), %v5320_v2 }
0x12eb   : > { %v5140_v26 = vpop.xlane.xlu0 %5139 }
0x12ec   : > { %v5143_v58 = vmul.f32 0.0078125, %v5140_v26 }
0x12ed   : > { %v5142_v16 = vpop.xlane.xlu1 %5141 }
0x12ee   : > { %v5145_v45 = vadd.f32 1e-05, %v5143_v58  ;;  %v5144_v34 = vmul.f32 0.0078125, %v5142_v16 }
0x12ef   : > { %v5325_v38 = vpop.xlane.xlu0 (!%p6156_p5), %5324 }
0x12f0   : > { %7014 = vrsqrt.f32 %v5145_v45  ;;  %v5146_v63 = vadd.f32 1e-05, %v5144_v34  ;;  %v5327_v41 = vmax.f32 (!%p6156_p5), %v5325_v38, 1.0 }
0x12f2   : > { %7016 = vrsqrt.f32 %v5146_v63 }
0x12f3   : > { %v5322_v40 = vpop.xlane.xlu0 (!%p6156_p5), %5321  ;;  %7020 = vrcp.f32 (!%p6156_p5), %v5327_v41 }
0x12f4   : > { %v5326_v43 = vmax.f32 (!%p6156_p5), %v5322_v40, 1.0 }
0x12f6   : > { %7022 = vrcp.f32 (!%p6156_p5), %v5326_v43 }
0x12fa   : > { %v7015_v59 = vpop.eup %7014 }
0x12fb   : > { %v5149_v60 = vmul.f32 %v7015_v59, %v5135_v55  ;;  %v7645_v55 = vmov (!%p6156_p5), 1966171168  }
0x12fc   : > { %v7017_v5 = vpop.eup %7016  ;;  %v5433_v56 = vunpack.c.l.s4 (!%p6156_p5), %v7645_v55 }
0x12fd   : > { %v5157_v23 = vmul.f32 %v6154_v32, %v5149_v60  ;;  %v5150_v27 = vmul.f32 %v7017_v5, %v5136_v57  ;;  %5172 = sbr.rel (%p6156_p5) target bundleno = 5308 (0x14bc), region = 168  ;;  %v7021_v48 = vpop.eup (!%p6156_p5), %7020 }
0x12fe   : > { %v5434_v57 = vunpack.c.0.s8 (!%p6156_p5), %v5433_v56 }
0x12ff   : > { %v5165_v22 = vadd.f32 %v6155_v13, %v5157_v23  ;;  %v5158_v36 = vmul.f32 %v6154_v32, %v5150_v27 }
0x1300   : > { %v7023_v49 = vpop.eup (!%p6156_p5), %7022  ;;  %v5437_v10 = vsub.s32 (!%p6156_p5), %v5434_v57, %v8398_v12 }
0x1301   : > { %5167 = vst [vmem:[#allocation2] sm:$0xff] %v5165_v22  ;;  %v5166_v29 = vadd.f32 %v6155_v13, %v5158_v36  ;;  %6552 = vmatpush3.msra.mxu1 (!%p6156_p5), %v5165_v22 }
0x1302   : > { %6554 = vmatmul.mubr.msk.f32.vlgmr.msra.gmra.mrb[0].mxu1 (!%p6156_p5), %vm1544_vm3, %v8337_v0  ;;  %6556 = vmatprep.subr.mxu1 (!%p6156_p5), %v7642_v31  ;;  %v5336_v0 = vld [vmem:[%s9194_s29 + $0x20] sm:$0xff] (!%p6156_p5) }
0x1303   : > { %5168 = vst [vmem:[#allocation2 + $0x8] sm:$0xff] %v5166_v29  ;;  %6557 = vmatpush3.msra.mxu1 (!%p6156_p5), %v5166_v29  ;;  %6558 = vmatprep.mubr.msk.f32.mxu1 (!%p6156_p5), %vm7643_vm8, %v7642_v31  ;;  %v6603_v8 = vpack.c.bf16 (!%p6156_p5), %v5337_v7, %v5336_v0 }
0x1305   : > { %6604 = vmatpush3.bf16.msra.mxu0 %v6603_v8 }
0x1306   : > { %6559 = vmatmul.mubr.msk.f32.vlgmr.msra.gmra.mrb[2].mxu1 %vm1544_vm3, %v8339_v1  ;;  %6605 = vmatprep.subr.bf16.mxu0 %v7644_v33  ;;  %v5339_v1 = vld [vmem:[%s9194_s29 + $0x38] sm:$0xff] }
0x1307   : > { %v6606_v14 = vpack.c.bf16 %v5339_v1, %v5338_v9 }
0x1309   : > { %6607 = vmatpush3.bf16.msra.mxu0 %v6606_v14 }
0x130a   : > { %6608 = vmatprep.subr.bf16.mxu0 %v7644_v33 }
0x130d   : > { %6610 = vmatpush3.bf16.msra.mxu0 %v6609_v28 }
0x130e   : > { %6611 = vmatprep.subr.bf16.mxu0 %v7644_v33 }
0x1311   : > { %6613 = vmatpush3.bf16.msra.mxu0 %v6612_v18 }
0x1312   : > { %6614 = vmatprep.subr.bf16.mxu0 %v7644_v33 }
0x1315   : > { %6616 = vmatpush3.bf16.msra.mxu0 %v6615_v21 }
0x1316   : > { %6617 = vmatprep.subr.bf16.mxu0 %v7644_v33 }
0x1319   : > { %6619 = vmatpush3.bf16.msra.mxu0 %v6618_v39 }
0x13d5   : > { %v5242_v46 = vpop.f32.mrb[0].mxu1 }
0x13d6   : > { %v6555_v47 = vpop.f32.mrb[1].mxu1  ;;  %v5329_v53 = vmul.f32 %v7023_v49, %v5242_v46 }
0x13d9   : > { %v5315_v50 = vpop.f32.mrb[2].mxu1 }
0x13da   : > { %v5331_v52 = vmul.f32 %v7021_v48, %v5315_v50  ;;  %v6560_v51 = vpop.f32.mrb[3].mxu1 }
0x13dc   : > { %v5357_v54 = vrot.slane %v5331_v52, 7 }
0x13de   : > { %v5359_v4 = vsel %vm5358_vm9, %v5357_v54, %v5329_v53 }
0x13df   : > { %6594 = vmatmul.mubr.f32.vlgmr.msra.gmra.mrb[0].mxu0 %v5359_v4 }
0x14b2   : > { %v5427_v26 = vpop.f32.mrb[0].mxu0 }
0x14b3   : > { %v5428_v58 = vadd.f32 %v6159_v25, %v5427_v26  ;;  %v6595_v16 = vpop.f32.mrb[1].mxu0 }
0x14b5   : > { %v5438_v45 = vrot.slane %v5428_v58, %v5437_v10 }
0x14b7   : > { %v5439_v34 = vcombine.high %v5438_v45, %v5438_v45  ;;  %v5446_v63 = vrot.slane %v5438_v45, %v5437_v10 }
0x14b9   : > { %v5453_v59 = vrot.slane %v5439_v34, %v5437_v10  ;;  %5457 = vst.msk [vmem:[#allocation30] sm:$0x1] %vm5456_vm10, %v5446_v63 }
0x14bb   : > { %5458 = vst.msk [vmem:[#allocation30 + $0x1] sm:$0x1] %vm5456_vm10, %v5453_v59 }
0x14bc PF: > { %s9195_s26 = sld [smem:[#allocation45_spill]]  ;;  %s7646_s22 = smov [#allocation30]  }
0x14bd   : > { %s5468_s13 = sshll.u32 %s7646_s22, 4  ;;  %s5469_s13 = int_to_ptr.vmem [resolvable:$true] %s5468_s13 }
0x14be   : > { %s7496_s27 = scalar_lea.vmem %s5469_s13, 32  ;;  %p7503_p0 = scmp.lt.s32.totalorder %s5469_s13, %s5469_s13 }
0x14bf   : > { %p7497_p1 = scmp.ne.s32.totalorder %s5469_s13, %s7496_s27  ;;  %p7504_p6 = scmp.lt.s32.totalorder %s7496_s27, %s7496_s27 }
0x14c1   : > { %p7505_p7 = por %p7504_p6, %p7503_p0 }
0x14c2   : > { %p6729_p12 = scmp.eq.s32.totalorder %s9195_s26, 3 }
0x14c4   : > { %p7498_p10 = pnand %p7497_p1, %p6729_p12 }
0x14c6   : > { %p7499_p11 = pneg %p7498_p10 }
0x14c8   : > { %p7506_p4 = pnand %p7505_p7, %p7499_p11 }
0x14ca   : > { %7509 = shalt.err (!%p7506_p4)
}
0x14cb   : > { %s9196_s21 = sld [smem:[#allocation63_spill]] }
0x14d1   : > { %s9197_s12 = smov %s9196_s21  ;;  %s7510_s3 = scalar_lea.hbm %s9196_s21, 32 }
0x14d2   : > { %p7511_p13 = scmp.ne.s32.totalorder %s9197_s12, %s7510_s3  ;;  %p7516_p8 = scmp.lt.u32.totalorder %s7510_s3, %s9197_s12 }
0x14d4   : > { %p7512_p2 = pnand %p7511_p13, %p6729_p12 }
0x14d6   : > { %p7513_p9 = pneg %p7512_p2 }
0x14d8   : > { %p7518_p3 = pnand %p7516_p8, %p7513_p9 }
0x14da   : > { %7521 = shalt.err (!%p7518_p3)
}
0x14db   : > { %s7647_s30 = smov 16   ;;  %s7648_s28 = smov 1  }
0x14dc   : > { %6667 = dma.vmem_to_hbm [thread:$0]  (%p6729_p12), %s5469_s13, 32, %s9197_s12, [#allocation6], %s7647_s30, %s7647_s30, %s7648_s28  }
0x14dd   : > { %7583 = dma.done.wait (%p6729_p12), [#allocation6], 32  }
0x14de   : > { %7585 = vsyncadd (%p6729_p12), [#allocation6], 4294967264 }
0x14df PF: > { %s9198_s25 = sld [smem:[#allocation44_spill]]  ;;  %s9199_s0 = sld [smem:[#allocation41_spill]] }
0x14e0   : > { %s9200_s30 = sld [smem:[#allocation42_spill]]  ;;  %s9201_s20 = sld [smem:[#allocation49_spill]] }
0x14e1   : > { %s9202_s27 = sld [smem:[#allocation48_spill]]  ;;  %s9203_s21 = smov %s7604_s1 }
0x14e5   : > { %s51_s22 = sadd.s32 1, %s9198_s25  }
0x14e6   : > { %p48_p5 = scmp.ge.s32.totalorder %s51_s22, 6  }
0x14e7   : > { %s9204_s1 = smov %s9202_s27 }
0x14e8   :  { %50 = sbr.rel (!%p48_p5) target bundleno = 33 (0x21), region = 294 }
0x14ef   :  { %5484 = vsyncpa [#allocation5], 1 }
0x14f0   :  { %5486 = vsyncpa [#allocation5 + $0x1], 1 }
0x14f1   :  { %5487 = vsyncpa [#allocation8], 1 }
0x14f2   :  { %5488 = vsyncpa [#allocation11], 1 }
0x14f3   :  { %5490 = vsyncpa [#allocation11 + $0x1], 1 }
0x14f4   :  { %5491 = vsyncpa [#allocation14], 1 }
0x14f5   :  { %5493 = vsyncpa [#allocation14 + $0x1], 1 }
0x14f6   :  { %5494 = vsyncpa [#allocation17], 1 }
0x14f7   :  { %5496 = vsyncpa [#allocation17 + $0x1], 1 }
0x14f8   :  { %5497 = vsyncpa [#allocation20], 1 }
0x14f9   :  { %5499 = vsyncpa [#allocation20 + $0x1], 1 }
0x14fa   :  { %5500 = vsyncpa [#allocation23], 1 }
0x14fb   :  { %5502 = vsyncpa [#allocation23 + $0x1], 1 }
0x14fc   :  { %5503 = vsyncpa [#allocation26], 1 }
0x14fd   :  { %5505 = vsyncpa [#allocation26 + $0x1], 1 }
0x14fe   :  { %5506 = vsyncpa [#allocation29], 1 }
0x14ff   :  { %5507 = vsyncpa [#allocation6], 1 }
0x1500   :  { %5509 = vsyncpa [#allocation6 + $0x1], 1 }

</bundles_post_ra>
